<compile_context>
chip_gen: v6e
topology: v6e:2x2x1
jax: 0.10.0
libtpu: 0.0.40
codegen_flags: <defaults>
</compile_context>

<pallas_src>
import functools

import jax
import jax.numpy as jnp
from jax.experimental import pallas as pl
from jax.experimental.pallas import tpu as pltpu

# Fixed MNIST geometry implied by fc1 = Linear(128*3*3, 128).
H1 = W1 = 28
M1 = H1 * W1                       # 784 conv1 output rows (conv1 is im2col'd, no in-kernel pad)
H2 = W2 = 14
WP2, HP2 = W2 + 2, H2 + 3          # conv2 padded input: 16 wide, 17 tall (1 top / 2 bottom / 1 / 1)
M2, L2 = H2 * WP2, HP2 * WP2       # 224 conv2 output rows, 272 padded rows
H3 = W3 = 7
WP3, HP3 = W3 + 2, H3 + 3          # 9 wide, 10 tall
M3, L3 = H3 * WP3, HP3 * WP3       # 63, 90
HO3 = WO3 = 3                      # pooled conv3 output (floor(7/2), PyTorch MaxPool2d default)
C1, C2, C3 = 32, 64, 128
NFC = 128                          # fc hidden; fc2 N padded 10 -> 128


def _pool_rows(act_ref, r0, r1, n):
    """2x2/2 max pool of one output row: rows r0/r0+1 (even h) and r1/r1+1 (odd h), stride-2 in w."""
    return jnp.maximum(
        jnp.maximum(act_ref[pl.ds(r0, n, stride=2), :],
                    act_ref[pl.ds(r0 + 1, n, stride=2), :]),
        jnp.maximum(act_ref[pl.ds(r1, n, stride=2), :],
                    act_ref[pl.ds(r1 + 1, n, stride=2), :]))


def _fused_cnn_kernel(x_ref, w1_ref, b1_ref, w2_ref, b2_ref, w3_ref, b3_ref,
                      wf1_ref, bf1_ref, wf2_ref, bf2_ref,
                      o_ref,
                      act1_ref, xp2_ref, act2_ref, xp3_ref, act3_ref, feat_ref,
                      *, TB):
    # Zero the padded inter-layer buffers once per grid step: the interior is fully overwritten
    # for every image, so the zero halo stays valid for the whole batch block.
    xp2_ref[...] = jnp.zeros_like(xp2_ref)
    xp3_ref[...] = jnp.zeros_like(xp3_ref)

    for i in range(TB):                                    # static unroll over the batch block
        # ---- conv1: one (784,9)x(9,32) MXU matmul on the pre-built im2col + bias + ReLU ----
        a1 = jnp.dot(x_ref[i], w1_ref[...], preferred_element_type=jnp.float32)
        act1_ref[...] = jnp.maximum(a1 + b1_ref[...], 0.0)

        # ---- maxpool 28x28 -> 14x14, written straight into conv2's padded VMEM input ----
        for ho in range(H2):
            r0 = (2 * ho) * W1
            p = _pool_rows(act1_ref, r0, r0 + W1, W2)                  # (14, 32) f32
            xp2_ref[pl.ds((ho + 1) * WP2 + 1, W2), :] = p

        # ---- conv2: 3x3 "same" conv as 9 shifted-window matmuls, f32 accumulation ----
        acc = None
        for kh in range(3):
            for kw in range(3):
                xs = xp2_ref[pl.ds(kh * WP2 + kw, M2), :].astype(jnp.bfloat16)   # (224, 32)
                part = jnp.dot(xs, w2_ref[kh * 3 + kw],
                               preferred_element_type=jnp.float32)               # (224, 64)
                acc = part if acc is None else acc + part
        act2_ref[...] = jnp.maximum(acc + b2_ref[...], 0.0)

        # ---- maxpool 14x14 -> 7x7 into conv3's padded VMEM input ----
        for ho in range(H3):
            r0 = (2 * ho) * WP2
            p = _pool_rows(act2_ref, r0, r0 + WP2, W3)                 # (7, 64) f32
            xp3_ref[pl.ds((ho + 1) * WP3 + 1, W3), :] = p

        # ---- conv3 ----
        acc = None
        for kh in range(3):
            for kw in range(3):
                xs = xp3_ref[pl.ds(kh * WP3 + kw, M3), :].astype(jnp.bfloat16)   # (63, 64)
                part = jnp.dot(xs, w3_ref[kh * 3 + kw],
                               preferred_element_type=jnp.float32)               # (63, 128)
                acc = part if acc is None else acc + part
        act3_ref[...] = jnp.maximum(acc + b3_ref[...], 0.0)

        # ---- maxpool 7x7 -> 3x3; scatter NHWC-flattened features into the block scratch ----
        for ho in range(HO3):
            r0 = (2 * ho) * WP3
            p = _pool_rows(act3_ref, r0, r0 + WP3, WO3)                # (3, 128) f32
            feat_ref[pl.ds(i * 9 + ho * 3, WO3), :] = p

    # ---- fc1 + ReLU + fc2, batched over the TB images (K folded over the 9 spatial taps) ----
    h = None
    for hw in range(9):
        xs = feat_ref[pl.ds(hw, TB, stride=9), :].astype(jnp.bfloat16)           # (TB, 128)
        part = jnp.dot(xs, wf1_ref[hw], preferred_element_type=jnp.float32)
        h = part if h is None else h + part
    h = jnp.maximum(h + bf1_ref[...], 0.0)                                        # f32 epilogue
    y = jnp.dot(h.astype(jnp.bfloat16), wf2_ref[...],
                preferred_element_type=jnp.float32)                               # (TB, 128)
    o_ref[0] = y + bf2_ref[...]                                                   # lane-dense store


# ------------------------------------ parameters ------------------------------------

def init_params(key):
    ks = jax.random.split(key, 10)

    def conv_w(k, outc, inc):
        s = 1.0 / jnp.sqrt(inc * 9.0)
        return jax.random.uniform(k, (outc, inc, 3, 3), jnp.float32, -s, s)

    def lin_w(k, outf, inf):
        s = 1.0 / jnp.sqrt(float(inf))
        return jax.random.uniform(k, (outf, inf), jnp.float32, -s, s)

    return {
        "w1": conv_w(ks[0], 32, 1),   "b1": jax.random.uniform(ks[1], (32,), jnp.float32, -0.1, 0.1),
        "w2": conv_w(ks[2], 64, 32),  "b2": jax.random.uniform(ks[3], (64,), jnp.float32, -0.1, 0.1),
        "w3": conv_w(ks[4], 128, 64), "b3": jax.random.uniform(ks[5], (128,), jnp.float32, -0.1, 0.1),
        "wfc1": lin_w(ks[6], 128, 128 * 3 * 3),
        "bfc1": jax.random.uniform(ks[7], (128,), jnp.float32, -0.1, 0.1),
        "wfc2": lin_w(ks[8], 10, 128),
        "bfc2": jax.random.uniform(ks[9], (10,), jnp.float32, -0.1, 0.1),
    }


def prepare_params(p):
    """One-time conversion of PyTorch-layout params to kernel-friendly layouts (bf16 MXU inputs)."""
    def conv_prep(w):
        cout, cin = w.shape[0], w.shape[1]
        return jnp.transpose(w, (2, 3, 1, 0)).reshape(9, cin, cout).astype(jnp.bfloat16)

    w1 = conv_prep(p["w1"]).reshape(9, C1)      # Cin == 1 -> (9, 32): matches the im2col'd input
    # fc1: PyTorch .view flattens (C,H,W); kernel features are (H,W)-major with C on lanes, so
    # permute fc1's input axis once -> (9 spatial taps, 128 in-channels, 128 out).
    wf1 = jnp.transpose(p["wfc1"].reshape(NFC, C3, 3, 3), (2, 3, 1, 0)).reshape(9, C3, NFC)
    # fc2: pre-transpose and zero-pad N 10 -> 128 for a full 128-lane final store.
    wf2 = jnp.zeros((NFC, NFC), jnp.float32).at[:, :10].set(p["wfc2"].T)
    bf2 = jnp.zeros((1, NFC), jnp.float32).at[:, :10].set(p["bfc2"])
    return {
        "w1": w1,                 "b1": p["b1"].reshape(1, C1).astype(jnp.float32),
        "w2": conv_prep(p["w2"]), "b2": p["b2"].reshape(1, C2).astype(jnp.float32),
        "w3": conv_prep(p["w3"]), "b3": p["b3"].reshape(1, C3).astype(jnp.float32),
        "wf1": wf1.astype(jnp.bfloat16), "bf1": p["bfc1"].reshape(1, NFC).astype(jnp.float32),
        "wf2": wf2.astype(jnp.bfloat16), "bf2": bf2,
    }


# ------------------------------------- forward --------------------------------------

def simple_cnn_forward(x_nchw, prep):
    """x_nchw: (B, 1, 28, 28) f32.  Returns (B, 10) f32 logits (Softmax is never applied in forward)."""
    B = x_nchw.shape[0]
    assert x_nchw.shape[1:] == (1, H1, W1), "SimpleCNN's fc1 fixes the input to 1x28x28"

    # Batch block: 8 images/grid step for large batches; keep >= 2 grid steps for small batches
    # so v7x's two TensorCores both get work (no effect on v5e/v6e).
    TB = 8 if B >= 16 else max(1, B // 2)
    G = -(-B // TB)
    B_pad = G * TB

    # conv1 im2col in the wrapper: Cin=1 would otherwise give 1-useful-lane in-kernel loads.
    x = x_nchw[:, 0].astype(jnp.float32)                          # (B, 28, 28)
    xp = jnp.pad(x, ((0, 0), (1, 1), (1, 1)))                     # (B, 30, 30)
    taps = [xp[:, kh:kh + H1, kw:kw + W1] for kh in range(3) for kw in range(3)]
    patches = jnp.stack(taps, axis=-1).reshape(B, M1, 9)          # (B, 784, 9), tap = kh*3+kw
    if B_pad != B:
        patches = jnp.pad(patches, ((0, B_pad - B), (0, 0), (0, 0)))
    patches = patches.astype(jnp.bfloat16)

    flops_per_img = 2 * (M1 * 9 * C1 + 9 * M2 * C1 * C2 + 9 * M3 * C2 * C3
                         + 9 * C3 * NFC + NFC * NFC)
    bytes_w = 2 * (9 * C1 + 9 * C1 * C2 + 9 * C2 * C3 + 9 * C3 * NFC + NFC * NFC) \
              + 4 * (C1 + C2 + C3 + 2 * NFC)
    cost = pl.CostEstimate(flops=flops_per_img * B_pad, transcendentals=0,
                           bytes_accessed=patches.size * 2 + bytes_w + B_pad * NFC * 4)

    kernel = functools.partial(_fused_cnn_kernel, TB=TB)
    out = pl.pallas_call(
        kernel,
        out_shape=jax.ShapeDtypeStruct((G, TB, NFC), jnp.float32),
        grid=(G,),
        in_specs=[
            pl.BlockSpec((TB, M1, 9), lambda g: (g, 0, 0)),       # im2col'd input images
            pl.BlockSpec((9, C1), lambda g: (0, 0)),              # conv1 weight  (resident)
            pl.BlockSpec((1, C1), lambda g: (0, 0)),
            pl.BlockSpec((9, C1, C2), lambda g: (0, 0, 0)),       # conv2 weight  (resident)
            pl.BlockSpec((1, C2), lambda g: (0, 0)),
            pl.BlockSpec((9, C2, C3), lambda g: (0, 0, 0)),       # conv3 weight  (resident)
            pl.BlockSpec((1, C3), lambda g: (0, 0)),
            pl.BlockSpec((9, C3, NFC), lambda g: (0, 0, 0)),      # fc1 weight per spatial tap
            pl.BlockSpec((1, NFC), lambda g: (0, 0)),
            pl.BlockSpec((NFC, NFC), lambda g: (0, 0)),           # fc2 weight (N padded 10->128)
            pl.BlockSpec((1, NFC), lambda g: (0, 0)),
        ],
        out_specs=pl.BlockSpec((1, TB, NFC), lambda g: (g, 0, 0)),
        scratch_shapes=[
            pltpu.VMEM((M1, C1), jnp.float32),       # conv1 pre-pool activation
            pltpu.VMEM((L2, C1), jnp.float32),       # conv2 padded input (zero halo)
            pltpu.VMEM((M2, C2), jnp.float32),       # conv2 pre-pool activation
            pltpu.VMEM((L3, C2), jnp.float32),       # conv3 padded input (zero halo)
            pltpu.VMEM((M3, C3), jnp.float32),       # conv3 pre-pool activation
            pltpu.VMEM((TB * 9, C3), jnp.float32),   # pooled NHWC features of the whole block
        ],
        compiler_params=pltpu.CompilerParams(dimension_semantics=("parallel",)),
        cost_estimate=cost,
    )(patches, prep["w1"], prep["b1"], prep["w2"], prep["b2"], prep["w3"], prep["b3"],
      prep["wf1"], prep["bf1"], prep["wf2"], prep["bf2"])

    return out.reshape(B_pad, NFC)[:B, :10]


if __name__ == "__main__":
    key = jax.random.PRNGKey(0)
    k_x, k_p = jax.random.split(key)
    # Forward math fixes spatial=28x28, in_channels=1 (MNIST); use small batch=2.
    x = jax.random.normal(k_x, (2, 1, 28, 28), dtype=jnp.float32)
    params = init_params(k_p)
    prep = prepare_params(params)

    fwd = jax.jit(simple_cnn_forward)
    out = jax.block_until_ready(fwd(x, prep))
    assert out.shape == (2, 10) and out.dtype == jnp.float32
    assert bool(jnp.all(jnp.isfinite(out)))
    print("KERNEL_OK")
</pallas_src>

<mosaic_0001>
module attributes {stable_mosaic.version = 11 : i64} {
  func.func @_fused_cnn_kernel(%arg0: i32, %arg1: memref<1x784x9xbf16, #tpu.memory_space<vmem>>, %arg2: memref<9x32xbf16, #tpu.memory_space<vmem>>, %arg3: memref<1x32xf32, #tpu.memory_space<vmem>>, %arg4: memref<9x32x64xbf16, #tpu.memory_space<vmem>>, %arg5: memref<1x64xf32, #tpu.memory_space<vmem>>, %arg6: memref<9x64x128xbf16, #tpu.memory_space<vmem>>, %arg7: memref<1x128xf32, #tpu.memory_space<vmem>>, %arg8: memref<9x128x128xbf16, #tpu.memory_space<vmem>>, %arg9: memref<1x128xf32, #tpu.memory_space<vmem>>, %arg10: memref<128x128xbf16, #tpu.memory_space<vmem>>, %arg11: memref<1x128xf32, #tpu.memory_space<vmem>>, %arg12: memref<1x1x128xf32, #tpu.memory_space<vmem>>, %arg13: memref<784x32xf32, #tpu.memory_space<vmem>>, %arg14: memref<272x32xf32, #tpu.memory_space<vmem>>, %arg15: memref<224x64xf32, #tpu.memory_space<vmem>>, %arg16: memref<90x64xf32, #tpu.memory_space<vmem>>, %arg17: memref<63x128xf32, #tpu.memory_space<vmem>>, %arg18: memref<9x128xf32, #tpu.memory_space<vmem>>) attributes {dimension_semantics = [#tpu.dimension_semantics<parallel>], iteration_bounds = array<i64: 2>, scalar_prefetch = 0 : i64, scratch_operands = 6 : i64, tpu.core_type = #tpu.core_type<tc>, window_params = [{transform_indices = @transform_0, window_bounds = array<i64: 1, 784, 9>}, {pipeline_mode = #tpu.pipeline_mode<synchronous>, transform_indices = @transform_1, window_bounds = array<i64: 9, 32>}, {pipeline_mode = #tpu.pipeline_mode<synchronous>, transform_indices = @transform_2, window_bounds = array<i64: 1, 32>}, {pipeline_mode = #tpu.pipeline_mode<synchronous>, transform_indices = @transform_3, window_bounds = array<i64: 9, 32, 64>}, {pipeline_mode = #tpu.pipeline_mode<synchronous>, transform_indices = @transform_4, window_bounds = array<i64: 1, 64>}, {pipeline_mode = #tpu.pipeline_mode<synchronous>, transform_indices = @transform_5, window_bounds = array<i64: 9, 64, 128>}, {pipeline_mode = #tpu.pipeline_mode<synchronous>, transform_indices = @transform_6, window_bounds = array<i64: 1, 128>}, {pipeline_mode = #tpu.pipeline_mode<synchronous>, transform_indices = @transform_7, window_bounds = array<i64: 9, 128, 128>}, {pipeline_mode = #tpu.pipeline_mode<synchronous>, transform_indices = @transform_8, window_bounds = array<i64: 1, 128>}, {pipeline_mode = #tpu.pipeline_mode<synchronous>, transform_indices = @transform_9, window_bounds = array<i64: 128, 128>}, {pipeline_mode = #tpu.pipeline_mode<synchronous>, transform_indices = @transform_10, window_bounds = array<i64: 1, 128>}, {transform_indices = @transform_11, window_bounds = array<i64: 1, 1, 128>}]} {
    %cst = arith.constant 0.000000e+00 : f32
    %0 = vector.broadcast %cst : f32 to vector<272x32xf32>
    %c0 = arith.constant 0 : index
    %c0_0 = arith.constant 0 : index
    %1 = vector.load %arg14[%c0, %c0_0] : memref<272x32xf32, #tpu.memory_space<vmem>>, vector<272x32xf32>
    tpu.vector_store %arg14[%c0, %c0_0], %0 {strides = array<i32>} : memref<272x32xf32, #tpu.memory_space<vmem>>, vector<272x32xf32>,
    %cst_1 = arith.constant 0.000000e+00 : f32
    %2 = vector.broadcast %cst_1 : f32 to vector<90x64xf32>
    %c0_2 = arith.constant 0 : index
    %c0_3 = arith.constant 0 : index
    %3 = vector.load %arg16[%c0_2, %c0_3] : memref<90x64xf32, #tpu.memory_space<vmem>>, vector<90x64xf32>
    tpu.vector_store %arg16[%c0_2, %c0_3], %2 {strides = array<i32>} : memref<90x64xf32, #tpu.memory_space<vmem>>, vector<90x64xf32>,
    %c0_4 = arith.constant 0 : index
    %c0_5 = arith.constant 0 : index
    %c0_6 = arith.constant 0 : index
    %4 = vector.load %arg1[%c0_4, %c0_5, %c0_6] : memref<1x784x9xbf16, #tpu.memory_space<vmem>>, vector<1x784x9xbf16>
    %5 = vector.shape_cast %4 : vector<1x784x9xbf16> to vector<784x9xbf16>
    %c0_7 = arith.constant 0 : index
    %c0_8 = arith.constant 0 : index
    %6 = vector.load %arg2[%c0_7, %c0_8] : memref<9x32xbf16, #tpu.memory_space<vmem>>, vector<9x32xbf16>
    %cst_9 = arith.constant dense<0.000000e+00> : vector<784x32xf32>
    %7 = tpu.matmul %5, %6, %cst_9 {dimension_numbers = #tpu.dot_dimension_numbers<[1], [0], [0], [1], [0, 0, 1, 1], [], []>} : vector<784x9xbf16>, vector<9x32xbf16>, vector<784x32xf32> -> vector<784x32xf32>
    %c0_10 = arith.constant 0 : index
    %c0_11 = arith.constant 0 : index
    %8 = vector.load %arg3[%c0_10, %c0_11] : memref<1x32xf32, #tpu.memory_space<vmem>>, vector<1x32xf32>
    %9 = vector.broadcast %8 : vector<1x32xf32> to vector<784x32xf32>
    %10 = arith.addf %7, %9 : vector<784x32xf32>
    %cst_12 = arith.constant 0.000000e+00 : f32
    %11 = vector.broadcast %cst_12 : f32 to vector<784x32xf32>
    %12 = arith.maximumf %10, %11 : vector<784x32xf32>
    %c0_13 = arith.constant 0 : index
    %c0_14 = arith.constant 0 : index
    %13 = vector.load %arg13[%c0_13, %c0_14] : memref<784x32xf32, #tpu.memory_space<vmem>>, vector<784x32xf32>
    tpu.vector_store %arg13[%c0_13, %c0_14], %12 {strides = array<i32>} : memref<784x32xf32, #tpu.memory_space<vmem>>, vector<784x32xf32>,
    %c0_15 = arith.constant 0 : index
    %c0_16 = arith.constant 0 : index
    %14 = tpu.strided_load %arg13[%c0_15, %c0_16] {strides = array<i32: 2, 1>} : memref<784x32xf32, #tpu.memory_space<vmem>>, vector<14x32xf32>
    %c1 = arith.constant 1 : index
    %c0_17 = arith.constant 0 : index
    %15 = tpu.strided_load %arg13[%c1, %c0_17] {strides = array<i32: 2, 1>} : memref<784x32xf32, #tpu.memory_space<vmem>>, vector<14x32xf32>
    %16 = arith.maximumf %14, %15 : vector<14x32xf32>
    %c28 = arith.constant 28 : index
    %c0_18 = arith.constant 0 : index
    %17 = tpu.strided_load %arg13[%c28, %c0_18] {strides = array<i32: 2, 1>} : memref<784x32xf32, #tpu.memory_space<vmem>>, vector<14x32xf32>
    %c29 = arith.constant 29 : index
    %c0_19 = arith.constant 0 : index
    %18 = tpu.strided_load %arg13[%c29, %c0_19] {strides = array<i32: 2, 1>} : memref<784x32xf32, #tpu.memory_space<vmem>>, vector<14x32xf32>
    %19 = arith.maximumf %17, %18 : vector<14x32xf32>
    %20 = arith.maximumf %16, %19 : vector<14x32xf32>
    %c17 = arith.constant 17 : index
    %c0_20 = arith.constant 0 : index
    %21 = vector.load %arg14[%c17, %c0_20] : memref<272x32xf32, #tpu.memory_space<vmem>>, vector<14x32xf32>
    tpu.vector_store %arg14[%c17, %c0_20], %20 {strides = array<i32>} : memref<272x32xf32, #tpu.memory_space<vmem>>, vector<14x32xf32>,
    %c56 = arith.constant 56 : index
    %c0_21 = arith.constant 0 : index
    %22 = tpu.strided_load %arg13[%c56, %c0_21] {strides = array<i32: 2, 1>} : memref<784x32xf32, #tpu.memory_space<vmem>>, vector<14x32xf32>
    %c57 = arith.constant 57 : index
    %c0_22 = arith.constant 0 : index
    %23 = tpu.strided_load %arg13[%c57, %c0_22] {strides = array<i32: 2, 1>} : memref<784x32xf32, #tpu.memory_space<vmem>>, vector<14x32xf32>
    %24 = arith.maximumf %22, %23 : vector<14x32xf32>
    %c84 = arith.constant 84 : index
    %c0_23 = arith.constant 0 : index
    %25 = tpu.strided_load %arg13[%c84, %c0_23] {strides = array<i32: 2, 1>} : memref<784x32xf32, #tpu.memory_space<vmem>>, vector<14x32xf32>
    %c85 = arith.constant 85 : index
    %c0_24 = arith.constant 0 : index
    %26 = tpu.strided_load %arg13[%c85, %c0_24] {strides = array<i32: 2, 1>} : memref<784x32xf32, #tpu.memory_space<vmem>>, vector<14x32xf32>
    %27 = arith.maximumf %25, %26 : vector<14x32xf32>
    %28 = arith.maximumf %24, %27 : vector<14x32xf32>
    %c33 = arith.constant 33 : index
    %c0_25 = arith.constant 0 : index
    %29 = vector.load %arg14[%c33, %c0_25] : memref<272x32xf32, #tpu.memory_space<vmem>>, vector<14x32xf32>
    tpu.vector_store %arg14[%c33, %c0_25], %28 {strides = array<i32>} : memref<272x32xf32, #tpu.memory_space<vmem>>, vector<14x32xf32>,
    %c112 = arith.constant 112 : index
    %c0_26 = arith.constant 0 : index
    %30 = tpu.strided_load %arg13[%c112, %c0_26] {strides = array<i32: 2, 1>} : memref<784x32xf32, #tpu.memory_space<vmem>>, vector<14x32xf32>
    %c113 = arith.constant 113 : index
    %c0_27 = arith.constant 0 : index
    %31 = tpu.strided_load %arg13[%c113, %c0_27] {strides = array<i32: 2, 1>} : memref<784x32xf32, #tpu.memory_space<vmem>>, vector<14x32xf32>
    %32 = arith.maximumf %30, %31 : vector<14x32xf32>
    %c140 = arith.constant 140 : index
    %c0_28 = arith.constant 0 : index
    %33 = tpu.strided_load %arg13[%c140, %c0_28] {strides = array<i32: 2, 1>} : memref<784x32xf32, #tpu.memory_space<vmem>>, vector<14x32xf32>
    %c141 = arith.constant 141 : index
    %c0_29 = arith.constant 0 : index
    %34 = tpu.strided_load %arg13[%c141, %c0_29] {strides = array<i32: 2, 1>} : memref<784x32xf32, #tpu.memory_space<vmem>>, vector<14x32xf32>
    %35 = arith.maximumf %33, %34 : vector<14x32xf32>
    %36 = arith.maximumf %32, %35 : vector<14x32xf32>
    %c49 = arith.constant 49 : index
    %c0_30 = arith.constant 0 : index
    %37 = vector.load %arg14[%c49, %c0_30] : memref<272x32xf32, #tpu.memory_space<vmem>>, vector<14x32xf32>
    tpu.vector_store %arg14[%c49, %c0_30], %36 {strides = array<i32>} : memref<272x32xf32, #tpu.memory_space<vmem>>, vector<14x32xf32>,
    %c168 = arith.constant 168 : index
    %c0_31 = arith.constant 0 : index
    %38 = tpu.strided_load %arg13[%c168, %c0_31] {strides = array<i32: 2, 1>} : memref<784x32xf32, #tpu.memory_space<vmem>>, vector<14x32xf32>
    %c169 = arith.constant 169 : index
    %c0_32 = arith.constant 0 : index
    %39 = tpu.strided_load %arg13[%c169, %c0_32] {strides = array<i32: 2, 1>} : memref<784x32xf32, #tpu.memory_space<vmem>>, vector<14x32xf32>
    %40 = arith.maximumf %38, %39 : vector<14x32xf32>
    %c196 = arith.constant 196 : index
    %c0_33 = arith.constant 0 : index
    %41 = tpu.strided_load %arg13[%c196, %c0_33] {strides = array<i32: 2, 1>} : memref<784x32xf32, #tpu.memory_space<vmem>>, vector<14x32xf32>
    %c197 = arith.constant 197 : index
    %c0_34 = arith.constant 0 : index
    %42 = tpu.strided_load %arg13[%c197, %c0_34] {strides = array<i32: 2, 1>} : memref<784x32xf32, #tpu.memory_space<vmem>>, vector<14x32xf32>
    %43 = arith.maximumf %41, %42 : vector<14x32xf32>
    %44 = arith.maximumf %40, %43 : vector<14x32xf32>
    %c65 = arith.constant 65 : index
    %c0_35 = arith.constant 0 : index
    %45 = vector.load %arg14[%c65, %c0_35] : memref<272x32xf32, #tpu.memory_space<vmem>>, vector<14x32xf32>
    tpu.vector_store %arg14[%c65, %c0_35], %44 {strides = array<i32>} : memref<272x32xf32, #tpu.memory_space<vmem>>, vector<14x32xf32>,
    %c224 = arith.constant 224 : index
    %c0_36 = arith.constant 0 : index
    %46 = tpu.strided_load %arg13[%c224, %c0_36] {strides = array<i32: 2, 1>} : memref<784x32xf32, #tpu.memory_space<vmem>>, vector<14x32xf32>
    %c225 = arith.constant 225 : index
    %c0_37 = arith.constant 0 : index
    %47 = tpu.strided_load %arg13[%c225, %c0_37] {strides = array<i32: 2, 1>} : memref<784x32xf32, #tpu.memory_space<vmem>>, vector<14x32xf32>
    %48 = arith.maximumf %46, %47 : vector<14x32xf32>
    %c252 = arith.constant 252 : index
    %c0_38 = arith.constant 0 : index
    %49 = tpu.strided_load %arg13[%c252, %c0_38] {strides = array<i32: 2, 1>} : memref<784x32xf32, #tpu.memory_space<vmem>>, vector<14x32xf32>
    %c253 = arith.constant 253 : index
    %c0_39 = arith.constant 0 : index
    %50 = tpu.strided_load %arg13[%c253, %c0_39] {strides = array<i32: 2, 1>} : memref<784x32xf32, #tpu.memory_space<vmem>>, vector<14x32xf32>
    %51 = arith.maximumf %49, %50 : vector<14x32xf32>
    %52 = arith.maximumf %48, %51 : vector<14x32xf32>
    %c81 = arith.constant 81 : index
    %c0_40 = arith.constant 0 : index
    %53 = vector.load %arg14[%c81, %c0_40] : memref<272x32xf32, #tpu.memory_space<vmem>>, vector<14x32xf32>
    tpu.vector_store %arg14[%c81, %c0_40], %52 {strides = array<i32>} : memref<272x32xf32, #tpu.memory_space<vmem>>, vector<14x32xf32>,
    %c280 = arith.constant 280 : index
    %c0_41 = arith.constant 0 : index
    %54 = tpu.strided_load %arg13[%c280, %c0_41] {strides = array<i32: 2, 1>} : memref<784x32xf32, #tpu.memory_space<vmem>>, vector<14x32xf32>
    %c281 = arith.constant 281 : index
    %c0_42 = arith.constant 0 : index
    %55 = tpu.strided_load %arg13[%c281, %c0_42] {strides = array<i32: 2, 1>} : memref<784x32xf32, #tpu.memory_space<vmem>>, vector<14x32xf32>
    %56 = arith.maximumf %54, %55 : vector<14x32xf32>
    %c308 = arith.constant 308 : index
    %c0_43 = arith.constant 0 : index
    %57 = tpu.strided_load %arg13[%c308, %c0_43] {strides = array<i32: 2, 1>} : memref<784x32xf32, #tpu.memory_space<vmem>>, vector<14x32xf32>
    %c309 = arith.constant 309 : index
    %c0_44 = arith.constant 0 : index
    %58 = tpu.strided_load %arg13[%c309, %c0_44] {strides = array<i32: 2, 1>} : memref<784x32xf32, #tpu.memory_space<vmem>>, vector<14x32xf32>
    %59 = arith.maximumf %57, %58 : vector<14x32xf32>
    %60 = arith.maximumf %56, %59 : vector<14x32xf32>
    %c97 = arith.constant 97 : index
    %c0_45 = arith.constant 0 : index
    %61 = vector.load %arg14[%c97, %c0_45] : memref<272x32xf32, #tpu.memory_space<vmem>>, vector<14x32xf32>
    tpu.vector_store %arg14[%c97, %c0_45], %60 {strides = array<i32>} : memref<272x32xf32, #tpu.memory_space<vmem>>, vector<14x32xf32>,
    %c336 = arith.constant 336 : index
    %c0_46 = arith.constant 0 : index
    %62 = tpu.strided_load %arg13[%c336, %c0_46] {strides = array<i32: 2, 1>} : memref<784x32xf32, #tpu.memory_space<vmem>>, vector<14x32xf32>
    %c337 = arith.constant 337 : index
    %c0_47 = arith.constant 0 : index
    %63 = tpu.strided_load %arg13[%c337, %c0_47] {strides = array<i32: 2, 1>} : memref<784x32xf32, #tpu.memory_space<vmem>>, vector<14x32xf32>
    %64 = arith.maximumf %62, %63 : vector<14x32xf32>
    %c364 = arith.constant 364 : index
    %c0_48 = arith.constant 0 : index
    %65 = tpu.strided_load %arg13[%c364, %c0_48] {strides = array<i32: 2, 1>} : memref<784x32xf32, #tpu.memory_space<vmem>>, vector<14x32xf32>
    %c365 = arith.constant 365 : index
    %c0_49 = arith.constant 0 : index
    %66 = tpu.strided_load %arg13[%c365, %c0_49] {strides = array<i32: 2, 1>} : memref<784x32xf32, #tpu.memory_space<vmem>>, vector<14x32xf32>
    %67 = arith.maximumf %65, %66 : vector<14x32xf32>
    %68 = arith.maximumf %64, %67 : vector<14x32xf32>
    %c113_50 = arith.constant 113 : index
    %c0_51 = arith.constant 0 : index
    %69 = vector.load %arg14[%c113_50, %c0_51] : memref<272x32xf32, #tpu.memory_space<vmem>>, vector<14x32xf32>
    tpu.vector_store %arg14[%c113_50, %c0_51], %68 {strides = array<i32>} : memref<272x32xf32, #tpu.memory_space<vmem>>, vector<14x32xf32>,
    %c392 = arith.constant 392 : index
    %c0_52 = arith.constant 0 : index
    %70 = tpu.strided_load %arg13[%c392, %c0_52] {strides = array<i32: 2, 1>} : memref<784x32xf32, #tpu.memory_space<vmem>>, vector<14x32xf32>
    %c393 = arith.constant 393 : index
    %c0_53 = arith.constant 0 : index
    %71 = tpu.strided_load %arg13[%c393, %c0_53] {strides = array<i32: 2, 1>} : memref<784x32xf32, #tpu.memory_space<vmem>>, vector<14x32xf32>
    %72 = arith.maximumf %70, %71 : vector<14x32xf32>
    %c420 = arith.constant 420 : index
    %c0_54 = arith.constant 0 : index
    %73 = tpu.strided_load %arg13[%c420, %c0_54] {strides = array<i32: 2, 1>} : memref<784x32xf32, #tpu.memory_space<vmem>>, vector<14x32xf32>
    %c421 = arith.constant 421 : index
    %c0_55 = arith.constant 0 : index
    %74 = tpu.strided_load %arg13[%c421, %c0_55] {strides = array<i32: 2, 1>} : memref<784x32xf32, #tpu.memory_space<vmem>>, vector<14x32xf32>
    %75 = arith.maximumf %73, %74 : vector<14x32xf32>
    %76 = arith.maximumf %72, %75 : vector<14x32xf32>
    %c129 = arith.constant 129 : index
    %c0_56 = arith.constant 0 : index
    %77 = vector.load %arg14[%c129, %c0_56] : memref<272x32xf32, #tpu.memory_space<vmem>>, vector<14x32xf32>
    tpu.vector_store %arg14[%c129, %c0_56], %76 {strides = array<i32>} : memref<272x32xf32, #tpu.memory_space<vmem>>, vector<14x32xf32>,
    %c448 = arith.constant 448 : index
    %c0_57 = arith.constant 0 : index
    %78 = tpu.strided_load %arg13[%c448, %c0_57] {strides = array<i32: 2, 1>} : memref<784x32xf32, #tpu.memory_space<vmem>>, vector<14x32xf32>
    %c449 = arith.constant 449 : index
    %c0_58 = arith.constant 0 : index
    %79 = tpu.strided_load %arg13[%c449, %c0_58] {strides = array<i32: 2, 1>} : memref<784x32xf32, #tpu.memory_space<vmem>>, vector<14x32xf32>
    %80 = arith.maximumf %78, %79 : vector<14x32xf32>
    %c476 = arith.constant 476 : index
    %c0_59 = arith.constant 0 : index
    %81 = tpu.strided_load %arg13[%c476, %c0_59] {strides = array<i32: 2, 1>} : memref<784x32xf32, #tpu.memory_space<vmem>>, vector<14x32xf32>
    %c477 = arith.constant 477 : index
    %c0_60 = arith.constant 0 : index
    %82 = tpu.strided_load %arg13[%c477, %c0_60] {strides = array<i32: 2, 1>} : memref<784x32xf32, #tpu.memory_space<vmem>>, vector<14x32xf32>
    %83 = arith.maximumf %81, %82 : vector<14x32xf32>
    %84 = arith.maximumf %80, %83 : vector<14x32xf32>
    %c145 = arith.constant 145 : index
    %c0_61 = arith.constant 0 : index
    %85 = vector.load %arg14[%c145, %c0_61] : memref<272x32xf32, #tpu.memory_space<vmem>>, vector<14x32xf32>
    tpu.vector_store %arg14[%c145, %c0_61], %84 {strides = array<i32>} : memref<272x32xf32, #tpu.memory_space<vmem>>, vector<14x32xf32>,
    %c504 = arith.constant 504 : index
    %c0_62 = arith.constant 0 : index
    %86 = tpu.strided_load %arg13[%c504, %c0_62] {strides = array<i32: 2, 1>} : memref<784x32xf32, #tpu.memory_space<vmem>>, vector<14x32xf32>
    %c505 = arith.constant 505 : index
    %c0_63 = arith.constant 0 : index
    %87 = tpu.strided_load %arg13[%c505, %c0_63] {strides = array<i32: 2, 1>} : memref<784x32xf32, #tpu.memory_space<vmem>>, vector<14x32xf32>
    %88 = arith.maximumf %86, %87 : vector<14x32xf32>
    %c532 = arith.constant 532 : index
    %c0_64 = arith.constant 0 : index
    %89 = tpu.strided_load %arg13[%c532, %c0_64] {strides = array<i32: 2, 1>} : memref<784x32xf32, #tpu.memory_space<vmem>>, vector<14x32xf32>
    %c533 = arith.constant 533 : index
    %c0_65 = arith.constant 0 : index
    %90 = tpu.strided_load %arg13[%c533, %c0_65] {strides = array<i32: 2, 1>} : memref<784x32xf32, #tpu.memory_space<vmem>>, vector<14x32xf32>
    %91 = arith.maximumf %89, %90 : vector<14x32xf32>
    %92 = arith.maximumf %88, %91 : vector<14x32xf32>
    %c161 = arith.constant 161 : index
    %c0_66 = arith.constant 0 : index
    %93 = vector.load %arg14[%c161, %c0_66] : memref<272x32xf32, #tpu.memory_space<vmem>>, vector<14x32xf32>
    tpu.vector_store %arg14[%c161, %c0_66], %92 {strides = array<i32>} : memref<272x32xf32, #tpu.memory_space<vmem>>, vector<14x32xf32>,
    %c560 = arith.constant 560 : index
    %c0_67 = arith.constant 0 : index
    %94 = tpu.strided_load %arg13[%c560, %c0_67] {strides = array<i32: 2, 1>} : memref<784x32xf32, #tpu.memory_space<vmem>>, vector<14x32xf32>
    %c561 = arith.constant 561 : index
    %c0_68 = arith.constant 0 : index
    %95 = tpu.strided_load %arg13[%c561, %c0_68] {strides = array<i32: 2, 1>} : memref<784x32xf32, #tpu.memory_space<vmem>>, vector<14x32xf32>
    %96 = arith.maximumf %94, %95 : vector<14x32xf32>
    %c588 = arith.constant 588 : index
    %c0_69 = arith.constant 0 : index
    %97 = tpu.strided_load %arg13[%c588, %c0_69] {strides = array<i32: 2, 1>} : memref<784x32xf32, #tpu.memory_space<vmem>>, vector<14x32xf32>
    %c589 = arith.constant 589 : index
    %c0_70 = arith.constant 0 : index
    %98 = tpu.strided_load %arg13[%c589, %c0_70] {strides = array<i32: 2, 1>} : memref<784x32xf32, #tpu.memory_space<vmem>>, vector<14x32xf32>
    %99 = arith.maximumf %97, %98 : vector<14x32xf32>
    %100 = arith.maximumf %96, %99 : vector<14x32xf32>
    %c177 = arith.constant 177 : index
    %c0_71 = arith.constant 0 : index
    %101 = vector.load %arg14[%c177, %c0_71] : memref<272x32xf32, #tpu.memory_space<vmem>>, vector<14x32xf32>
    tpu.vector_store %arg14[%c177, %c0_71], %100 {strides = array<i32>} : memref<272x32xf32, #tpu.memory_space<vmem>>, vector<14x32xf32>,
    %c616 = arith.constant 616 : index
    %c0_72 = arith.constant 0 : index
    %102 = tpu.strided_load %arg13[%c616, %c0_72] {strides = array<i32: 2, 1>} : memref<784x32xf32, #tpu.memory_space<vmem>>, vector<14x32xf32>
    %c617 = arith.constant 617 : index
    %c0_73 = arith.constant 0 : index
    %103 = tpu.strided_load %arg13[%c617, %c0_73] {strides = array<i32: 2, 1>} : memref<784x32xf32, #tpu.memory_space<vmem>>, vector<14x32xf32>
    %104 = arith.maximumf %102, %103 : vector<14x32xf32>
    %c644 = arith.constant 644 : index
    %c0_74 = arith.constant 0 : index
    %105 = tpu.strided_load %arg13[%c644, %c0_74] {strides = array<i32: 2, 1>} : memref<784x32xf32, #tpu.memory_space<vmem>>, vector<14x32xf32>
    %c645 = arith.constant 645 : index
    %c0_75 = arith.constant 0 : index
    %106 = tpu.strided_load %arg13[%c645, %c0_75] {strides = array<i32: 2, 1>} : memref<784x32xf32, #tpu.memory_space<vmem>>, vector<14x32xf32>
    %107 = arith.maximumf %105, %106 : vector<14x32xf32>
    %108 = arith.maximumf %104, %107 : vector<14x32xf32>
    %c193 = arith.constant 193 : index
    %c0_76 = arith.constant 0 : index
    %109 = vector.load %arg14[%c193, %c0_76] : memref<272x32xf32, #tpu.memory_space<vmem>>, vector<14x32xf32>
    tpu.vector_store %arg14[%c193, %c0_76], %108 {strides = array<i32>} : memref<272x32xf32, #tpu.memory_space<vmem>>, vector<14x32xf32>,
    %c672 = arith.constant 672 : index
    %c0_77 = arith.constant 0 : index
    %110 = tpu.strided_load %arg13[%c672, %c0_77] {strides = array<i32: 2, 1>} : memref<784x32xf32, #tpu.memory_space<vmem>>, vector<14x32xf32>
    %c673 = arith.constant 673 : index
    %c0_78 = arith.constant 0 : index
    %111 = tpu.strided_load %arg13[%c673, %c0_78] {strides = array<i32: 2, 1>} : memref<784x32xf32, #tpu.memory_space<vmem>>, vector<14x32xf32>
    %112 = arith.maximumf %110, %111 : vector<14x32xf32>
    %c700 = arith.constant 700 : index
    %c0_79 = arith.constant 0 : index
    %113 = tpu.strided_load %arg13[%c700, %c0_79] {strides = array<i32: 2, 1>} : memref<784x32xf32, #tpu.memory_space<vmem>>, vector<14x32xf32>
    %c701 = arith.constant 701 : index
    %c0_80 = arith.constant 0 : index
    %114 = tpu.strided_load %arg13[%c701, %c0_80] {strides = array<i32: 2, 1>} : memref<784x32xf32, #tpu.memory_space<vmem>>, vector<14x32xf32>
    %115 = arith.maximumf %113, %114 : vector<14x32xf32>
    %116 = arith.maximumf %112, %115 : vector<14x32xf32>
    %c209 = arith.constant 209 : index
    %c0_81 = arith.constant 0 : index
    %117 = vector.load %arg14[%c209, %c0_81] : memref<272x32xf32, #tpu.memory_space<vmem>>, vector<14x32xf32>
    tpu.vector_store %arg14[%c209, %c0_81], %116 {strides = array<i32>} : memref<272x32xf32, #tpu.memory_space<vmem>>, vector<14x32xf32>,
    %c728 = arith.constant 728 : index
    %c0_82 = arith.constant 0 : index
    %118 = tpu.strided_load %arg13[%c728, %c0_82] {strides = array<i32: 2, 1>} : memref<784x32xf32, #tpu.memory_space<vmem>>, vector<14x32xf32>
    %c729 = arith.constant 729 : index
    %c0_83 = arith.constant 0 : index
    %119 = tpu.strided_load %arg13[%c729, %c0_83] {strides = array<i32: 2, 1>} : memref<784x32xf32, #tpu.memory_space<vmem>>, vector<14x32xf32>
    %120 = arith.maximumf %118, %119 : vector<14x32xf32>
    %c756 = arith.constant 756 : index
    %c0_84 = arith.constant 0 : index
    %121 = tpu.strided_load %arg13[%c756, %c0_84] {strides = array<i32: 2, 1>} : memref<784x32xf32, #tpu.memory_space<vmem>>, vector<14x32xf32>
    %c757 = arith.constant 757 : index
    %c0_85 = arith.constant 0 : index
    %122 = tpu.strided_load %arg13[%c757, %c0_85] {strides = array<i32: 2, 1>} : memref<784x32xf32, #tpu.memory_space<vmem>>, vector<14x32xf32>
    %123 = arith.maximumf %121, %122 : vector<14x32xf32>
    %124 = arith.maximumf %120, %123 : vector<14x32xf32>
    %c225_86 = arith.constant 225 : index
    %c0_87 = arith.constant 0 : index
    %125 = vector.load %arg14[%c225_86, %c0_87] : memref<272x32xf32, #tpu.memory_space<vmem>>, vector<14x32xf32>
    tpu.vector_store %arg14[%c225_86, %c0_87], %124 {strides = array<i32>} : memref<272x32xf32, #tpu.memory_space<vmem>>, vector<14x32xf32>,
    %c0_88 = arith.constant 0 : index
    %c0_89 = arith.constant 0 : index
    %126 = vector.load %arg14[%c0_88, %c0_89] : memref<272x32xf32, #tpu.memory_space<vmem>>, vector<224x32xf32>
    %127 = arith.truncf %126 : vector<224x32xf32> to vector<224x32xbf16>
    %c0_90 = arith.constant 0 : index
    %c0_91 = arith.constant 0 : index
    %c0_92 = arith.constant 0 : index
    %128 = vector.load %arg4[%c0_90, %c0_91, %c0_92] : memref<9x32x64xbf16, #tpu.memory_space<vmem>>, vector<1x32x64xbf16>
    %129 = vector.shape_cast %128 : vector<1x32x64xbf16> to vector<32x64xbf16>
    %cst_93 = arith.constant dense<0.000000e+00> : vector<224x64xf32>
    %130 = tpu.matmul %127, %129, %cst_93 {dimension_numbers = #tpu.dot_dimension_numbers<[1], [0], [0], [1], [0, 0, 1, 1], [], []>} : vector<224x32xbf16>, vector<32x64xbf16>, vector<224x64xf32> -> vector<224x64xf32>
    %c1_94 = arith.constant 1 : index
    %c0_95 = arith.constant 0 : index
    %131 = vector.load %arg14[%c1_94, %c0_95] : memref<272x32xf32, #tpu.memory_space<vmem>>, vector<224x32xf32>
    %132 = arith.truncf %131 : vector<224x32xf32> to vector<224x32xbf16>
    %c1_96 = arith.constant 1 : index
    %c0_97 = arith.constant 0 : index
    %c0_98 = arith.constant 0 : index
    %133 = vector.load %arg4[%c1_96, %c0_97, %c0_98] : memref<9x32x64xbf16, #tpu.memory_space<vmem>>, vector<1x32x64xbf16>
    %134 = vector.shape_cast %133 : vector<1x32x64xbf16> to vector<32x64xbf16>
    %cst_99 = arith.constant dense<0.000000e+00> : vector<224x64xf32>
    %135 = tpu.matmul %132, %134, %cst_99 {dimension_numbers = #tpu.dot_dimension_numbers<[1], [0], [0], [1], [0, 0, 1, 1], [], []>} : vector<224x32xbf16>, vector<32x64xbf16>, vector<224x64xf32> -> vector<224x64xf32>
    %136 = arith.addf %130, %135 : vector<224x64xf32>
    %c2 = arith.constant 2 : index
    %c0_100 = arith.constant 0 : index
    %137 = vector.load %arg14[%c2, %c0_100] : memref<272x32xf32, #tpu.memory_space<vmem>>, vector<224x32xf32>
    %138 = arith.truncf %137 : vector<224x32xf32> to vector<224x32xbf16>
    %c2_101 = arith.constant 2 : index
    %c0_102 = arith.constant 0 : index
    %c0_103 = arith.constant 0 : index
    %139 = vector.load %arg4[%c2_101, %c0_102, %c0_103] : memref<9x32x64xbf16, #tpu.memory_space<vmem>>, vector<1x32x64xbf16>
    %140 = vector.shape_cast %139 : vector<1x32x64xbf16> to vector<32x64xbf16>
    %cst_104 = arith.constant dense<0.000000e+00> : vector<224x64xf32>
    %141 = tpu.matmul %138, %140, %cst_104 {dimension_numbers = #tpu.dot_dimension_numbers<[1], [0], [0], [1], [0, 0, 1, 1], [], []>} : vector<224x32xbf16>, vector<32x64xbf16>, vector<224x64xf32> -> vector<224x64xf32>
    %142 = arith.addf %136, %141 : vector<224x64xf32>
    %c16 = arith.constant 16 : index
    %c0_105 = arith.constant 0 : index
    %143 = vector.load %arg14[%c16, %c0_105] : memref<272x32xf32, #tpu.memory_space<vmem>>, vector<224x32xf32>
    %144 = arith.truncf %143 : vector<224x32xf32> to vector<224x32xbf16>
    %c3 = arith.constant 3 : index
    %c0_106 = arith.constant 0 : index
    %c0_107 = arith.constant 0 : index
    %145 = vector.load %arg4[%c3, %c0_106, %c0_107] : memref<9x32x64xbf16, #tpu.memory_space<vmem>>, vector<1x32x64xbf16>
    %146 = vector.shape_cast %145 : vector<1x32x64xbf16> to vector<32x64xbf16>
    %cst_108 = arith.constant dense<0.000000e+00> : vector<224x64xf32>
    %147 = tpu.matmul %144, %146, %cst_108 {dimension_numbers = #tpu.dot_dimension_numbers<[1], [0], [0], [1], [0, 0, 1, 1], [], []>} : vector<224x32xbf16>, vector<32x64xbf16>, vector<224x64xf32> -> vector<224x64xf32>
    %148 = arith.addf %142, %147 : vector<224x64xf32>
    %c17_109 = arith.constant 17 : index
    %c0_110 = arith.constant 0 : index
    %149 = vector.load %arg14[%c17_109, %c0_110] : memref<272x32xf32, #tpu.memory_space<vmem>>, vector<224x32xf32>
    %150 = arith.truncf %149 : vector<224x32xf32> to vector<224x32xbf16>
    %c4 = arith.constant 4 : index
    %c0_111 = arith.constant 0 : index
    %c0_112 = arith.constant 0 : index
    %151 = vector.load %arg4[%c4, %c0_111, %c0_112] : memref<9x32x64xbf16, #tpu.memory_space<vmem>>, vector<1x32x64xbf16>
    %152 = vector.shape_cast %151 : vector<1x32x64xbf16> to vector<32x64xbf16>
    %cst_113 = arith.constant dense<0.000000e+00> : vector<224x64xf32>
    %153 = tpu.matmul %150, %152, %cst_113 {dimension_numbers = #tpu.dot_dimension_numbers<[1], [0], [0], [1], [0, 0, 1, 1], [], []>} : vector<224x32xbf16>, vector<32x64xbf16>, vector<224x64xf32> -> vector<224x64xf32>
    %154 = arith.addf %148, %153 : vector<224x64xf32>
    %c18 = arith.constant 18 : index
    %c0_114 = arith.constant 0 : index
    %155 = vector.load %arg14[%c18, %c0_114] : memref<272x32xf32, #tpu.memory_space<vmem>>, vector<224x32xf32>
    %156 = arith.truncf %155 : vector<224x32xf32> to vector<224x32xbf16>
    %c5 = arith.constant 5 : index
    %c0_115 = arith.constant 0 : index
    %c0_116 = arith.constant 0 : index
    %157 = vector.load %arg4[%c5, %c0_115, %c0_116] : memref<9x32x64xbf16, #tpu.memory_space<vmem>>, vector<1x32x64xbf16>
    %158 = vector.shape_cast %157 : vector<1x32x64xbf16> to vector<32x64xbf16>
    %cst_117 = arith.constant dense<0.000000e+00> : vector<224x64xf32>
    %159 = tpu.matmul %156, %158, %cst_117 {dimension_numbers = #tpu.dot_dimension_numbers<[1], [0], [0], [1], [0, 0, 1, 1], [], []>} : vector<224x32xbf16>, vector<32x64xbf16>, vector<224x64xf32> -> vector<224x64xf32>
    %160 = arith.addf %154, %159 : vector<224x64xf32>
    %c32 = arith.constant 32 : index
    %c0_118 = arith.constant 0 : index
    %161 = vector.load %arg14[%c32, %c0_118] : memref<272x32xf32, #tpu.memory_space<vmem>>, vector<224x32xf32>
    %162 = arith.truncf %161 : vector<224x32xf32> to vector<224x32xbf16>
    %c6 = arith.constant 6 : index
    %c0_119 = arith.constant 0 : index
    %c0_120 = arith.constant 0 : index
    %163 = vector.load %arg4[%c6, %c0_119, %c0_120] : memref<9x32x64xbf16, #tpu.memory_space<vmem>>, vector<1x32x64xbf16>
    %164 = vector.shape_cast %163 : vector<1x32x64xbf16> to vector<32x64xbf16>
    %cst_121 = arith.constant dense<0.000000e+00> : vector<224x64xf32>
    %165 = tpu.matmul %162, %164, %cst_121 {dimension_numbers = #tpu.dot_dimension_numbers<[1], [0], [0], [1], [0, 0, 1, 1], [], []>} : vector<224x32xbf16>, vector<32x64xbf16>, vector<224x64xf32> -> vector<224x64xf32>
    %166 = arith.addf %160, %165 : vector<224x64xf32>
    %c33_122 = arith.constant 33 : index
    %c0_123 = arith.constant 0 : index
    %167 = vector.load %arg14[%c33_122, %c0_123] : memref<272x32xf32, #tpu.memory_space<vmem>>, vector<224x32xf32>
    %168 = arith.truncf %167 : vector<224x32xf32> to vector<224x32xbf16>
    %c7 = arith.constant 7 : index
    %c0_124 = arith.constant 0 : index
    %c0_125 = arith.constant 0 : index
    %169 = vector.load %arg4[%c7, %c0_124, %c0_125] : memref<9x32x64xbf16, #tpu.memory_space<vmem>>, vector<1x32x64xbf16>
    %170 = vector.shape_cast %169 : vector<1x32x64xbf16> to vector<32x64xbf16>
    %cst_126 = arith.constant dense<0.000000e+00> : vector<224x64xf32>
    %171 = tpu.matmul %168, %170, %cst_126 {dimension_numbers = #tpu.dot_dimension_numbers<[1], [0], [0], [1], [0, 0, 1, 1], [], []>} : vector<224x32xbf16>, vector<32x64xbf16>, vector<224x64xf32> -> vector<224x64xf32>
    %172 = arith.addf %166, %171 : vector<224x64xf32>
    %c34 = arith.constant 34 : index
    %c0_127 = arith.constant 0 : index
    %173 = vector.load %arg14[%c34, %c0_127] : memref<272x32xf32, #tpu.memory_space<vmem>>, vector<224x32xf32>
    %174 = arith.truncf %173 : vector<224x32xf32> to vector<224x32xbf16>
    %c8 = arith.constant 8 : index
    %c0_128 = arith.constant 0 : index
    %c0_129 = arith.constant 0 : index
    %175 = vector.load %arg4[%c8, %c0_128, %c0_129] : memref<9x32x64xbf16, #tpu.memory_space<vmem>>, vector<1x32x64xbf16>
    %176 = vector.shape_cast %175 : vector<1x32x64xbf16> to vector<32x64xbf16>
    %cst_130 = arith.constant dense<0.000000e+00> : vector<224x64xf32>
    %177 = tpu.matmul %174, %176, %cst_130 {dimension_numbers = #tpu.dot_dimension_numbers<[1], [0], [0], [1], [0, 0, 1, 1], [], []>} : vector<224x32xbf16>, vector<32x64xbf16>, vector<224x64xf32> -> vector<224x64xf32>
    %178 = arith.addf %172, %177 : vector<224x64xf32>
    %c0_131 = arith.constant 0 : index
    %c0_132 = arith.constant 0 : index
    %179 = vector.load %arg5[%c0_131, %c0_132] : memref<1x64xf32, #tpu.memory_space<vmem>>, vector<1x64xf32>
    %180 = vector.broadcast %179 : vector<1x64xf32> to vector<224x64xf32>
    %181 = arith.addf %178, %180 : vector<224x64xf32>
    %cst_133 = arith.constant 0.000000e+00 : f32
    %182 = vector.broadcast %cst_133 : f32 to vector<224x64xf32>
    %183 = arith.maximumf %181, %182 : vector<224x64xf32>
    %c0_134 = arith.constant 0 : index
    %c0_135 = arith.constant 0 : index
    %184 = vector.load %arg15[%c0_134, %c0_135] : memref<224x64xf32, #tpu.memory_space<vmem>>, vector<224x64xf32>
    tpu.vector_store %arg15[%c0_134, %c0_135], %183 {strides = array<i32>} : memref<224x64xf32, #tpu.memory_space<vmem>>, vector<224x64xf32>,
    %c0_136 = arith.constant 0 : index
    %c0_137 = arith.constant 0 : index
    %185 = tpu.strided_load %arg15[%c0_136, %c0_137] {strides = array<i32: 2, 1>} : memref<224x64xf32, #tpu.memory_space<vmem>>, vector<7x64xf32>
    %c1_138 = arith.constant 1 : index
    %c0_139 = arith.constant 0 : index
    %186 = tpu.strided_load %arg15[%c1_138, %c0_139] {strides = array<i32: 2, 1>} : memref<224x64xf32, #tpu.memory_space<vmem>>, vector<7x64xf32>
    %187 = arith.maximumf %185, %186 : vector<7x64xf32>
    %c16_140 = arith.constant 16 : index
    %c0_141 = arith.constant 0 : index
    %188 = tpu.strided_load %arg15[%c16_140, %c0_141] {strides = array<i32: 2, 1>} : memref<224x64xf32, #tpu.memory_space<vmem>>, vector<7x64xf32>
    %c17_142 = arith.constant 17 : index
    %c0_143 = arith.constant 0 : index
    %189 = tpu.strided_load %arg15[%c17_142, %c0_143] {strides = array<i32: 2, 1>} : memref<224x64xf32, #tpu.memory_space<vmem>>, vector<7x64xf32>
    %190 = arith.maximumf %188, %189 : vector<7x64xf32>
    %191 = arith.maximumf %187, %190 : vector<7x64xf32>
    %c10 = arith.constant 10 : index
    %c0_144 = arith.constant 0 : index
    %192 = vector.load %arg16[%c10, %c0_144] : memref<90x64xf32, #tpu.memory_space<vmem>>, vector<7x64xf32>
    tpu.vector_store %arg16[%c10, %c0_144], %191 {strides = array<i32>} : memref<90x64xf32, #tpu.memory_space<vmem>>, vector<7x64xf32>,
    %c32_145 = arith.constant 32 : index
    %c0_146 = arith.constant 0 : index
    %193 = tpu.strided_load %arg15[%c32_145, %c0_146] {strides = array<i32: 2, 1>} : memref<224x64xf32, #tpu.memory_space<vmem>>, vector<7x64xf32>
    %c33_147 = arith.constant 33 : index
    %c0_148 = arith.constant 0 : index
    %194 = tpu.strided_load %arg15[%c33_147, %c0_148] {strides = array<i32: 2, 1>} : memref<224x64xf32, #tpu.memory_space<vmem>>, vector<7x64xf32>
    %195 = arith.maximumf %193, %194 : vector<7x64xf32>
    %c48 = arith.constant 48 : index
    %c0_149 = arith.constant 0 : index
    %196 = tpu.strided_load %arg15[%c48, %c0_149] {strides = array<i32: 2, 1>} : memref<224x64xf32, #tpu.memory_space<vmem>>, vector<7x64xf32>
    %c49_150 = arith.constant 49 : index
    %c0_151 = arith.constant 0 : index
    %197 = tpu.strided_load %arg15[%c49_150, %c0_151] {strides = array<i32: 2, 1>} : memref<224x64xf32, #tpu.memory_space<vmem>>, vector<7x64xf32>
    %198 = arith.maximumf %196, %197 : vector<7x64xf32>
    %199 = arith.maximumf %195, %198 : vector<7x64xf32>
    %c19 = arith.constant 19 : index
    %c0_152 = arith.constant 0 : index
    %200 = vector.load %arg16[%c19, %c0_152] : memref<90x64xf32, #tpu.memory_space<vmem>>, vector<7x64xf32>
    tpu.vector_store %arg16[%c19, %c0_152], %199 {strides = array<i32>} : memref<90x64xf32, #tpu.memory_space<vmem>>, vector<7x64xf32>,
    %c64 = arith.constant 64 : index
    %c0_153 = arith.constant 0 : index
    %201 = tpu.strided_load %arg15[%c64, %c0_153] {strides = array<i32: 2, 1>} : memref<224x64xf32, #tpu.memory_space<vmem>>, vector<7x64xf32>
    %c65_154 = arith.constant 65 : index
    %c0_155 = arith.constant 0 : index
    %202 = tpu.strided_load %arg15[%c65_154, %c0_155] {strides = array<i32: 2, 1>} : memref<224x64xf32, #tpu.memory_space<vmem>>, vector<7x64xf32>
    %203 = arith.maximumf %201, %202 : vector<7x64xf32>
    %c80 = arith.constant 80 : index
    %c0_156 = arith.constant 0 : index
    %204 = tpu.strided_load %arg15[%c80, %c0_156] {strides = array<i32: 2, 1>} : memref<224x64xf32, #tpu.memory_space<vmem>>, vector<7x64xf32>
    %c81_157 = arith.constant 81 : index
    %c0_158 = arith.constant 0 : index
    %205 = tpu.strided_load %arg15[%c81_157, %c0_158] {strides = array<i32: 2, 1>} : memref<224x64xf32, #tpu.memory_space<vmem>>, vector<7x64xf32>
    %206 = arith.maximumf %204, %205 : vector<7x64xf32>
    %207 = arith.maximumf %203, %206 : vector<7x64xf32>
    %c28_159 = arith.constant 28 : index
    %c0_160 = arith.constant 0 : index
    %208 = vector.load %arg16[%c28_159, %c0_160] : memref<90x64xf32, #tpu.memory_space<vmem>>, vector<7x64xf32>
    tpu.vector_store %arg16[%c28_159, %c0_160], %207 {strides = array<i32>} : memref<90x64xf32, #tpu.memory_space<vmem>>, vector<7x64xf32>,
    %c96 = arith.constant 96 : index
    %c0_161 = arith.constant 0 : index
    %209 = tpu.strided_load %arg15[%c96, %c0_161] {strides = array<i32: 2, 1>} : memref<224x64xf32, #tpu.memory_space<vmem>>, vector<7x64xf32>
    %c97_162 = arith.constant 97 : index
    %c0_163 = arith.constant 0 : index
    %210 = tpu.strided_load %arg15[%c97_162, %c0_163] {strides = array<i32: 2, 1>} : memref<224x64xf32, #tpu.memory_space<vmem>>, vector<7x64xf32>
    %211 = arith.maximumf %209, %210 : vector<7x64xf32>
    %c112_164 = arith.constant 112 : index
    %c0_165 = arith.constant 0 : index
    %212 = tpu.strided_load %arg15[%c112_164, %c0_165] {strides = array<i32: 2, 1>} : memref<224x64xf32, #tpu.memory_space<vmem>>, vector<7x64xf32>
    %c113_166 = arith.constant 113 : index
    %c0_167 = arith.constant 0 : index
    %213 = tpu.strided_load %arg15[%c113_166, %c0_167] {strides = array<i32: 2, 1>} : memref<224x64xf32, #tpu.memory_space<vmem>>, vector<7x64xf32>
    %214 = arith.maximumf %212, %213 : vector<7x64xf32>
    %215 = arith.maximumf %211, %214 : vector<7x64xf32>
    %c37 = arith.constant 37 : index
    %c0_168 = arith.constant 0 : index
    %216 = vector.load %arg16[%c37, %c0_168] : memref<90x64xf32, #tpu.memory_space<vmem>>, vector<7x64xf32>
    tpu.vector_store %arg16[%c37, %c0_168], %215 {strides = array<i32>} : memref<90x64xf32, #tpu.memory_space<vmem>>, vector<7x64xf32>,
    %c128 = arith.constant 128 : index
    %c0_169 = arith.constant 0 : index
    %217 = tpu.strided_load %arg15[%c128, %c0_169] {strides = array<i32: 2, 1>} : memref<224x64xf32, #tpu.memory_space<vmem>>, vector<7x64xf32>
    %c129_170 = arith.constant 129 : index
    %c0_171 = arith.constant 0 : index
    %218 = tpu.strided_load %arg15[%c129_170, %c0_171] {strides = array<i32: 2, 1>} : memref<224x64xf32, #tpu.memory_space<vmem>>, vector<7x64xf32>
    %219 = arith.maximumf %217, %218 : vector<7x64xf32>
    %c144 = arith.constant 144 : index
    %c0_172 = arith.constant 0 : index
    %220 = tpu.strided_load %arg15[%c144, %c0_172] {strides = array<i32: 2, 1>} : memref<224x64xf32, #tpu.memory_space<vmem>>, vector<7x64xf32>
    %c145_173 = arith.constant 145 : index
    %c0_174 = arith.constant 0 : index
    %221 = tpu.strided_load %arg15[%c145_173, %c0_174] {strides = array<i32: 2, 1>} : memref<224x64xf32, #tpu.memory_space<vmem>>, vector<7x64xf32>
    %222 = arith.maximumf %220, %221 : vector<7x64xf32>
    %223 = arith.maximumf %219, %222 : vector<7x64xf32>
    %c46 = arith.constant 46 : index
    %c0_175 = arith.constant 0 : index
    %224 = vector.load %arg16[%c46, %c0_175] : memref<90x64xf32, #tpu.memory_space<vmem>>, vector<7x64xf32>
    tpu.vector_store %arg16[%c46, %c0_175], %223 {strides = array<i32>} : memref<90x64xf32, #tpu.memory_space<vmem>>, vector<7x64xf32>,
    %c160 = arith.constant 160 : index
    %c0_176 = arith.constant 0 : index
    %225 = tpu.strided_load %arg15[%c160, %c0_176] {strides = array<i32: 2, 1>} : memref<224x64xf32, #tpu.memory_space<vmem>>, vector<7x64xf32>
    %c161_177 = arith.constant 161 : index
    %c0_178 = arith.constant 0 : index
    %226 = tpu.strided_load %arg15[%c161_177, %c0_178] {strides = array<i32: 2, 1>} : memref<224x64xf32, #tpu.memory_space<vmem>>, vector<7x64xf32>
    %227 = arith.maximumf %225, %226 : vector<7x64xf32>
    %c176 = arith.constant 176 : index
    %c0_179 = arith.constant 0 : index
    %228 = tpu.strided_load %arg15[%c176, %c0_179] {strides = array<i32: 2, 1>} : memref<224x64xf32, #tpu.memory_space<vmem>>, vector<7x64xf32>
    %c177_180 = arith.constant 177 : index
    %c0_181 = arith.constant 0 : index
    %229 = tpu.strided_load %arg15[%c177_180, %c0_181] {strides = array<i32: 2, 1>} : memref<224x64xf32, #tpu.memory_space<vmem>>, vector<7x64xf32>
    %230 = arith.maximumf %228, %229 : vector<7x64xf32>
    %231 = arith.maximumf %227, %230 : vector<7x64xf32>
    %c55 = arith.constant 55 : index
    %c0_182 = arith.constant 0 : index
    %232 = vector.load %arg16[%c55, %c0_182] : memref<90x64xf32, #tpu.memory_space<vmem>>, vector<7x64xf32>
    tpu.vector_store %arg16[%c55, %c0_182], %231 {strides = array<i32>} : memref<90x64xf32, #tpu.memory_space<vmem>>, vector<7x64xf32>,
    %c192 = arith.constant 192 : index
    %c0_183 = arith.constant 0 : index
    %233 = tpu.strided_load %arg15[%c192, %c0_183] {strides = array<i32: 2, 1>} : memref<224x64xf32, #tpu.memory_space<vmem>>, vector<7x64xf32>
    %c193_184 = arith.constant 193 : index
    %c0_185 = arith.constant 0 : index
    %234 = tpu.strided_load %arg15[%c193_184, %c0_185] {strides = array<i32: 2, 1>} : memref<224x64xf32, #tpu.memory_space<vmem>>, vector<7x64xf32>
    %235 = arith.maximumf %233, %234 : vector<7x64xf32>
    %c208 = arith.constant 208 : index
    %c0_186 = arith.constant 0 : index
    %236 = tpu.strided_load %arg15[%c208, %c0_186] {strides = array<i32: 2, 1>} : memref<224x64xf32, #tpu.memory_space<vmem>>, vector<7x64xf32>
    %c209_187 = arith.constant 209 : index
    %c0_188 = arith.constant 0 : index
    %237 = tpu.strided_load %arg15[%c209_187, %c0_188] {strides = array<i32: 2, 1>} : memref<224x64xf32, #tpu.memory_space<vmem>>, vector<7x64xf32>
    %238 = arith.maximumf %236, %237 : vector<7x64xf32>
    %239 = arith.maximumf %235, %238 : vector<7x64xf32>
    %c64_189 = arith.constant 64 : index
    %c0_190 = arith.constant 0 : index
    %240 = vector.load %arg16[%c64_189, %c0_190] : memref<90x64xf32, #tpu.memory_space<vmem>>, vector<7x64xf32>
    tpu.vector_store %arg16[%c64_189, %c0_190], %239 {strides = array<i32>} : memref<90x64xf32, #tpu.memory_space<vmem>>, vector<7x64xf32>,
    %c0_191 = arith.constant 0 : index
    %c0_192 = arith.constant 0 : index
    %241 = vector.load %arg16[%c0_191, %c0_192] : memref<90x64xf32, #tpu.memory_space<vmem>>, vector<63x64xf32>
    %242 = arith.truncf %241 : vector<63x64xf32> to vector<63x64xbf16>
    %c0_193 = arith.constant 0 : index
    %c0_194 = arith.constant 0 : index
    %c0_195 = arith.constant 0 : index
    %243 = vector.load %arg6[%c0_193, %c0_194, %c0_195] : memref<9x64x128xbf16, #tpu.memory_space<vmem>>, vector<1x64x128xbf16>
    %244 = vector.shape_cast %243 : vector<1x64x128xbf16> to vector<64x128xbf16>
    %cst_196 = arith.constant dense<0.000000e+00> : vector<63x128xf32>
    %245 = tpu.matmul %242, %244, %cst_196 {dimension_numbers = #tpu.dot_dimension_numbers<[1], [0], [0], [1], [0, 0, 1, 1], [], []>} : vector<63x64xbf16>, vector<64x128xbf16>, vector<63x128xf32> -> vector<63x128xf32>
    %c1_197 = arith.constant 1 : index
    %c0_198 = arith.constant 0 : index
    %246 = vector.load %arg16[%c1_197, %c0_198] : memref<90x64xf32, #tpu.memory_space<vmem>>, vector<63x64xf32>
    %247 = arith.truncf %246 : vector<63x64xf32> to vector<63x64xbf16>
    %c1_199 = arith.constant 1 : index
    %c0_200 = arith.constant 0 : index
    %c0_201 = arith.constant 0 : index
    %248 = vector.load %arg6[%c1_199, %c0_200, %c0_201] : memref<9x64x128xbf16, #tpu.memory_space<vmem>>, vector<1x64x128xbf16>
    %249 = vector.shape_cast %248 : vector<1x64x128xbf16> to vector<64x128xbf16>
    %cst_202 = arith.constant dense<0.000000e+00> : vector<63x128xf32>
    %250 = tpu.matmul %247, %249, %cst_202 {dimension_numbers = #tpu.dot_dimension_numbers<[1], [0], [0], [1], [0, 0, 1, 1], [], []>} : vector<63x64xbf16>, vector<64x128xbf16>, vector<63x128xf32> -> vector<63x128xf32>
    %251 = arith.addf %245, %250 : vector<63x128xf32>
    %c2_203 = arith.constant 2 : index
    %c0_204 = arith.constant 0 : index
    %252 = vector.load %arg16[%c2_203, %c0_204] : memref<90x64xf32, #tpu.memory_space<vmem>>, vector<63x64xf32>
    %253 = arith.truncf %252 : vector<63x64xf32> to vector<63x64xbf16>
    %c2_205 = arith.constant 2 : index
    %c0_206 = arith.constant 0 : index
    %c0_207 = arith.constant 0 : index
    %254 = vector.load %arg6[%c2_205, %c0_206, %c0_207] : memref<9x64x128xbf16, #tpu.memory_space<vmem>>, vector<1x64x128xbf16>
    %255 = vector.shape_cast %254 : vector<1x64x128xbf16> to vector<64x128xbf16>
    %cst_208 = arith.constant dense<0.000000e+00> : vector<63x128xf32>
    %256 = tpu.matmul %253, %255, %cst_208 {dimension_numbers = #tpu.dot_dimension_numbers<[1], [0], [0], [1], [0, 0, 1, 1], [], []>} : vector<63x64xbf16>, vector<64x128xbf16>, vector<63x128xf32> -> vector<63x128xf32>
    %257 = arith.addf %251, %256 : vector<63x128xf32>
    %c9 = arith.constant 9 : index
    %c0_209 = arith.constant 0 : index
    %258 = vector.load %arg16[%c9, %c0_209] : memref<90x64xf32, #tpu.memory_space<vmem>>, vector<63x64xf32>
    %259 = arith.truncf %258 : vector<63x64xf32> to vector<63x64xbf16>
    %c3_210 = arith.constant 3 : index
    %c0_211 = arith.constant 0 : index
    %c0_212 = arith.constant 0 : index
    %260 = vector.load %arg6[%c3_210, %c0_211, %c0_212] : memref<9x64x128xbf16, #tpu.memory_space<vmem>>, vector<1x64x128xbf16>
    %261 = vector.shape_cast %260 : vector<1x64x128xbf16> to vector<64x128xbf16>
    %cst_213 = arith.constant dense<0.000000e+00> : vector<63x128xf32>
    %262 = tpu.matmul %259, %261, %cst_213 {dimension_numbers = #tpu.dot_dimension_numbers<[1], [0], [0], [1], [0, 0, 1, 1], [], []>} : vector<63x64xbf16>, vector<64x128xbf16>, vector<63x128xf32> -> vector<63x128xf32>
    %263 = arith.addf %257, %262 : vector<63x128xf32>
    %c10_214 = arith.constant 10 : index
    %c0_215 = arith.constant 0 : index
    %264 = vector.load %arg16[%c10_214, %c0_215] : memref<90x64xf32, #tpu.memory_space<vmem>>, vector<63x64xf32>
    %265 = arith.truncf %264 : vector<63x64xf32> to vector<63x64xbf16>
    %c4_216 = arith.constant 4 : index
    %c0_217 = arith.constant 0 : index
    %c0_218 = arith.constant 0 : index
    %266 = vector.load %arg6[%c4_216, %c0_217, %c0_218] : memref<9x64x128xbf16, #tpu.memory_space<vmem>>, vector<1x64x128xbf16>
    %267 = vector.shape_cast %266 : vector<1x64x128xbf16> to vector<64x128xbf16>
    %cst_219 = arith.constant dense<0.000000e+00> : vector<63x128xf32>
    %268 = tpu.matmul %265, %267, %cst_219 {dimension_numbers = #tpu.dot_dimension_numbers<[1], [0], [0], [1], [0, 0, 1, 1], [], []>} : vector<63x64xbf16>, vector<64x128xbf16>, vector<63x128xf32> -> vector<63x128xf32>
    %269 = arith.addf %263, %268 : vector<63x128xf32>
    %c11 = arith.constant 11 : index
    %c0_220 = arith.constant 0 : index
    %270 = vector.load %arg16[%c11, %c0_220] : memref<90x64xf32, #tpu.memory_space<vmem>>, vector<63x64xf32>
    %271 = arith.truncf %270 : vector<63x64xf32> to vector<63x64xbf16>
    %c5_221 = arith.constant 5 : index
    %c0_222 = arith.constant 0 : index
    %c0_223 = arith.constant 0 : index
    %272 = vector.load %arg6[%c5_221, %c0_222, %c0_223] : memref<9x64x128xbf16, #tpu.memory_space<vmem>>, vector<1x64x128xbf16>
    %273 = vector.shape_cast %272 : vector<1x64x128xbf16> to vector<64x128xbf16>
    %cst_224 = arith.constant dense<0.000000e+00> : vector<63x128xf32>
    %274 = tpu.matmul %271, %273, %cst_224 {dimension_numbers = #tpu.dot_dimension_numbers<[1], [0], [0], [1], [0, 0, 1, 1], [], []>} : vector<63x64xbf16>, vector<64x128xbf16>, vector<63x128xf32> -> vector<63x128xf32>
    %275 = arith.addf %269, %274 : vector<63x128xf32>
    %c18_225 = arith.constant 18 : index
    %c0_226 = arith.constant 0 : index
    %276 = vector.load %arg16[%c18_225, %c0_226] : memref<90x64xf32, #tpu.memory_space<vmem>>, vector<63x64xf32>
    %277 = arith.truncf %276 : vector<63x64xf32> to vector<63x64xbf16>
    %c6_227 = arith.constant 6 : index
    %c0_228 = arith.constant 0 : index
    %c0_229 = arith.constant 0 : index
    %278 = vector.load %arg6[%c6_227, %c0_228, %c0_229] : memref<9x64x128xbf16, #tpu.memory_space<vmem>>, vector<1x64x128xbf16>
    %279 = vector.shape_cast %278 : vector<1x64x128xbf16> to vector<64x128xbf16>
    %cst_230 = arith.constant dense<0.000000e+00> : vector<63x128xf32>
    %280 = tpu.matmul %277, %279, %cst_230 {dimension_numbers = #tpu.dot_dimension_numbers<[1], [0], [0], [1], [0, 0, 1, 1], [], []>} : vector<63x64xbf16>, vector<64x128xbf16>, vector<63x128xf32> -> vector<63x128xf32>
    %281 = arith.addf %275, %280 : vector<63x128xf32>
    %c19_231 = arith.constant 19 : index
    %c0_232 = arith.constant 0 : index
    %282 = vector.load %arg16[%c19_231, %c0_232] : memref<90x64xf32, #tpu.memory_space<vmem>>, vector<63x64xf32>
    %283 = arith.truncf %282 : vector<63x64xf32> to vector<63x64xbf16>
    %c7_233 = arith.constant 7 : index
    %c0_234 = arith.constant 0 : index
    %c0_235 = arith.constant 0 : index
    %284 = vector.load %arg6[%c7_233, %c0_234, %c0_235] : memref<9x64x128xbf16, #tpu.memory_space<vmem>>, vector<1x64x128xbf16>
    %285 = vector.shape_cast %284 : vector<1x64x128xbf16> to vector<64x128xbf16>
    %cst_236 = arith.constant dense<0.000000e+00> : vector<63x128xf32>
    %286 = tpu.matmul %283, %285, %cst_236 {dimension_numbers = #tpu.dot_dimension_numbers<[1], [0], [0], [1], [0, 0, 1, 1], [], []>} : vector<63x64xbf16>, vector<64x128xbf16>, vector<63x128xf32> -> vector<63x128xf32>
    %287 = arith.addf %281, %286 : vector<63x128xf32>
    %c20 = arith.constant 20 : index
    %c0_237 = arith.constant 0 : index
    %288 = vector.load %arg16[%c20, %c0_237] : memref<90x64xf32, #tpu.memory_space<vmem>>, vector<63x64xf32>
    %289 = arith.truncf %288 : vector<63x64xf32> to vector<63x64xbf16>
    %c8_238 = arith.constant 8 : index
    %c0_239 = arith.constant 0 : index
    %c0_240 = arith.constant 0 : index
    %290 = vector.load %arg6[%c8_238, %c0_239, %c0_240] : memref<9x64x128xbf16, #tpu.memory_space<vmem>>, vector<1x64x128xbf16>
    %291 = vector.shape_cast %290 : vector<1x64x128xbf16> to vector<64x128xbf16>
    %cst_241 = arith.constant dense<0.000000e+00> : vector<63x128xf32>
    %292 = tpu.matmul %289, %291, %cst_241 {dimension_numbers = #tpu.dot_dimension_numbers<[1], [0], [0], [1], [0, 0, 1, 1], [], []>} : vector<63x64xbf16>, vector<64x128xbf16>, vector<63x128xf32> -> vector<63x128xf32>
    %293 = arith.addf %287, %292 : vector<63x128xf32>
    %c0_242 = arith.constant 0 : index
    %c0_243 = arith.constant 0 : index
    %294 = vector.load %arg7[%c0_242, %c0_243] : memref<1x128xf32, #tpu.memory_space<vmem>>, vector<1x128xf32>
    %295 = vector.broadcast %294 : vector<1x128xf32> to vector<63x128xf32>
    %296 = arith.addf %293, %295 : vector<63x128xf32>
    %cst_244 = arith.constant 0.000000e+00 : f32
    %297 = vector.broadcast %cst_244 : f32 to vector<63x128xf32>
    %298 = arith.maximumf %296, %297 : vector<63x128xf32>
    %c0_245 = arith.constant 0 : index
    %c0_246 = arith.constant 0 : index
    %299 = vector.load %arg17[%c0_245, %c0_246] : memref<63x128xf32, #tpu.memory_space<vmem>>, vector<63x128xf32>
    tpu.vector_store %arg17[%c0_245, %c0_246], %298 {strides = array<i32>} : memref<63x128xf32, #tpu.memory_space<vmem>>, vector<63x128xf32>,
    %c0_247 = arith.constant 0 : index
    %c0_248 = arith.constant 0 : index
    %300 = tpu.strided_load %arg17[%c0_247, %c0_248] {strides = array<i32: 2, 1>} : memref<63x128xf32, #tpu.memory_space<vmem>>, vector<3x128xf32>
    %c1_249 = arith.constant 1 : index
    %c0_250 = arith.constant 0 : index
    %301 = tpu.strided_load %arg17[%c1_249, %c0_250] {strides = array<i32: 2, 1>} : memref<63x128xf32, #tpu.memory_space<vmem>>, vector<3x128xf32>
    %302 = arith.maximumf %300, %301 : vector<3x128xf32>
    %c9_251 = arith.constant 9 : index
    %c0_252 = arith.constant 0 : index
    %303 = tpu.strided_load %arg17[%c9_251, %c0_252] {strides = array<i32: 2, 1>} : memref<63x128xf32, #tpu.memory_space<vmem>>, vector<3x128xf32>
    %c10_253 = arith.constant 10 : index
    %c0_254 = arith.constant 0 : index
    %304 = tpu.strided_load %arg17[%c10_253, %c0_254] {strides = array<i32: 2, 1>} : memref<63x128xf32, #tpu.memory_space<vmem>>, vector<3x128xf32>
    %305 = arith.maximumf %303, %304 : vector<3x128xf32>
    %306 = arith.maximumf %302, %305 : vector<3x128xf32>
    %c0_255 = arith.constant 0 : index
    %c0_256 = arith.constant 0 : index
    %307 = vector.load %arg18[%c0_255, %c0_256] : memref<9x128xf32, #tpu.memory_space<vmem>>, vector<3x128xf32>
    tpu.vector_store %arg18[%c0_255, %c0_256], %306 {strides = array<i32>} : memref<9x128xf32, #tpu.memory_space<vmem>>, vector<3x128xf32>,
    %c18_257 = arith.constant 18 : index
    %c0_258 = arith.constant 0 : index
    %308 = tpu.strided_load %arg17[%c18_257, %c0_258] {strides = array<i32: 2, 1>} : memref<63x128xf32, #tpu.memory_space<vmem>>, vector<3x128xf32>
    %c19_259 = arith.constant 19 : index
    %c0_260 = arith.constant 0 : index
    %309 = tpu.strided_load %arg17[%c19_259, %c0_260] {strides = array<i32: 2, 1>} : memref<63x128xf32, #tpu.memory_space<vmem>>, vector<3x128xf32>
    %310 = arith.maximumf %308, %309 : vector<3x128xf32>
    %c27 = arith.constant 27 : index
    %c0_261 = arith.constant 0 : index
    %311 = tpu.strided_load %arg17[%c27, %c0_261] {strides = array<i32: 2, 1>} : memref<63x128xf32, #tpu.memory_space<vmem>>, vector<3x128xf32>
    %c28_262 = arith.constant 28 : index
    %c0_263 = arith.constant 0 : index
    %312 = tpu.strided_load %arg17[%c28_262, %c0_263] {strides = array<i32: 2, 1>} : memref<63x128xf32, #tpu.memory_space<vmem>>, vector<3x128xf32>
    %313 = arith.maximumf %311, %312 : vector<3x128xf32>
    %314 = arith.maximumf %310, %313 : vector<3x128xf32>
    %c3_264 = arith.constant 3 : index
    %c0_265 = arith.constant 0 : index
    %315 = vector.load %arg18[%c3_264, %c0_265] : memref<9x128xf32, #tpu.memory_space<vmem>>, vector<3x128xf32>
    tpu.vector_store %arg18[%c3_264, %c0_265], %314 {strides = array<i32>} : memref<9x128xf32, #tpu.memory_space<vmem>>, vector<3x128xf32>,
    %c36 = arith.constant 36 : index
    %c0_266 = arith.constant 0 : index
    %316 = tpu.strided_load %arg17[%c36, %c0_266] {strides = array<i32: 2, 1>} : memref<63x128xf32, #tpu.memory_space<vmem>>, vector<3x128xf32>
    %c37_267 = arith.constant 37 : index
    %c0_268 = arith.constant 0 : index
    %317 = tpu.strided_load %arg17[%c37_267, %c0_268] {strides = array<i32: 2, 1>} : memref<63x128xf32, #tpu.memory_space<vmem>>, vector<3x128xf32>
    %318 = arith.maximumf %316, %317 : vector<3x128xf32>
    %c45 = arith.constant 45 : index
    %c0_269 = arith.constant 0 : index
    %319 = tpu.strided_load %arg17[%c45, %c0_269] {strides = array<i32: 2, 1>} : memref<63x128xf32, #tpu.memory_space<vmem>>, vector<3x128xf32>
    %c46_270 = arith.constant 46 : index
    %c0_271 = arith.constant 0 : index
    %320 = tpu.strided_load %arg17[%c46_270, %c0_271] {strides = array<i32: 2, 1>} : memref<63x128xf32, #tpu.memory_space<vmem>>, vector<3x128xf32>
    %321 = arith.maximumf %319, %320 : vector<3x128xf32>
    %322 = arith.maximumf %318, %321 : vector<3x128xf32>
    %c6_272 = arith.constant 6 : index
    %c0_273 = arith.constant 0 : index
    %323 = vector.load %arg18[%c6_272, %c0_273] : memref<9x128xf32, #tpu.memory_space<vmem>>, vector<3x128xf32>
    tpu.vector_store %arg18[%c6_272, %c0_273], %322 {strides = array<i32>} : memref<9x128xf32, #tpu.memory_space<vmem>>, vector<3x128xf32>,
    %c0_274 = arith.constant 0 : index
    %c0_275 = arith.constant 0 : index
    %324 = tpu.strided_load %arg18[%c0_274, %c0_275] {strides = array<i32: 9, 1>} : memref<9x128xf32, #tpu.memory_space<vmem>>, vector<1x128xf32>
    %325 = arith.truncf %324 : vector<1x128xf32> to vector<1x128xbf16>
    %c0_276 = arith.constant 0 : index
    %c0_277 = arith.constant 0 : index
    %c0_278 = arith.constant 0 : index
    %326 = vector.load %arg8[%c0_276, %c0_277, %c0_278] : memref<9x128x128xbf16, #tpu.memory_space<vmem>>, vector<1x128x128xbf16>
    %327 = vector.shape_cast %326 : vector<1x128x128xbf16> to vector<128x128xbf16>
    %cst_279 = arith.constant dense<0.000000e+00> : vector<1x128xf32>
    %328 = tpu.matmul %325, %327, %cst_279 {dimension_numbers = #tpu.dot_dimension_numbers<[1], [0], [0], [1], [0, 0, 1, 1], [], []>} : vector<1x128xbf16>, vector<128x128xbf16>, vector<1x128xf32> -> vector<1x128xf32>
    %c1_280 = arith.constant 1 : index
    %c0_281 = arith.constant 0 : index
    %329 = tpu.strided_load %arg18[%c1_280, %c0_281] {strides = array<i32: 9, 1>} : memref<9x128xf32, #tpu.memory_space<vmem>>, vector<1x128xf32>
    %330 = arith.truncf %329 : vector<1x128xf32> to vector<1x128xbf16>
    %c1_282 = arith.constant 1 : index
    %c0_283 = arith.constant 0 : index
    %c0_284 = arith.constant 0 : index
    %331 = vector.load %arg8[%c1_282, %c0_283, %c0_284] : memref<9x128x128xbf16, #tpu.memory_space<vmem>>, vector<1x128x128xbf16>
    %332 = vector.shape_cast %331 : vector<1x128x128xbf16> to vector<128x128xbf16>
    %cst_285 = arith.constant dense<0.000000e+00> : vector<1x128xf32>
    %333 = tpu.matmul %330, %332, %cst_285 {dimension_numbers = #tpu.dot_dimension_numbers<[1], [0], [0], [1], [0, 0, 1, 1], [], []>} : vector<1x128xbf16>, vector<128x128xbf16>, vector<1x128xf32> -> vector<1x128xf32>
    %334 = arith.addf %328, %333 : vector<1x128xf32>
    %c2_286 = arith.constant 2 : index
    %c0_287 = arith.constant 0 : index
    %335 = tpu.strided_load %arg18[%c2_286, %c0_287] {strides = array<i32: 9, 1>} : memref<9x128xf32, #tpu.memory_space<vmem>>, vector<1x128xf32>
    %336 = arith.truncf %335 : vector<1x128xf32> to vector<1x128xbf16>
    %c2_288 = arith.constant 2 : index
    %c0_289 = arith.constant 0 : index
    %c0_290 = arith.constant 0 : index
    %337 = vector.load %arg8[%c2_288, %c0_289, %c0_290] : memref<9x128x128xbf16, #tpu.memory_space<vmem>>, vector<1x128x128xbf16>
    %338 = vector.shape_cast %337 : vector<1x128x128xbf16> to vector<128x128xbf16>
    %cst_291 = arith.constant dense<0.000000e+00> : vector<1x128xf32>
    %339 = tpu.matmul %336, %338, %cst_291 {dimension_numbers = #tpu.dot_dimension_numbers<[1], [0], [0], [1], [0, 0, 1, 1], [], []>} : vector<1x128xbf16>, vector<128x128xbf16>, vector<1x128xf32> -> vector<1x128xf32>
    %340 = arith.addf %334, %339 : vector<1x128xf32>
    %c3_292 = arith.constant 3 : index
    %c0_293 = arith.constant 0 : index
    %341 = tpu.strided_load %arg18[%c3_292, %c0_293] {strides = array<i32: 9, 1>} : memref<9x128xf32, #tpu.memory_space<vmem>>, vector<1x128xf32>
    %342 = arith.truncf %341 : vector<1x128xf32> to vector<1x128xbf16>
    %c3_294 = arith.constant 3 : index
    %c0_295 = arith.constant 0 : index
    %c0_296 = arith.constant 0 : index
    %343 = vector.load %arg8[%c3_294, %c0_295, %c0_296] : memref<9x128x128xbf16, #tpu.memory_space<vmem>>, vector<1x128x128xbf16>
    %344 = vector.shape_cast %343 : vector<1x128x128xbf16> to vector<128x128xbf16>
    %cst_297 = arith.constant dense<0.000000e+00> : vector<1x128xf32>
    %345 = tpu.matmul %342, %344, %cst_297 {dimension_numbers = #tpu.dot_dimension_numbers<[1], [0], [0], [1], [0, 0, 1, 1], [], []>} : vector<1x128xbf16>, vector<128x128xbf16>, vector<1x128xf32> -> vector<1x128xf32>
    %346 = arith.addf %340, %345 : vector<1x128xf32>
    %c4_298 = arith.constant 4 : index
    %c0_299 = arith.constant 0 : index
    %347 = tpu.strided_load %arg18[%c4_298, %c0_299] {strides = array<i32: 9, 1>} : memref<9x128xf32, #tpu.memory_space<vmem>>, vector<1x128xf32>
    %348 = arith.truncf %347 : vector<1x128xf32> to vector<1x128xbf16>
    %c4_300 = arith.constant 4 : index
    %c0_301 = arith.constant 0 : index
    %c0_302 = arith.constant 0 : index
    %349 = vector.load %arg8[%c4_300, %c0_301, %c0_302] : memref<9x128x128xbf16, #tpu.memory_space<vmem>>, vector<1x128x128xbf16>
    %350 = vector.shape_cast %349 : vector<1x128x128xbf16> to vector<128x128xbf16>
    %cst_303 = arith.constant dense<0.000000e+00> : vector<1x128xf32>
    %351 = tpu.matmul %348, %350, %cst_303 {dimension_numbers = #tpu.dot_dimension_numbers<[1], [0], [0], [1], [0, 0, 1, 1], [], []>} : vector<1x128xbf16>, vector<128x128xbf16>, vector<1x128xf32> -> vector<1x128xf32>
    %352 = arith.addf %346, %351 : vector<1x128xf32>
    %c5_304 = arith.constant 5 : index
    %c0_305 = arith.constant 0 : index
    %353 = tpu.strided_load %arg18[%c5_304, %c0_305] {strides = array<i32: 9, 1>} : memref<9x128xf32, #tpu.memory_space<vmem>>, vector<1x128xf32>
    %354 = arith.truncf %353 : vector<1x128xf32> to vector<1x128xbf16>
    %c5_306 = arith.constant 5 : index
    %c0_307 = arith.constant 0 : index
    %c0_308 = arith.constant 0 : index
    %355 = vector.load %arg8[%c5_306, %c0_307, %c0_308] : memref<9x128x128xbf16, #tpu.memory_space<vmem>>, vector<1x128x128xbf16>
    %356 = vector.shape_cast %355 : vector<1x128x128xbf16> to vector<128x128xbf16>
    %cst_309 = arith.constant dense<0.000000e+00> : vector<1x128xf32>
    %357 = tpu.matmul %354, %356, %cst_309 {dimension_numbers = #tpu.dot_dimension_numbers<[1], [0], [0], [1], [0, 0, 1, 1], [], []>} : vector<1x128xbf16>, vector<128x128xbf16>, vector<1x128xf32> -> vector<1x128xf32>
    %358 = arith.addf %352, %357 : vector<1x128xf32>
    %c6_310 = arith.constant 6 : index
    %c0_311 = arith.constant 0 : index
    %359 = tpu.strided_load %arg18[%c6_310, %c0_311] {strides = array<i32: 9, 1>} : memref<9x128xf32, #tpu.memory_space<vmem>>, vector<1x128xf32>
    %360 = arith.truncf %359 : vector<1x128xf32> to vector<1x128xbf16>
    %c6_312 = arith.constant 6 : index
    %c0_313 = arith.constant 0 : index
    %c0_314 = arith.constant 0 : index
    %361 = vector.load %arg8[%c6_312, %c0_313, %c0_314] : memref<9x128x128xbf16, #tpu.memory_space<vmem>>, vector<1x128x128xbf16>
    %362 = vector.shape_cast %361 : vector<1x128x128xbf16> to vector<128x128xbf16>
    %cst_315 = arith.constant dense<0.000000e+00> : vector<1x128xf32>
    %363 = tpu.matmul %360, %362, %cst_315 {dimension_numbers = #tpu.dot_dimension_numbers<[1], [0], [0], [1], [0, 0, 1, 1], [], []>} : vector<1x128xbf16>, vector<128x128xbf16>, vector<1x128xf32> -> vector<1x128xf32>
    %364 = arith.addf %358, %363 : vector<1x128xf32>
    %c7_316 = arith.constant 7 : index
    %c0_317 = arith.constant 0 : index
    %365 = tpu.strided_load %arg18[%c7_316, %c0_317] {strides = array<i32: 9, 1>} : memref<9x128xf32, #tpu.memory_space<vmem>>, vector<1x128xf32>
    %366 = arith.truncf %365 : vector<1x128xf32> to vector<1x128xbf16>
    %c7_318 = arith.constant 7 : index
    %c0_319 = arith.constant 0 : index
    %c0_320 = arith.constant 0 : index
    %367 = vector.load %arg8[%c7_318, %c0_319, %c0_320] : memref<9x128x128xbf16, #tpu.memory_space<vmem>>, vector<1x128x128xbf16>
    %368 = vector.shape_cast %367 : vector<1x128x128xbf16> to vector<128x128xbf16>
    %cst_321 = arith.constant dense<0.000000e+00> : vector<1x128xf32>
    %369 = tpu.matmul %366, %368, %cst_321 {dimension_numbers = #tpu.dot_dimension_numbers<[1], [0], [0], [1], [0, 0, 1, 1], [], []>} : vector<1x128xbf16>, vector<128x128xbf16>, vector<1x128xf32> -> vector<1x128xf32>
    %370 = arith.addf %364, %369 : vector<1x128xf32>
    %c8_322 = arith.constant 8 : index
    %c0_323 = arith.constant 0 : index
    %371 = tpu.strided_load %arg18[%c8_322, %c0_323] {strides = array<i32: 9, 1>} : memref<9x128xf32, #tpu.memory_space<vmem>>, vector<1x128xf32>
    %372 = arith.truncf %371 : vector<1x128xf32> to vector<1x128xbf16>
    %c8_324 = arith.constant 8 : index
    %c0_325 = arith.constant 0 : index
    %c0_326 = arith.constant 0 : index
    %373 = vector.load %arg8[%c8_324, %c0_325, %c0_326] : memref<9x128x128xbf16, #tpu.memory_space<vmem>>, vector<1x128x128xbf16>
    %374 = vector.shape_cast %373 : vector<1x128x128xbf16> to vector<128x128xbf16>
    %cst_327 = arith.constant dense<0.000000e+00> : vector<1x128xf32>
    %375 = tpu.matmul %372, %374, %cst_327 {dimension_numbers = #tpu.dot_dimension_numbers<[1], [0], [0], [1], [0, 0, 1, 1], [], []>} : vector<1x128xbf16>, vector<128x128xbf16>, vector<1x128xf32> -> vector<1x128xf32>
    %376 = arith.addf %370, %375 : vector<1x128xf32>
    %c0_328 = arith.constant 0 : index
    %c0_329 = arith.constant 0 : index
    %377 = vector.load %arg9[%c0_328, %c0_329] : memref<1x128xf32, #tpu.memory_space<vmem>>, vector<1x128xf32>
    %378 = arith.addf %376, %377 : vector<1x128xf32>
    %cst_330 = arith.constant 0.000000e+00 : f32
    %379 = vector.broadcast %cst_330 : f32 to vector<1x128xf32>
    %380 = arith.maximumf %378, %379 : vector<1x128xf32>
    %381 = arith.truncf %380 : vector<1x128xf32> to vector<1x128xbf16>
    %c0_331 = arith.constant 0 : index
    %c0_332 = arith.constant 0 : index
    %382 = vector.load %arg10[%c0_331, %c0_332] : memref<128x128xbf16, #tpu.memory_space<vmem>>, vector<128x128xbf16>
    %cst_333 = arith.constant dense<0.000000e+00> : vector<1x128xf32>
    %383 = tpu.matmul %381, %382, %cst_333 {dimension_numbers = #tpu.dot_dimension_numbers<[1], [0], [0], [1], [0, 0, 1, 1], [], []>} : vector<1x128xbf16>, vector<128x128xbf16>, vector<1x128xf32> -> vector<1x128xf32>
    %c0_334 = arith.constant 0 : index
    %c0_335 = arith.constant 0 : index
    %384 = vector.load %arg11[%c0_334, %c0_335] : memref<1x128xf32, #tpu.memory_space<vmem>>, vector<1x128xf32>
    %385 = arith.addf %383, %384 : vector<1x128xf32>
    %c0_336 = arith.constant 0 : index
    %c0_337 = arith.constant 0 : index
    %c0_338 = arith.constant 0 : index
    %386 = vector.load %arg12[%c0_336, %c0_337, %c0_338] : memref<1x1x128xf32, #tpu.memory_space<vmem>>, vector<1x1x128xf32>
    %387 = vector.shape_cast %386 : vector<1x1x128xf32> to vector<1x128xf32>
    %388 = vector.shape_cast %385 : vector<1x128xf32> to vector<1x1x128xf32>
    tpu.vector_store %arg12[%c0_336, %c0_337, %c0_338], %388 {strides = array<i32>} : memref<1x1x128xf32, #tpu.memory_space<vmem>>, vector<1x1x128xf32>,
    return
  }
  func.func @transform_0(%arg0: i32) -> (i32, i32, i32) {
    %c0_i32 = arith.constant 0 : i32
    %c0_i32_0 = arith.constant 0 : i32
    %c0_i32_1 = arith.constant 0 : i32
    return %arg0, %c0_i32, %c0_i32_0 : i32, i32, i32
  }
  func.func @transform_1(%arg0: i32) -> (i32, i32) {
    %c0_i32 = arith.constant 0 : i32
    %c0_i32_0 = arith.constant 0 : i32
    %c0_i32_1 = arith.constant 0 : i32
    return %c0_i32, %c0_i32_0 : i32, i32
  }
  func.func @transform_2(%arg0: i32) -> (i32, i32) {
    %c0_i32 = arith.constant 0 : i32
    %c0_i32_0 = arith.constant 0 : i32
    %c0_i32_1 = arith.constant 0 : i32
    return %c0_i32, %c0_i32_0 : i32, i32
  }
  func.func @transform_3(%arg0: i32) -> (i32, i32, i32) {
    %c0_i32 = arith.constant 0 : i32
    %c0_i32_0 = arith.constant 0 : i32
    %c0_i32_1 = arith.constant 0 : i32
    %c0_i32_2 = arith.constant 0 : i32
    return %c0_i32, %c0_i32_0, %c0_i32_1 : i32, i32, i32
  }
  func.func @transform_4(%arg0: i32) -> (i32, i32) {
    %c0_i32 = arith.constant 0 : i32
    %c0_i32_0 = arith.constant 0 : i32
    %c0_i32_1 = arith.constant 0 : i32
    return %c0_i32, %c0_i32_0 : i32, i32
  }
  func.func @transform_5(%arg0: i32) -> (i32, i32, i32) {
    %c0_i32 = arith.constant 0 : i32
    %c0_i32_0 = arith.constant 0 : i32
    %c0_i32_1 = arith.constant 0 : i32
    %c0_i32_2 = arith.constant 0 : i32
    return %c0_i32, %c0_i32_0, %c0_i32_1 : i32, i32, i32
  }
  func.func @transform_6(%arg0: i32) -> (i32, i32) {
    %c0_i32 = arith.constant 0 : i32
    %c0_i32_0 = arith.constant 0 : i32
    %c0_i32_1 = arith.constant 0 : i32
    return %c0_i32, %c0_i32_0 : i32, i32
  }
  func.func @transform_7(%arg0: i32) -> (i32, i32, i32) {
    %c0_i32 = arith.constant 0 : i32
    %c0_i32_0 = arith.constant 0 : i32
    %c0_i32_1 = arith.constant 0 : i32
    %c0_i32_2 = arith.constant 0 : i32
    return %c0_i32, %c0_i32_0, %c0_i32_1 : i32, i32, i32
  }
  func.func @transform_8(%arg0: i32) -> (i32, i32) {
    %c0_i32 = arith.constant 0 : i32
    %c0_i32_0 = arith.constant 0 : i32
    %c0_i32_1 = arith.constant 0 : i32
    return %c0_i32, %c0_i32_0 : i32, i32
  }
  func.func @transform_9(%arg0: i32) -> (i32, i32) {
    %c0_i32 = arith.constant 0 : i32
    %c0_i32_0 = arith.constant 0 : i32
    %c0_i32_1 = arith.constant 0 : i32
    return %c0_i32, %c0_i32_0 : i32, i32
  }
  func.func @transform_10(%arg0: i32) -> (i32, i32) {
    %c0_i32 = arith.constant 0 : i32
    %c0_i32_0 = arith.constant 0 : i32
    %c0_i32_1 = arith.constant 0 : i32
    return %c0_i32, %c0_i32_0 : i32, i32
  }
  func.func @transform_11(%arg0: i32) -> (i32, i32, i32) {
    %c0_i32 = arith.constant 0 : i32
    %c0_i32_0 = arith.constant 0 : i32
    %c0_i32_1 = arith.constant 0 : i32
    return %arg0, %c0_i32, %c0_i32_0 : i32, i32, i32
  }
}

</mosaic_0001>

<bundles_post_ra>
// kernel: simple_cnn_forward.1
= control target key start
LH: loop header
LB: loop body
LE: loop exit
PB: predicated region body
PF: predicated region fallthrough
CT: control target
= control target key end

     0   :  { %s11226_s0 = inlined_call_operand.vmem [shape: bf16[2,784,9], index: 0, kind: input, shape index: {}]   ;;  %s11227_s1 = inlined_call_operand.vmem [shape: bf16[9,32], index: 1, kind: input, shape index: {}]   ;;  %s11228_s2 = inlined_call_operand.vmem [shape: f32[1,32], index: 2, kind: input, shape index: {}]   ;;  %s11229_s3 = inlined_call_operand.vmem [shape: bf16[9,32,64], index: 3, kind: input, shape index: {}]   ;;  %s11230_s4 = inlined_call_operand.vmem [shape: f32[1,64], index: 4, kind: input, shape index: {}]   ;;  %s11231_s5 = inlined_call_operand.vmem [shape: bf16[9,64,128], index: 5, kind: input, shape index: {}]   ;;  %s11232_s6 = inlined_call_operand.vmem [shape: f32[1,128], index: 6, kind: input, shape index: {}]   ;;  %s11233_s7 = inlined_call_operand.vmem [shape: bf16[9,128,128], index: 7, kind: input, shape index: {}]   ;;  %s11234_s8 = inlined_call_operand.vmem [shape: f32[1,128], index: 8, kind: input, shape index: {}]   ;;  %s11235_s9 = inlined_call_operand.vmem [shape: bf16[128,128], index: 9, kind: input, shape index: {}]   ;;  %s11236_s10 = inlined_call_operand.vmem [shape: f32[1,128], index: 10, kind: input, shape index: {}]   ;;  %s11237_s11 = inlined_call_operand.hbm [shape: f32[2,1,128], index: 11, kind: output, shape index: {}]  }
   0x1   :  { %11257 = sst [smem:[#allocation40_spill]] %s11226_s0 }
   0x2   :  { %16 = vsyncpa [#allocation9], 0 }
   0x3   :  { %18 = vsyncpa [#allocation9 + $0x1], 0  ;;  %s9033_s17 = smov 0   ;;  %s9035_s18 = smov 0  }
   0x4   :  { %s9037_s19 = smov 0   ;;  %s9039_s20 = smov 0  }
   0x5 LB: > { %s9054_s21 = sadd.s32 4294967295, %s8967_s20   ;;  %s6861_s22 = sadd.s32 4294967294, %s8967_s20   ;;  %s8967_s20 = sphi %s9039_s20, %s11370_s20   ;;  %s8963_s19 = sphi %s9037_s19, %s11369_s19   ;;  %s8959_s18 = sphi %s9035_s18, %s11368_s18   ;;  %s8955_s17 = sphi %s9033_s17, %s11367_s17  }
   0x6   : > { %s9058_s23 = sadd.s32 1, %s8967_s20   ;;  %s267_s24 = sadd.s32 1, %s8963_s19 }
   0x7   : > { %s264_s25 = ssub.s32 %s8967_s20, %s9058_s23  ;;  %p277_p0 = scmp.ne.s32.totalorder %s8963_s19, %s8959_s18 }
   0x8   : > { %p265_p1 = scmp.eq.s32.totalorder %s264_s25, 0  ;;  %p278_p2 = scmp.eq.s32.totalorder %s9054_s21, 1 }
   0x9   : > { %p283_p3 = scmp.ne.s32.totalorder %s8959_s18, %s8955_s17  ;;  %p284_p4 = scmp.eq.s32.totalorder %s6861_s22, 1 }
   0xa   : > { %s9069_s26 = scalar_select %p265_p1, %s8963_s19, %s267_s24  }
   0xb   : > { %p9071_p5 = por %p278_p2, %p277_p0  ;;  %p9075_p6 = por %p284_p4, %p283_p3 }
   0xc   : > { %p6864_p7 = scmp.ge.s32.totalorder %s8967_s20, 1  ;;  %p340_p8 = scmp.lt.s32.totalorder %s8967_s20, 3 }
   0xe   : > { %p341_p9 = pnand %p6864_p7, %p340_p8 }
  0x10   : > { %344 = sbr.rel (%p341_p9) target bundleno = 2041 (0x7f9), region = 64 }
  0x15   : > { %v11238_v0 = vmov 0.0   ;;  %v8722_v1 = vld [vmem:[%s11227_s1] sm:$0x1f]   ;;  %vm939_vm0 = vcmask 1043456   ;;  %vm940_vm1 = vcmask 1044480   ;;  %v8970_v2 = vmov 65535  }
  0x16   : > { %7847 = vmatprep.subr.bf16.mxu0 %v11238_v0  ;;  %8677 = vmatprep.subr.bf16.mxu1 %v11238_v0  ;;  %v941_v3 = vsel %vm939_vm0, 4294967295, %v8970_v2  ;;  %vm8971_vm2 = vmmov 0   ;;  %p379_p10 = scmp.lt.s32.totalorder %s9054_s21, 1  ;;  %vm791_vm3 = vcmask 72704   ;;  %s11260_s0 = sld [smem:[#allocation40_spill]]  ;;  %vm385_vm4 = vcmask 261120  }
  0x17   : > { %7849 = vmatprep.mubr.msk.bf16.mxu0 %vm8971_vm2, %v11238_v0  ;;  %8041 = vmatprep.mubr.msk.bf16.mxu1 %vm8971_vm2, %v11238_v0  ;;  %v942_v4 = vsel %vm940_vm1, %v941_v3, 0  ;;  %386 = vst.msk [vmem:[#allocation3] sm:$0xff] %vm385_vm4, %v11238_v0  ;;  %387 = vst.msk [vmem:[#allocation3 + $0x8] sm:$0xff] %vm385_vm4, %v11238_v0  ;;  %v8754_v21 = vld [vmem:[%s11229_s3 + $0x18] sm:$0xff]   ;;  %v8755_v23 = vld [vmem:[%s11229_s3 + $0x10] sm:$0xff]   ;;  %vm1589_vm5 = vcmask 259072  }
  0x18   : > { %v944_v5 = vand.u32 %v8722_v1, %v942_v4  ;;  %s380_s12 = scalar_select %p379_p10, %s9054_s21, 1  ;;  %388 = vst.msk [vmem:[#allocation3 + $0x10] sm:$0xff] %vm385_vm4, %v11238_v0  ;;  %389 = vst.msk [vmem:[#allocation3 + $0x18] sm:$0xff] %vm385_vm4, %v11238_v0  ;;  %v9272_v37 = vld [vmem:[%s11228_s2] ss:$0 sm:$0xff]  ;;  %vm420_vm6 = vcmask 523264  }
  0x19   : > { %390 = vst.msk [vmem:[#allocation3 + $0x20] sm:$0xff] %vm385_vm4, %v11238_v0  ;;  %391 = vst.msk [vmem:[#allocation3 + $0x28] sm:$0xff] %vm385_vm4, %v11238_v0  ;;  %vm4413_vm7 = vcmask 522240   ;;  %s377_s15 = sand.u32 1, %s8959_s18   ;;  %s7488_s24 = sshll.u32 %s9054_s21, 4 }
  0x1a   : > { %7848 = vmatpush3.bf16.msra.mxu0 %v944_v5  ;;  %s8679_s13 = smul.u32 392, %s380_s12  ;;  %8678 = vmatpush3.bf16.msra.mxu1 %v944_v5  ;;  %392 = vst.msk [vmem:[#allocation3 + $0x30] sm:$0xff] %vm385_vm4, %v11238_v0  ;;  %393 = vst.msk [vmem:[#allocation3 + $0x38] sm:$0xff] %vm385_vm4, %v11238_v0  ;;  %s378_s25 = scalar_lea.vmem [#allocation8], %s377_s15 }
  0x1b   : > { %394 = vst.msk [vmem:[#allocation3 + $0x40] sm:$0xff] %vm385_vm4, %v11238_v0  ;;  %395 = vst.msk [vmem:[#allocation3 + $0x48] sm:$0xff] %vm385_vm4, %v11238_v0  ;;  %8045 = vmatprep.subr.bf16.mxu1 %v8754_v21  ;;  %s6806_s29 = sshll.u32 %s378_s25, 4  ;;  %s6794_s14 = scalar_lea.sflag [#allocation9], %s377_s15  ;;  %s11187_s29 = int_to_ptr.vmem [resolvable:$true] %s6806_s29 }
  0x1c   : > { %s9095_s16 = scalar_lea.vmem %s11260_s0, %s8679_s13  ;;  %396 = vst.msk [vmem:[#allocation3 + $0x50] sm:$0xff] %vm385_vm4, %v11238_v0  ;;  %397 = vst.msk [vmem:[#allocation3 + $0x58] sm:$0xff] %vm385_vm4, %v11238_v0  ;;  %s11185_s13 = scalar_lea.hbm %s11237_s11, %s7488_s24 }
  0x1d   : > { %v8723_v6 = vld [vmem:[%s9095_s16] sm:$0xff]   ;;  %v8724_v7 = vld [vmem:[%s9095_s16 + $0x8] sm:$0xff]   ;;  %v8725_v8 = vld [vmem:[%s9095_s16 + $0x10] sm:$0xff]   ;;  %398 = vst.msk [vmem:[#allocation3 + $0x60] sm:$0xff] %vm385_vm4, %v11238_v0  ;;  %s8907_s22 = scalar_lea.vmem %s11187_s29, 16  ;;  %s8972_s21 = smov [#allocation8]  }
  0x1e   : > { %7850 = vmatmul.mubr.msk.bf16.vlgmr.msra.gmra.mxu0 %vm791_vm3, %v8723_v6  ;;  %v8726_v9 = vld [vmem:[%s9095_s16 + $0x18] sm:$0xff]   ;;  %v8727_v10 = vld [vmem:[%s9095_s16 + $0x20] sm:$0xff]   ;;  %v8728_v11 = vld [vmem:[%s9095_s16 + $0x28] sm:$0xff]   ;;  %399 = vst.msk [vmem:[#allocation3 + $0x68] sm:$0xff] %vm385_vm4, %v11238_v0  ;;  %p8908_p11 = scmp.ne.s32.totalorder %s11187_s29, %s8907_s22 }
  0x1f   : > { %7853 = vmatprep.mubr.msk.bf16.mxu0 %vm8971_vm2, %v11238_v0  ;;  %v8729_v12 = vld [vmem:[%s9095_s16 + $0x30] sm:$0xff]   ;;  %v8730_v13 = vld [vmem:[%s9095_s16 + $0x38] sm:$0xff]   ;;  %v8731_v14 = vld [vmem:[%s9095_s16 + $0x40] sm:$0xff]   ;;  %400 = vst.msk [vmem:[#allocation3 + $0x70] sm:$0xff] %vm385_vm4, %v11238_v0 }
  0x20   : > { %401 = vst.msk [vmem:[#allocation3 + $0x78] sm:$0xff] %vm385_vm4, %v11238_v0  ;;  %402 = vst.msk [vmem:[#allocation3 + $0x80] sm:$0xff] %vm385_vm4, %v11238_v0  ;;  %v8732_v15 = vld [vmem:[%s9095_s16 + $0x48] sm:$0xff]   ;;  %v8733_v16 = vld [vmem:[%s9095_s16 + $0x50] sm:$0xff]   ;;  %p8909_p12 = pnand %p8908_p11, %p9071_p5 }
  0x21   : > { %403 = vst.msk [vmem:[#allocation3 + $0x88] sm:$0xff] %vm385_vm4, %v11238_v0  ;;  %404 = vst.msk [vmem:[#allocation3 + $0x90] sm:$0xff] %vm385_vm4, %v11238_v0  ;;  %v8734_v17 = vld [vmem:[%s9095_s16 + $0x58] sm:$0xff]   ;;  %v8735_v18 = vld [vmem:[%s9095_s16 + $0x60] sm:$0xff]  }
  0x22   : > { %405 = vst.msk [vmem:[#allocation3 + $0x98] sm:$0xff] %vm385_vm4, %v11238_v0  ;;  %406 = vst.msk [vmem:[#allocation3 + $0xa0] sm:$0xff] %vm385_vm4, %v11238_v0  ;;  %v8736_v19 = vld [vmem:[%s9095_s16 + $0x68] sm:$0xff]   ;;  %v8753_v20 = vld [vmem:[%s9095_s16 + $0x180] sm:$0xff]   ;;  %p8910_p13 = pneg %p8909_p12 }
  0x23   : > { %407 = vst.msk [vmem:[#allocation3 + $0xa8] sm:$0xff] %vm385_vm4, %v11238_v0  ;;  %408 = vst.msk [vmem:[#allocation3 + $0xb0] sm:$0xff] %vm385_vm4, %v11238_v0  ;;  %v8737_v22 = vld [vmem:[%s9095_s16 + $0x70] sm:$0xff]   ;;  %8042 = vmatmul.mubr.msk.bf16.vlgmr.msra.gmra.mxu1 %vm791_vm3, %v8753_v20  ;;  %v1950_v25 = vld [vmem:[#allocation3 + $0x9] sm:$0xff] }
  0x24   : > { %409 = vst.msk [vmem:[#allocation3 + $0xb8] sm:$0xff] %vm385_vm4, %v11238_v0  ;;  %410 = vst.msk [vmem:[#allocation3 + $0xc0] sm:$0xff] %vm385_vm4, %v11238_v0  ;;  %8046 = vmatpush3.bf16.msra.mxu1 %v8754_v21  ;;  %v1949_v24 = vld [vmem:[#allocation3 + $0x1] sm:$0xff]  ;;  %v8739_v28 = vld [vmem:[%s9095_s16 + $0x80] sm:$0xff]  }
  0x25   : > { %411 = vst.msk [vmem:[#allocation3 + $0xc8] sm:$0xff] %vm385_vm4, %v11238_v0  ;;  %412 = vst.msk [vmem:[#allocation3 + $0xd0] sm:$0xff] %vm385_vm4, %v11238_v0  ;;  %8047 = vmatprep.subr.bf16.mxu1 %v8755_v23  ;;  %v1977_v26 = vpack.c.bf16 %v1950_v25, %v1949_v24  ;;  %v8738_v27 = vld [vmem:[%s9095_s16 + $0x78] sm:$0xff]   ;;  %v8740_v29 = vld [vmem:[%s9095_s16 + $0x88] sm:$0xff]  }
  0x26   : > { %7854 = vmatmul.mubr.msk.bf16.gmra.mxu0 %vm791_vm3, %v8724_v7  ;;  %413 = vst.msk [vmem:[#allocation3 + $0xd8] sm:$0xff] %vm385_vm4, %v11238_v0  ;;  %414 = vst.msk [vmem:[#allocation3 + $0xe0] sm:$0xff] %vm385_vm4, %v11238_v0  ;;  %v8741_v30 = vld [vmem:[%s9095_s16 + $0x90] sm:$0xff]   ;;  %v8742_v31 = vld [vmem:[%s9095_s16 + $0x98] sm:$0xff]  }
  0x27   : > { %7857 = vmatprep.mubr.msk.bf16.mxu0 %vm8971_vm2, %v11238_v0  ;;  %415 = vst.msk [vmem:[#allocation3 + $0xe8] sm:$0xff] %vm385_vm4, %v11238_v0  ;;  %416 = vst.msk [vmem:[#allocation3 + $0xf0] sm:$0xff] %vm385_vm4, %v11238_v0  ;;  %8049 = vmatprep.mubr.msk.bf16.mxu1 %vm385_vm4, %v1977_v26  ;;  %v8743_v32 = vld [vmem:[%s9095_s16 + $0xa0] sm:$0xff]   ;;  %v8744_v33 = vld [vmem:[%s9095_s16 + $0xa8] sm:$0xff]  }
  0x28   : > { %417 = vst.msk [vmem:[#allocation3 + $0xf8] sm:$0xff] %vm385_vm4, %v11238_v0  ;;  %418 = vst.msk [vmem:[#allocation3 + $0x100] sm:$0xff] %vm385_vm4, %v11238_v0  ;;  %8048 = vmatpush3.bf16.msra.mxu1 %v8755_v23  ;;  %v8745_v34 = vld [vmem:[%s9095_s16 + $0xb0] sm:$0xff]   ;;  %v8746_v35 = vld [vmem:[%s9095_s16 + $0xb8] sm:$0xff]  }
  0x29   : > { %v8747_v36 = vld [vmem:[%s9095_s16 + $0xc0] sm:$0xff]   ;;  %v8748_v43 = vld [vmem:[%s9095_s16 + $0xc8] sm:$0xff]   ;;  %v8749_v52 = vld [vmem:[%s9095_s16 + $0xd0] sm:$0xff]  }
  0x2a   : > { %v8750_v61 = vld [vmem:[%s9095_s16 + $0xd8] sm:$0xff]   ;;  %v8751_v7 = vld [vmem:[%s9095_s16 + $0xe0] sm:$0xff]   ;;  %v8752_v24 = vld [vmem:[%s9095_s16 + $0xe8] sm:$0xff]  }
  0x2e   : > { %7858 = vmatmul.mubr.msk.bf16.gmra.mxu0 %vm791_vm3, %v8725_v8 }
  0x2f   : > { %7861 = vmatprep.mubr.msk.bf16.mxu0 %vm8971_vm2, %v11238_v0 }
  0x36   : > { %7862 = vmatmul.mubr.msk.bf16.gmra.mxu0 %vm791_vm3, %v8726_v9 }
  0x37   : > { %7865 = vmatprep.mubr.msk.bf16.mxu0 %vm8971_vm2, %v11238_v0 }
  0x3e   : > { %7866 = vmatmul.mubr.msk.bf16.gmra.mxu0 %vm791_vm3, %v8727_v10 }
  0x3f   : > { %7869 = vmatprep.mubr.msk.bf16.mxu0 %vm8971_vm2, %v11238_v0 }
  0x46   : > { %7870 = vmatmul.mubr.msk.bf16.gmra.mxu0 %vm791_vm3, %v8728_v11 }
  0x47   : > { %7873 = vmatprep.mubr.msk.bf16.mxu0 %vm8971_vm2, %v11238_v0 }
  0x4e   : > { %7874 = vmatmul.mubr.msk.bf16.gmra.mxu0 %vm791_vm3, %v8729_v12 }
  0x4f   : > { %7877 = vmatprep.mubr.msk.bf16.mxu0 %vm8971_vm2, %v11238_v0 }
  0x56   : > { %7878 = vmatmul.mubr.msk.bf16.gmra.mxu0 %vm791_vm3, %v8730_v13 }
  0x57   : > { %7881 = vmatprep.mubr.msk.bf16.mxu0 %vm8971_vm2, %v11238_v0 }
  0x5e   : > { %7882 = vmatmul.mubr.msk.bf16.gmra.mxu0 %vm791_vm3, %v8731_v14 }
  0x5f   : > { %7885 = vmatprep.mubr.msk.bf16.mxu0 %vm8971_vm2, %v11238_v0 }
  0x66   : > { %7886 = vmatmul.mubr.msk.bf16.gmra.mxu0 %vm791_vm3, %v8732_v15 }
  0x67   : > { %7889 = vmatprep.mubr.msk.bf16.mxu0 %vm8971_vm2, %v11238_v0 }
  0x6e   : > { %7890 = vmatmul.mubr.msk.bf16.gmra.mxu0 %vm791_vm3, %v8733_v16 }
  0x6f   : > { %7893 = vmatprep.mubr.msk.bf16.mxu0 %vm8971_vm2, %v11238_v0 }
  0x76   : > { %7894 = vmatmul.mubr.msk.bf16.gmra.mxu0 %vm791_vm3, %v8734_v17 }
  0x77   : > { %7897 = vmatprep.mubr.msk.bf16.mxu0 %vm8971_vm2, %v11238_v0 }
  0x7e   : > { %7898 = vmatmul.mubr.msk.bf16.gmra.mxu0 %vm791_vm3, %v8735_v18 }
  0x7f   : > { %7901 = vmatprep.mubr.msk.bf16.mxu0 %vm8971_vm2, %v11238_v0 }
  0x86   : > { %7902 = vmatmul.mubr.msk.bf16.gmra.mxu0 %vm791_vm3, %v8736_v19 }
  0x87   : > { %7905 = vmatprep.mubr.msk.bf16.mxu0 %vm8971_vm2, %v11238_v0 }
  0x8e   : > { %7906 = vmatmul.mubr.msk.bf16.gmra.mxu0 %vm791_vm3, %v8737_v22 }
  0x8f   : > { %7909 = vmatprep.mubr.msk.bf16.mxu0 %vm8971_vm2, %v11238_v0 }
  0x96   : > { %7910 = vmatmul.mubr.msk.bf16.gmra.mxu0 %vm791_vm3, %v8738_v27 }
  0x97   : > { %7913 = vmatprep.mubr.msk.bf16.mxu0 %vm8971_vm2, %v11238_v0 }
  0x9e   : > { %7914 = vmatmul.mubr.msk.bf16.gmra.mxu0 %vm791_vm3, %v8739_v28 }
  0x9f   : > { %7917 = vmatprep.mubr.msk.bf16.mxu0 %vm8971_vm2, %v11238_v0 }
  0xa6   : > { %7918 = vmatmul.mubr.msk.bf16.gmra.mxu0 %vm791_vm3, %v8740_v29 }
  0xa7   : > { %7921 = vmatprep.mubr.msk.bf16.mxu0 %vm8971_vm2, %v11238_v0 }
  0xae   : > { %7922 = vmatmul.mubr.msk.bf16.gmra.mxu0 %vm791_vm3, %v8741_v30 }
  0xaf   : > { %7925 = vmatprep.mubr.msk.bf16.mxu0 %vm8971_vm2, %v11238_v0 }
  0xb6   : > { %7926 = vmatmul.mubr.msk.bf16.gmra.mxu0 %vm791_vm3, %v8742_v31 }
  0xb7   : > { %7929 = vmatprep.mubr.msk.bf16.mxu0 %vm8971_vm2, %v11238_v0 }
  0xbe   : > { %7930 = vmatmul.mubr.msk.bf16.gmra.mxu0 %vm791_vm3, %v8743_v32 }
  0xbf   : > { %7933 = vmatprep.mubr.msk.bf16.mxu0 %vm8971_vm2, %v11238_v0 }
  0xc6   : > { %7934 = vmatmul.mubr.msk.bf16.gmra.mxu0 %vm791_vm3, %v8744_v33 }
  0xc7   : > { %7937 = vmatprep.mubr.msk.bf16.mxu0 %vm8971_vm2, %v11238_v0 }
  0xce   : > { %7938 = vmatmul.mubr.msk.bf16.gmra.mxu0 %vm791_vm3, %v8745_v34 }
  0xcf   : > { %7941 = vmatprep.mubr.msk.bf16.mxu0 %vm8971_vm2, %v11238_v0 }
  0xd6   : > { %7942 = vmatmul.mubr.msk.bf16.gmra.mxu0 %vm791_vm3, %v8746_v35 }
  0xd7   : > { %7945 = vmatprep.mubr.msk.bf16.mxu0 %vm8971_vm2, %v11238_v0 }
  0xde   : > { %v980_v38 = vpop.f32.mrf.mxu0  ;;  %7946 = vmatmul.mubr.msk.bf16.gmra.mxu0 %vm791_vm3, %v8747_v36 }
  0xdf   : > { %v981_v39 = vadd.f32 %v9272_v37, %v980_v38  ;;  %7949 = vmatprep.mubr.msk.bf16.mxu0 %vm8971_vm2, %v11238_v0 }
  0xe0   : > { %v7851_v40 = vpop.f32.mrf.mxu0 }
  0xe1   : > { %v1371_v41 = vmax.f32 %v981_v39, 0.0  ;;  %v8756_v40 = vld [vmem:[%s9095_s16 + $0xf0] sm:$0xff]  }
  0xe2   : > { %v983_v42 = vpop.f32.mrf.mxu0 }
  0xe3   : > { %1469 = vst.msk [vmem:[#allocation2] sm:$0xff] %vm385_vm4, %v1371_v41  ;;  %v984_v44 = vadd.f32 %v9272_v37, %v983_v42 }
  0xe4   : > { %v7852_v45 = vpop.f32.mrf.mxu0 }
  0xe5   : > { %v1372_v46 = vmax.f32 %v984_v44, 0.0 }
  0xe6   : > { %v988_v47 = vpop.f32.mrf.mxu0  ;;  %7950 = vmatmul.mubr.msk.bf16.gmra.mxu0 %vm791_vm3, %v8748_v43 }
  0xe7   : > { %1470 = vst.msk [vmem:[#allocation2 + $0x8] sm:$0xff] %vm385_vm4, %v1372_v46  ;;  %v989_v48 = vadd.f32 %v9272_v37, %v988_v47  ;;  %7953 = vmatprep.mubr.msk.bf16.mxu0 %vm8971_vm2, %v11238_v0 }
  0xe8   : > { %v7855_v49 = vpop.f32.mrf.mxu0 }
  0xe9   : > { %v1373_v50 = vmax.f32 %v989_v48, 0.0 }
  0xea   : > { %v991_v51 = vpop.f32.mrf.mxu0 }
  0xeb   : > { %1471 = vst.msk [vmem:[#allocation2 + $0x10] sm:$0xff] %vm385_vm4, %v1373_v50  ;;  %v992_v53 = vadd.f32 %v9272_v37, %v991_v51 }
  0xec   : > { %v7856_v54 = vpop.f32.mrf.mxu0 }
  0xed   : > { %v1374_v55 = vmax.f32 %v992_v53, 0.0 }
  0xee   : > { %v996_v56 = vpop.f32.mrf.mxu0  ;;  %7954 = vmatmul.mubr.msk.bf16.gmra.mxu0 %vm791_vm3, %v8749_v52  ;;  %v1567_v9 = vld [vmem:[#allocation2] ss:$2 sm:$0xff]  ;;  %v1571_v10 = vld [vmem:[#allocation2 + $0x1] ss:$2 sm:$0xff]  ;;  %v8757_v52 = vld [vmem:[%s9095_s16 + $0xf8] sm:$0xff]  }
  0xef   : > { %1472 = vst.msk [vmem:[#allocation2 + $0x18] sm:$0xff] %vm385_vm4, %v1374_v55  ;;  %v997_v57 = vadd.f32 %v9272_v37, %v996_v56  ;;  %7957 = vmatprep.mubr.msk.bf16.mxu0 %vm8971_vm2, %v11238_v0  ;;  %v1574_v16 = vmax.f32 %v1567_v9, %v1571_v10  ;;  %v8774_v55 = vld [vmem:[%s11229_s3 + $0x78] sm:$0xff]  }
  0xf0   : > { %v7859_v58 = vpop.f32.mrf.mxu0  ;;  %8269 = vmatprep.subr.bf16.mxu0 %v8774_v55 }
  0xf1   : > { %v1375_v59 = vmax.f32 %v997_v57, 0.0  ;;  %8270 = vmatpush3.bf16.msra.mxu0 %v8774_v55 }
  0xf2   : > { %v999_v60 = vpop.f32.mrf.mxu0 }
  0xf3   : > { %1473 = vst.msk [vmem:[#allocation2 + $0x20] sm:$0xff] %vm385_vm4, %v1375_v59  ;;  %v1000_v62 = vadd.f32 %v9272_v37, %v999_v60 }
  0xf4   : > { %v7860_v63 = vpop.f32.mrf.mxu0 }
  0xf5   : > { %v1376_v1 = vmax.f32 %v1000_v62, 0.0  ;;  %v8775_v62 = vld [vmem:[%s11229_s3 + $0x70] sm:$0xff]  }
  0xf6   : > { %v1004_v2 = vpop.f32.mrf.mxu0  ;;  %7958 = vmatmul.mubr.msk.bf16.gmra.mxu0 %vm791_vm3, %v8750_v61  ;;  %v1569_v19 = vld [vmem:[#allocation2 + $0x10] ss:$2 sm:$0x3f]  ;;  %v1573_v20 = vld [vmem:[#allocation2 + $0x11] ss:$2 sm:$0x3f]  ;;  %8271 = vmatprep.subr.bf16.mxu0 %v8775_v62 }
  0xf7   : > { %1474 = vst.msk [vmem:[#allocation2 + $0x28] sm:$0xff] %vm385_vm4, %v1376_v1  ;;  %v1005_v3 = vadd.f32 %v9272_v37, %v1004_v2  ;;  %7961 = vmatprep.mubr.msk.bf16.mxu0 %vm8971_vm2, %v11238_v0  ;;  %v1575_v28 = vmax.f32 %v1569_v19, %v1573_v20  ;;  %8272 = vmatpush3.bf16.msra.mxu0 %v8775_v62  ;;  %v8762_v62 = vld [vmem:[%s9095_s16 + $0x120] sm:$0xff]  }
  0xf8   : > { %v7863_v4 = vpop.f32.mrf.mxu0 }
  0xf9   : > { %v1377_v5 = vmax.f32 %v1005_v3, 0.0  ;;  %v8758_v4 = vld [vmem:[%s9095_s16 + $0x100] sm:$0xff]  }
  0xfa   : > { %v1007_v6 = vpop.f32.mrf.mxu0 }
  0xfb   : > { %1475 = vst.msk [vmem:[#allocation2 + $0x30] sm:$0xff] %vm385_vm4, %v1377_v5  ;;  %v1008_v8 = vadd.f32 %v9272_v37, %v1007_v6 }
  0xfc   : > { %v7864_v11 = vpop.f32.mrf.mxu0 }
  0xfd   : > { %v1378_v12 = vmax.f32 %v1008_v8, 0.0 }
  0xfe   : > { %v1577_v13 = vld [vmem:[#allocation2 + $0x1c] ss:$2 sm:$0xff]  ;;  %v1581_v14 = vld [vmem:[#allocation2 + $0x1d] ss:$2 sm:$0xff]  ;;  %v1012_v15 = vpop.f32.mrf.mxu0  ;;  %7962 = vmatmul.mubr.msk.bf16.gmra.mxu0 %vm791_vm3, %v8751_v7 }
  0xff   : > { %v1584_v17 = vmax.f32 %v1577_v13, %v1581_v14  ;;  %1476 = vst.msk [vmem:[#allocation2 + $0x38] sm:$0xff] %vm385_vm4, %v1378_v12  ;;  %v1013_v18 = vadd.f32 %v9272_v37, %v1012_v15  ;;  %7965 = vmatprep.mubr.msk.bf16.mxu0 %vm8971_vm2, %v11238_v0 }
 0x100   : > { %v7867_v21 = vpop.f32.mrf.mxu0 }
 0x101   : > { %v1586_v22 = vmax.f32 %v1574_v16, %v1584_v17  ;;  %v1379_v23 = vmax.f32 %v1013_v18, 0.0 }
 0x102   : > { %v1579_v25 = vld [vmem:[#allocation2 + $0x2c] ss:$2 sm:$0x3f]  ;;  %v1583_v26 = vld [vmem:[#allocation2 + $0x2d] ss:$2 sm:$0x3f]  ;;  %v1015_v27 = vpop.f32.mrf.mxu0 }
 0x103   : > { %1588 = vst.msk [vmem:[#allocation3 + $0x11] sm:$0xff] %vm385_vm4, %v1586_v22  ;;  %v1585_v29 = vmax.f32 %v1579_v25, %v1583_v26  ;;  %1477 = vst.msk [vmem:[#allocation2 + $0x40] sm:$0xff] %vm385_vm4, %v1379_v23  ;;  %v1016_v30 = vadd.f32 %v9272_v37, %v1015_v27  ;;  %v8759_v23 = vld [vmem:[%s9095_s16 + $0x108] sm:$0xff]  }
 0x104   : > { %v7868_v31 = vpop.f32.mrf.mxu0 }
 0x105   : > { %v1587_v32 = vmax.f32 %v1575_v28, %v1585_v29  ;;  %v1380_v33 = vmax.f32 %v1016_v30, 0.0 }
 0x106   : > { %v1020_v34 = vpop.f32.mrf.mxu0  ;;  %7966 = vmatmul.mubr.msk.bf16.gmra.mxu0 %vm791_vm3, %v8752_v24 }
 0x107   : > { %1590 = vst.msk [vmem:[#allocation3 + $0x19] sm:$0x3f] %vm1589_vm5, %v1587_v32  ;;  %v1021_v35 = vadd.f32 %v9272_v37, %v1020_v34  ;;  %7969 = vmatprep.mubr.msk.bf16.mxu0 %vm8971_vm2, %v11238_v0  ;;  %v8760_v34 = vld [vmem:[%s9095_s16 + $0x110] sm:$0xff]  }
 0x108   : > { %1478 = vst.msk [vmem:[#allocation2 + $0x48] sm:$0xff] %vm385_vm4, %v1380_v33  ;;  %v7871_v36 = vpop.f32.mrf.mxu0 }
 0x109   : > { %v1381_v38 = vmax.f32 %v1021_v35, 0.0 }
 0x10a   : > { %v1023_v39 = vpop.f32.mrf.mxu0  ;;  %v1951_v45 = vld [vmem:[#allocation3 + $0x11] sm:$0xff] }
 0x10b   : > { %1479 = vst.msk [vmem:[#allocation2 + $0x50] sm:$0xff] %vm385_vm4, %v1381_v38  ;;  %v1024_v41 = vadd.f32 %v9272_v37, %v1023_v39  ;;  %v1592_v59 = vld [vmem:[#allocation2 + $0x38] ss:$2 sm:$0xff]  ;;  %v1596_v60 = vld [vmem:[#allocation2 + $0x39] ss:$2 sm:$0xff] }
 0x10c   : > { %v7872_v42 = vpop.f32.mrf.mxu0  ;;  %v1599_v5 = vmax.f32 %v1592_v59, %v1596_v60 }
 0x10d   : > { %v1382_v43 = vmax.f32 %v1024_v41, 0.0 }
 0x10e   : > { %v1028_v44 = vpop.f32.mrf.mxu0  ;;  %7970 = vmatmul.mubr.msk.bf16.gmra.mxu0 %vm791_vm3, %v8756_v40  ;;  %v1952_v46 = vld [vmem:[#allocation3 + $0x19] sm:$0xff] }
 0x10f   : > { %1480 = vst.msk [vmem:[#allocation2 + $0x58] sm:$0xff] %vm385_vm4, %v1382_v43  ;;  %v1029_v47 = vadd.f32 %v9272_v37, %v1028_v44  ;;  %v1978_v48 = vpack.c.bf16 %v1952_v46, %v1951_v45  ;;  %7973 = vmatprep.mubr.msk.bf16.mxu0 %vm8971_vm2, %v11238_v0  ;;  %v8761_v45 = vld [vmem:[%s9095_s16 + $0x118] sm:$0xff]  }
 0x110   : > { %v7875_v49 = vpop.f32.mrf.mxu0 }
 0x111   : > { %v1383_v50 = vmax.f32 %v1029_v47, 0.0  ;;  %8050 = vmatmul.mubr.msk.bf16.vlgmr.msra.gmra.mxu1 %vm385_vm4, %v1978_v48 }
 0x112   : > { %v1031_v51 = vpop.f32.mrf.mxu0  ;;  %v1594_v8 = vld [vmem:[#allocation2 + $0x48] ss:$2 sm:$0x3f]  ;;  %v1598_v9 = vld [vmem:[#allocation2 + $0x49] ss:$2 sm:$0x3f] }
 0x113   : > { %1481 = vst.msk [vmem:[#allocation2 + $0x60] sm:$0xff] %vm385_vm4, %v1383_v50  ;;  %v1032_v53 = vadd.f32 %v9272_v37, %v1031_v51  ;;  %v1600_v16 = vmax.f32 %v1594_v8, %v1598_v9 }
 0x114   : > { %v7876_v54 = vpop.f32.mrf.mxu0 }
 0x115   : > { %v1384_v56 = vmax.f32 %v1032_v53, 0.0 }
 0x116   : > { %v1036_v57 = vpop.f32.mrf.mxu0  ;;  %7974 = vmatmul.mubr.msk.bf16.gmra.mxu0 %vm791_vm3, %v8757_v52 }
 0x117   : > { %1482 = vst.msk [vmem:[#allocation2 + $0x68] sm:$0xff] %vm385_vm4, %v1384_v56  ;;  %v1037_v58 = vadd.f32 %v9272_v37, %v1036_v57  ;;  %7977 = vmatprep.mubr.msk.bf16.mxu0 %vm8971_vm2, %v11238_v0 }
 0x118   : > { %v7879_v61 = vpop.f32.mrf.mxu0 }
 0x119   : > { %v1385_v63 = vmax.f32 %v1037_v58, 0.0 }
 0x11a   : > { %v1602_v1 = vld [vmem:[#allocation2 + $0x54] ss:$2 sm:$0xff]  ;;  %v1606_v2 = vld [vmem:[#allocation2 + $0x55] ss:$2 sm:$0xff]  ;;  %v1039_v3 = vpop.f32.mrf.mxu0 }
 0x11b   : > { %v1609_v6 = vmax.f32 %v1602_v1, %v1606_v2  ;;  %1483 = vst.msk [vmem:[#allocation2 + $0x70] sm:$0xff] %vm385_vm4, %v1385_v63  ;;  %v1040_v7 = vadd.f32 %v9272_v37, %v1039_v3 }
 0x11c   : > { %v7880_v10 = vpop.f32.mrf.mxu0 }
 0x11d   : > { %v1611_v11 = vmax.f32 %v1599_v5, %v1609_v6  ;;  %v1386_v12 = vmax.f32 %v1040_v7, 0.0 }
 0x11e   : > { %v1604_v13 = vld [vmem:[#allocation2 + $0x64] ss:$2 sm:$0x3f]  ;;  %v1608_v14 = vld [vmem:[#allocation2 + $0x65] ss:$2 sm:$0x3f]  ;;  %v1044_v15 = vpop.f32.mrf.mxu0  ;;  %7978 = vmatmul.mubr.msk.bf16.gmra.mxu0 %vm791_vm3, %v8758_v4 }
 0x11f   : > { %1613 = vst.msk [vmem:[#allocation3 + $0x21] sm:$0xff] %vm385_vm4, %v1611_v11  ;;  %v1610_v17 = vmax.f32 %v1604_v13, %v1608_v14  ;;  %1484 = vst.msk [vmem:[#allocation2 + $0x78] sm:$0xff] %vm385_vm4, %v1386_v12  ;;  %v1045_v18 = vadd.f32 %v9272_v37, %v1044_v15  ;;  %7981 = vmatprep.mubr.msk.bf16.mxu0 %vm8971_vm2, %v11238_v0  ;;  %v8763_v14 = vld [vmem:[%s9095_s16 + $0x128] sm:$0xff]  }
 0x120   : > { %v7883_v19 = vpop.f32.mrf.mxu0 }
 0x121   : > { %v1612_v20 = vmax.f32 %v1600_v16, %v1610_v17  ;;  %v1387_v21 = vmax.f32 %v1045_v18, 0.0 }
 0x122   : > { %v1047_v22 = vpop.f32.mrf.mxu0 }
 0x123   : > { %1614 = vst.msk [vmem:[#allocation3 + $0x29] sm:$0x3f] %vm1589_vm5, %v1612_v20  ;;  %v1048_v24 = vadd.f32 %v9272_v37, %v1047_v22 }
 0x124   : > { %1485 = vst.msk [vmem:[#allocation2 + $0x80] sm:$0xff] %vm385_vm4, %v1387_v21  ;;  %v7884_v25 = vpop.f32.mrf.mxu0 }
 0x125   : > { %v1388_v26 = vmax.f32 %v1048_v24, 0.0  ;;  %v1364_v25 = vpop.f32.mrf.mxu1 }
 0x126   : > { %v1052_v27 = vpop.f32.mrf.mxu0  ;;  %7982 = vmatmul.mubr.msk.bf16.gmra.mxu0 %vm791_vm3, %v8759_v23  ;;  %v1953_v32 = vld [vmem:[#allocation3 + $0x21] sm:$0xff] }
 0x127   : > { %1486 = vst.msk [vmem:[#allocation2 + $0x88] sm:$0xff] %vm385_vm4, %v1388_v26  ;;  %v1053_v28 = vadd.f32 %v9272_v37, %v1052_v27  ;;  %7985 = vmatprep.mubr.msk.bf16.mxu0 %vm8971_vm2, %v11238_v0  ;;  %v1616_v47 = vld [vmem:[#allocation2 + $0x70] ss:$2 sm:$0xff]  ;;  %v1620_v48 = vld [vmem:[#allocation2 + $0x71] ss:$2 sm:$0xff] }
 0x128   : > { %v7887_v29 = vpop.f32.mrf.mxu0  ;;  %v1623_v54 = vmax.f32 %v1616_v47, %v1620_v48  ;;  %v8764_v27 = vld [vmem:[%s9095_s16 + $0x130] sm:$0xff]   ;;  %v8765_v47 = vld [vmem:[%s9095_s16 + $0x138] sm:$0xff]  }
 0x129   : > { %v1389_v30 = vmax.f32 %v1053_v28, 0.0  ;;  %v8043_v29 = vpop.f32.mrf.mxu1 }
 0x12a   : > { %v1055_v31 = vpop.f32.mrf.mxu0  ;;  %v1954_v33 = vld [vmem:[#allocation3 + $0x29] sm:$0xff] }
 0x12b   : > { %1487 = vst.msk [vmem:[#allocation2 + $0x90] sm:$0xff] %vm385_vm4, %v1389_v30  ;;  %v1056_v35 = vadd.f32 %v9272_v37, %v1055_v31  ;;  %v9364_v36 = vpack.c.bf16 %v1954_v33, %v1953_v32  ;;  %v1367_v32 = vpop.f32.mrf.mxu1 }
 0x12c   : > { %v7888_v38 = vpop.f32.mrf.mxu0 }
 0x12d   : > { %v1390_v39 = vmax.f32 %v1056_v35, 0.0  ;;  %8053 = vmatprep.mubr.msk.bf16.mxu1 %vm385_vm4, %v9364_v36  ;;  %v1365_v35 = vadd.f32 %v9272_v37, %v1364_v25  ;;  %v8044_v38 = vpop.f32.mrf.mxu1 }
 0x12e   : > { %v1060_v40 = vpop.f32.mrf.mxu0  ;;  %7986 = vmatmul.mubr.msk.bf16.gmra.mxu0 %vm791_vm3, %v8760_v34  ;;  %v1618_v57 = vld [vmem:[#allocation2 + $0x80] ss:$2 sm:$0x3f]  ;;  %v1622_v58 = vld [vmem:[#allocation2 + $0x81] ss:$2 sm:$0x3f] }
 0x12f   : > { %1488 = vst.msk [vmem:[#allocation2 + $0x98] sm:$0xff] %vm385_vm4, %v1390_v39  ;;  %v1061_v41 = vadd.f32 %v9272_v37, %v1060_v40  ;;  %7989 = vmatprep.mubr.msk.bf16.mxu0 %vm8971_vm2, %v11238_v0  ;;  %v1624_v3 = vmax.f32 %v1618_v57, %v1622_v58 }
 0x130   : > { %v7891_v42 = vpop.f32.mrf.mxu0 }
 0x131   : > { %v1391_v43 = vmax.f32 %v1061_v41, 0.0 }
 0x132   : > { %v1063_v44 = vpop.f32.mrf.mxu0 }
 0x133   : > { %1489 = vst.msk [vmem:[#allocation2 + $0xa0] sm:$0xff] %vm385_vm4, %v1391_v43  ;;  %v1064_v46 = vadd.f32 %v9272_v37, %v1063_v44  ;;  %v1467_v43 = vmax.f32 %v1365_v35, 0.0 }
 0x134   : > { %v7892_v49 = vpop.f32.mrf.mxu0 }
 0x135   : > { %v1392_v50 = vmax.f32 %v1064_v46, 0.0  ;;  %1565 = vst.msk [vmem:[#allocation2 + $0x300] sm:$0xff] %vm385_vm4, %v1467_v43 }
 0x136   : > { %v1626_v51 = vld [vmem:[#allocation2 + $0x8c] ss:$2 sm:$0xff]  ;;  %v1630_v52 = vld [vmem:[#allocation2 + $0x8d] ss:$2 sm:$0xff]  ;;  %v1068_v53 = vpop.f32.mrf.mxu0  ;;  %7990 = vmatmul.mubr.msk.bf16.gmra.mxu0 %vm791_vm3, %v8761_v45 }
 0x137   : > { %v1633_v55 = vmax.f32 %v1626_v51, %v1630_v52  ;;  %1490 = vst.msk [vmem:[#allocation2 + $0xa8] sm:$0xff] %vm385_vm4, %v1392_v50  ;;  %v1069_v56 = vadd.f32 %v9272_v37, %v1068_v53  ;;  %7993 = vmatprep.mubr.msk.bf16.mxu0 %vm8971_vm2, %v11238_v0 }
 0x138   : > { %v7895_v59 = vpop.f32.mrf.mxu0 }
 0x139   : > { %v1635_v60 = vmax.f32 %v1623_v54, %v1633_v55  ;;  %v1393_v61 = vmax.f32 %v1069_v56, 0.0 }
 0x13a   : > { %v1628_v63 = vld [vmem:[#allocation2 + $0x9c] ss:$2 sm:$0x3f]  ;;  %v1632_v1 = vld [vmem:[#allocation2 + $0x9d] ss:$2 sm:$0x3f]  ;;  %v1071_v2 = vpop.f32.mrf.mxu0 }
 0x13b   : > { %1637 = vst.msk [vmem:[#allocation3 + $0x31] sm:$0xff] %vm385_vm4, %v1635_v60  ;;  %v1634_v4 = vmax.f32 %v1628_v63, %v1632_v1  ;;  %1491 = vst.msk [vmem:[#allocation2 + $0xb0] sm:$0xff] %vm385_vm4, %v1393_v61  ;;  %v1072_v5 = vadd.f32 %v9272_v37, %v1071_v2 }
 0x13c   : > { %v7896_v6 = vpop.f32.mrf.mxu0 }
 0x13d   : > { %v1636_v7 = vmax.f32 %v1624_v3, %v1634_v4  ;;  %v1394_v8 = vmax.f32 %v1072_v5, 0.0  ;;  %v8766_v5 = vld [vmem:[%s9095_s16 + $0x140] sm:$0xff]  }
 0x13e   : > { %v1076_v9 = vpop.f32.mrf.mxu0  ;;  %7994 = vmatmul.mubr.msk.bf16.gmra.mxu0 %vm791_vm3, %v8762_v62  ;;  %v1368_v62 = vadd.f32 %v9272_v37, %v1367_v32 }
 0x13f   : > { %1638 = vst.msk [vmem:[#allocation3 + $0x39] sm:$0x3f] %vm1589_vm5, %v1636_v7  ;;  %v1077_v10 = vadd.f32 %v9272_v37, %v1076_v9  ;;  %7997 = vmatprep.mubr.msk.bf16.mxu0 %vm8971_vm2, %v11238_v0 }
 0x140   : > { %1492 = vst.msk [vmem:[#allocation2 + $0xb8] sm:$0xff] %vm385_vm4, %v1394_v8  ;;  %v7899_v11 = vpop.f32.mrf.mxu0  ;;  %v1468_v3 = vmax.f32 %v1368_v62, 0.0 }
 0x141   : > { %v1395_v12 = vmax.f32 %v1077_v10, 0.0 }
 0x142   : > { %v1079_v13 = vpop.f32.mrf.mxu0  ;;  %v1955_v19 = vld [vmem:[#allocation3 + $0x31] sm:$0xff]  ;;  %v1644_v40 = vld [vmem:[#allocation2 + $0xa9] ss:$2 sm:$0xff]  ;;  %1566 = vst.msk [vmem:[#allocation2 + $0x308] sm:$0xff] %vm385_vm4, %v1468_v3 }
 0x143   : > { %1493 = vst.msk [vmem:[#allocation2 + $0xc0] sm:$0xff] %vm385_vm4, %v1395_v12  ;;  %v1080_v15 = vadd.f32 %v9272_v37, %v1079_v13  ;;  %v1640_v39 = vld [vmem:[#allocation2 + $0xa8] ss:$2 sm:$0xff] }
 0x144   : > { %v7900_v16 = vpop.f32.mrf.mxu0  ;;  %v1647_v48 = vmax.f32 %v1640_v39, %v1644_v40 }
 0x145   : > { %v1396_v17 = vmax.f32 %v1080_v15, 0.0  ;;  %v8767_v16 = vld [vmem:[%s9095_s16 + $0x148] sm:$0xff]  }
 0x146   : > { %v1084_v18 = vpop.f32.mrf.mxu0  ;;  %7998 = vmatmul.mubr.msk.bf16.gmra.mxu0 %vm791_vm3, %v8763_v14  ;;  %v1956_v20 = vld [vmem:[#allocation3 + $0x39] sm:$0xff] }
 0x147   : > { %1494 = vst.msk [vmem:[#allocation2 + $0xc8] sm:$0xff] %vm385_vm4, %v1396_v17  ;;  %v1085_v21 = vadd.f32 %v9272_v37, %v1084_v18  ;;  %v9397_v22 = vpack.c.bf16 %v1956_v20, %v1955_v19  ;;  %8001 = vmatprep.mubr.msk.bf16.mxu0 %vm8971_vm2, %v11238_v0 }
 0x148   : > { %v7903_v23 = vpop.f32.mrf.mxu0 }
 0x149   : > { %v1397_v24 = vmax.f32 %v1085_v21, 0.0  ;;  %8054 = vmatmul.mubr.msk.bf16.gmra.mxu1 %vm385_vm4, %v9397_v22 }
 0x14a   : > { %v1087_v26 = vpop.f32.mrf.mxu0  ;;  %v1642_v51 = vld [vmem:[#allocation2 + $0xb8] ss:$2 sm:$0x3f]  ;;  %v1646_v52 = vld [vmem:[#allocation2 + $0xb9] ss:$2 sm:$0x3f] }
 0x14b   : > { %1495 = vst.msk [vmem:[#allocation2 + $0xd0] sm:$0xff] %vm385_vm4, %v1397_v24  ;;  %v1088_v28 = vadd.f32 %v9272_v37, %v1087_v26  ;;  %v1648_v59 = vmax.f32 %v1642_v51, %v1646_v52 }
 0x14c   : > { %v7904_v30 = vpop.f32.mrf.mxu0 }
 0x14d   : > { %v1398_v31 = vmax.f32 %v1088_v28, 0.0 }
 0x14e   : > { %v1092_v33 = vpop.f32.mrf.mxu0  ;;  %8002 = vmatmul.mubr.msk.bf16.gmra.mxu0 %vm791_vm3, %v8764_v27  ;;  %v8768_v27 = vld [vmem:[%s9095_s16 + $0x150] sm:$0xff]  }
 0x14f   : > { %1496 = vst.msk [vmem:[#allocation2 + $0xd8] sm:$0xff] %vm385_vm4, %v1398_v31  ;;  %v1093_v34 = vadd.f32 %v9272_v37, %v1092_v33  ;;  %8005 = vmatprep.mubr.msk.bf16.mxu0 %vm8971_vm2, %v11238_v0 }
 0x150   : > { %v7907_v41 = vpop.f32.mrf.mxu0 }
 0x151   : > { %v1399_v42 = vmax.f32 %v1093_v34, 0.0 }
 0x152   : > { %v1650_v44 = vld [vmem:[#allocation2 + $0xc4] ss:$2 sm:$0xff]  ;;  %v1654_v45 = vld [vmem:[#allocation2 + $0xc5] ss:$2 sm:$0xff]  ;;  %v1095_v46 = vpop.f32.mrf.mxu0 }
 0x153   : > { %v1657_v49 = vmax.f32 %v1650_v44, %v1654_v45  ;;  %1497 = vst.msk [vmem:[#allocation2 + $0xe0] sm:$0xff] %vm385_vm4, %v1399_v42  ;;  %v1096_v50 = vadd.f32 %v9272_v37, %v1095_v46  ;;  %v8769_v46 = vld [vmem:[%s9095_s16 + $0x158] sm:$0xff]  }
 0x154   : > { %v7908_v53 = vpop.f32.mrf.mxu0 }
 0x155   : > { %v1659_v54 = vmax.f32 %v1647_v48, %v1657_v49  ;;  %v1400_v55 = vmax.f32 %v1096_v50, 0.0 }
 0x156   : > { %v1652_v56 = vld [vmem:[#allocation2 + $0xd4] ss:$2 sm:$0x3f]  ;;  %v1656_v57 = vld [vmem:[#allocation2 + $0xd5] ss:$2 sm:$0x3f]  ;;  %v1100_v58 = vpop.f32.mrf.mxu0  ;;  %8006 = vmatmul.mubr.msk.bf16.gmra.mxu0 %vm791_vm3, %v8765_v47 }
 0x157   : > { %1661 = vst.msk [vmem:[#allocation3 + $0x41] sm:$0xff] %vm385_vm4, %v1659_v54  ;;  %v1658_v60 = vmax.f32 %v1652_v56, %v1656_v57  ;;  %1498 = vst.msk [vmem:[#allocation2 + $0xe8] sm:$0xff] %vm385_vm4, %v1400_v55  ;;  %v1101_v61 = vadd.f32 %v9272_v37, %v1100_v58  ;;  %8009 = vmatprep.mubr.msk.bf16.mxu0 %vm8971_vm2, %v11238_v0 }
 0x158   : > { %v7911_v63 = vpop.f32.mrf.mxu0 }
 0x159   : > { %v1660_v1 = vmax.f32 %v1648_v59, %v1658_v60  ;;  %v1401_v2 = vmax.f32 %v1101_v61, 0.0  ;;  %v8770_v61 = vld [vmem:[%s9095_s16 + $0x160] sm:$0xff]  }
 0x15a   : > { %v1103_v4 = vpop.f32.mrf.mxu0 }
 0x15b   : > { %1662 = vst.msk [vmem:[#allocation3 + $0x49] sm:$0x3f] %vm1589_vm5, %v1660_v1  ;;  %v1104_v6 = vadd.f32 %v9272_v37, %v1103_v4 }
 0x15c   : > { %1499 = vst.msk [vmem:[#allocation2 + $0xf0] sm:$0xff] %vm385_vm4, %v1401_v2  ;;  %v7912_v7 = vpop.f32.mrf.mxu0 }
 0x15d   : > { %v1402_v8 = vmax.f32 %v1104_v6, 0.0 }
 0x15e   : > { %v1108_v9 = vpop.f32.mrf.mxu0  ;;  %8010 = vmatmul.mubr.msk.bf16.gmra.mxu0 %vm791_vm3, %v8766_v5  ;;  %v1957_v14 = vld [vmem:[#allocation3 + $0x41] sm:$0xff]  ;;  %v1664_v29 = vld [vmem:[#allocation2 + $0xe0] ss:$2 sm:$0xff]  ;;  %v1668_v30 = vld [vmem:[#allocation2 + $0xe1] ss:$2 sm:$0xff] }
 0x15f   : > { %1500 = vst.msk [vmem:[#allocation2 + $0xf8] sm:$0xff] %vm385_vm4, %v1402_v8  ;;  %v1109_v10 = vadd.f32 %v9272_v37, %v1108_v9  ;;  %8013 = vmatprep.mubr.msk.bf16.mxu0 %vm8971_vm2, %v11238_v0  ;;  %v1671_v38 = vmax.f32 %v1664_v29, %v1668_v30 }
 0x160   : > { %v7915_v11 = vpop.f32.mrf.mxu0 }
 0x161   : > { %v1403_v12 = vmax.f32 %v1109_v10, 0.0  ;;  %v8771_v10 = vld [vmem:[%s9095_s16 + $0x168] sm:$0xff]  }
 0x162   : > { %v1111_v13 = vpop.f32.mrf.mxu0  ;;  %v1958_v15 = vld [vmem:[#allocation3 + $0x49] sm:$0xff] }
 0x163   : > { %1501 = vst.msk [vmem:[#allocation2 + $0x100] sm:$0xff] %vm385_vm4, %v1403_v12  ;;  %v1112_v17 = vadd.f32 %v9272_v37, %v1111_v13  ;;  %v9436_v18 = vpack.c.bf16 %v1958_v15, %v1957_v14 }
 0x164   : > { %v7916_v19 = vpop.f32.mrf.mxu0 }
 0x165   : > { %v1404_v20 = vmax.f32 %v1112_v17, 0.0  ;;  %8057 = vmatprep.mubr.msk.bf16.mxu1 %vm385_vm4, %v9436_v18 }
 0x166   : > { %v1116_v21 = vpop.f32.mrf.mxu0  ;;  %8014 = vmatmul.mubr.msk.bf16.gmra.mxu0 %vm791_vm3, %v8767_v16  ;;  %v1666_v41 = vld [vmem:[#allocation2 + $0xf0] ss:$2 sm:$0x3f]  ;;  %v1670_v42 = vld [vmem:[#allocation2 + $0xf1] ss:$2 sm:$0x3f] }
 0x167   : > { %1502 = vst.msk [vmem:[#allocation2 + $0x108] sm:$0xff] %vm385_vm4, %v1404_v20  ;;  %v1117_v23 = vadd.f32 %v9272_v37, %v1116_v21  ;;  %8017 = vmatprep.mubr.msk.bf16.mxu0 %vm8971_vm2, %v11238_v0  ;;  %v1672_v50 = vmax.f32 %v1666_v41, %v1670_v42 }
 0x168   : > { %v7919_v24 = vpop.f32.mrf.mxu0 }
 0x169   : > { %v1405_v25 = vmax.f32 %v1117_v23, 0.0 }
 0x16a   : > { %v1119_v26 = vpop.f32.mrf.mxu0 }
 0x16b   : > { %1503 = vst.msk [vmem:[#allocation2 + $0x110] sm:$0xff] %vm385_vm4, %v1405_v25  ;;  %v1120_v28 = vadd.f32 %v9272_v37, %v1119_v26  ;;  %v8772_v25 = vld [vmem:[%s9095_s16 + $0x170] sm:$0xff]  }
 0x16c   : > { %v7920_v31 = vpop.f32.mrf.mxu0 }
 0x16d   : > { %v1406_v32 = vmax.f32 %v1120_v28, 0.0 }
 0x16e   : > { %v1674_v33 = vld [vmem:[#allocation2 + $0xfc] ss:$2 sm:$0xff]  ;;  %v1678_v34 = vld [vmem:[#allocation2 + $0xfd] ss:$2 sm:$0xff]  ;;  %v1124_v35 = vpop.f32.mrf.mxu0  ;;  %8018 = vmatmul.mubr.msk.bf16.gmra.mxu0 %vm791_vm3, %v8768_v27 }
 0x16f   : > { %v1681_v39 = vmax.f32 %v1674_v33, %v1678_v34  ;;  %1504 = vst.msk [vmem:[#allocation2 + $0x118] sm:$0xff] %vm385_vm4, %v1406_v32  ;;  %v1125_v40 = vadd.f32 %v9272_v37, %v1124_v35  ;;  %8021 = vmatprep.mubr.msk.bf16.mxu0 %vm8971_vm2, %v11238_v0 }
 0x170   : > { %v7923_v43 = vpop.f32.mrf.mxu0 }
 0x171   : > { %v1683_v44 = vmax.f32 %v1671_v38, %v1681_v39  ;;  %v1407_v45 = vmax.f32 %v1125_v40, 0.0 }
 0x172   : > { %v1676_v47 = vld [vmem:[#allocation2 + $0x10c] ss:$2 sm:$0x3f]  ;;  %v1680_v48 = vld [vmem:[#allocation2 + $0x10d] ss:$2 sm:$0x3f]  ;;  %v1127_v49 = vpop.f32.mrf.mxu0 }
 0x173   : > { %1685 = vst.msk [vmem:[#allocation3 + $0x51] sm:$0xff] %vm385_vm4, %v1683_v44  ;;  %v1682_v51 = vmax.f32 %v1676_v47, %v1680_v48  ;;  %1505 = vst.msk [vmem:[#allocation2 + $0x120] sm:$0xff] %vm385_vm4, %v1407_v45  ;;  %v1128_v52 = vadd.f32 %v9272_v37, %v1127_v49 }
 0x174   : > { %v7924_v53 = vpop.f32.mrf.mxu0 }
 0x175   : > { %v1684_v54 = vmax.f32 %v1672_v50, %v1682_v51  ;;  %v1408_v55 = vmax.f32 %v1128_v52, 0.0 }
 0x176   : > { %v1132_v56 = vpop.f32.mrf.mxu0  ;;  %8022 = vmatmul.mubr.msk.bf16.gmra.mxu0 %vm791_vm3, %v8769_v46  ;;  %v8773_v46 = vld [vmem:[%s9095_s16 + $0x178] sm:$0xff]   ;;  %s8911_s16 = sshll.u32 %s8972_s21, 4  ;;  %s8912_s16 = int_to_ptr.vmem [resolvable:$false] %s8911_s16 }
 0x177   : > { %1686 = vst.msk [vmem:[#allocation3 + $0x59] sm:$0x3f] %vm1589_vm5, %v1684_v54  ;;  %v1133_v57 = vadd.f32 %v9272_v37, %v1132_v56  ;;  %8025 = vmatprep.mubr.msk.bf16.mxu0 %vm8971_vm2, %v11238_v0  ;;  %s8913_s30 = scalar_lea.vmem %s8912_s16, 32  ;;  %p8914_p0 = scmp.lt.s32.totalorder %s11187_s29, %s8912_s16 }
 0x178   : > { %1506 = vst.msk [vmem:[#allocation2 + $0x128] sm:$0xff] %vm385_vm4, %v1408_v55  ;;  %v7927_v58 = vpop.f32.mrf.mxu0  ;;  %p8915_p1 = scmp.lt.s32.totalorder %s8913_s30, %s8907_s22 }
 0x179   : > { %v1409_v59 = vmax.f32 %v1133_v57, 0.0 }
 0x17a   : > { %v1135_v60 = vpop.f32.mrf.mxu0  ;;  %v1959_v3 = vld [vmem:[#allocation3 + $0x51] sm:$0xff]  ;;  %p8916_p2 = por %p8915_p1, %p8914_p0 }
 0x17b   : > { %1507 = vst.msk [vmem:[#allocation2 + $0x130] sm:$0xff] %vm385_vm4, %v1409_v59  ;;  %v1136_v62 = vadd.f32 %v9272_v37, %v1135_v60  ;;  %v1688_v16 = vld [vmem:[#allocation2 + $0x118] ss:$2 sm:$0xff]  ;;  %v1692_v17 = vld [vmem:[#allocation2 + $0x119] ss:$2 sm:$0xff] }
 0x17c   : > { %v7928_v63 = vpop.f32.mrf.mxu0  ;;  %v1695_v26 = vmax.f32 %v1688_v16, %v1692_v17  ;;  %p8917_p3 = pnand %p8916_p2, %p8910_p13 }
 0x17d   : > { %v1410_v1 = vmax.f32 %v1136_v62, 0.0 }
 0x17e   : > { %v1140_v2 = vpop.f32.mrf.mxu0  ;;  %8026 = vmatmul.mubr.msk.bf16.gmra.mxu0 %vm791_vm3, %v8770_v61  ;;  %v1960_v4 = vld [vmem:[#allocation3 + $0x59] sm:$0xff] }
 0x17f   : > { %1508 = vst.msk [vmem:[#allocation2 + $0x138] sm:$0xff] %vm385_vm4, %v1410_v1  ;;  %v1141_v5 = vadd.f32 %v9272_v37, %v1140_v2  ;;  %v9469_v6 = vpack.c.bf16 %v1960_v4, %v1959_v3  ;;  %8029 = vmatprep.mubr.msk.bf16.mxu0 %vm8971_vm2, %v11238_v0 }
 0x180   : > { %v7931_v7 = vpop.f32.mrf.mxu0 }
 0x181   : > { %v1411_v8 = vmax.f32 %v1141_v5, 0.0  ;;  %8058 = vmatmul.mubr.msk.bf16.gmra.mxu1 %vm385_vm4, %v9469_v6 }
 0x182   : > { %v1143_v9 = vpop.f32.mrf.mxu0  ;;  %v1690_v29 = vld [vmem:[#allocation2 + $0x128] ss:$2 sm:$0x3f]  ;;  %v1694_v30 = vld [vmem:[#allocation2 + $0x129] ss:$2 sm:$0x3f] }
 0x183   : > { %1509 = vst.msk [vmem:[#allocation2 + $0x140] sm:$0xff] %vm385_vm4, %v1411_v8  ;;  %v1144_v11 = vadd.f32 %v9272_v37, %v1143_v9  ;;  %v1696_v39 = vmax.f32 %v1690_v29, %v1694_v30 }
 0x184   : > { %v7932_v12 = vpop.f32.mrf.mxu0 }
 0x185   : > { %v1412_v13 = vmax.f32 %v1144_v11, 0.0 }
 0x186   : > { %v1148_v14 = vpop.f32.mrf.mxu0  ;;  %8030 = vmatmul.mubr.msk.bf16.gmra.mxu0 %vm791_vm3, %v8771_v10 }
 0x187   : > { %1510 = vst.msk [vmem:[#allocation2 + $0x148] sm:$0xff] %vm385_vm4, %v1412_v13  ;;  %v1149_v15 = vadd.f32 %v9272_v37, %v1148_v14  ;;  %8033 = vmatprep.mubr.msk.bf16.mxu0 %vm8971_vm2, %v11238_v0 }
 0x188   : > { %v7935_v19 = vpop.f32.mrf.mxu0 }
 0x189   : > { %v1413_v20 = vmax.f32 %v1149_v15, 0.0 }
 0x18a   : > { %v1698_v21 = vld [vmem:[#allocation2 + $0x134] ss:$2 sm:$0xff]  ;;  %v1702_v23 = vld [vmem:[#allocation2 + $0x135] ss:$2 sm:$0xff]  ;;  %v1151_v24 = vpop.f32.mrf.mxu0 }
 0x18b   : > { %v1705_v27 = vmax.f32 %v1698_v21, %v1702_v23  ;;  %1511 = vst.msk [vmem:[#allocation2 + $0x150] sm:$0xff] %vm385_vm4, %v1413_v20  ;;  %v1152_v28 = vadd.f32 %v9272_v37, %v1151_v24 }
 0x18c   : > { %v7936_v31 = vpop.f32.mrf.mxu0 }
 0x18d   : > { %v1707_v32 = vmax.f32 %v1695_v26, %v1705_v27  ;;  %v1414_v33 = vmax.f32 %v1152_v28, 0.0 }
 0x18e   : > { %v1700_v34 = vld [vmem:[#allocation2 + $0x144] ss:$2 sm:$0x3f]  ;;  %v1704_v35 = vld [vmem:[#allocation2 + $0x145] ss:$2 sm:$0x3f]  ;;  %v1156_v38 = vpop.f32.mrf.mxu0  ;;  %8034 = vmatmul.mubr.msk.bf16.gmra.mxu0 %vm791_vm3, %v8772_v25 }
 0x18f   : > { %1709 = vst.msk [vmem:[#allocation3 + $0x61] sm:$0xff] %vm385_vm4, %v1707_v32  ;;  %v1706_v40 = vmax.f32 %v1700_v34, %v1704_v35  ;;  %1512 = vst.msk [vmem:[#allocation2 + $0x158] sm:$0xff] %vm385_vm4, %v1414_v33  ;;  %v1157_v41 = vadd.f32 %v9272_v37, %v1156_v38  ;;  %8037 = vmatprep.mubr.msk.bf16.mxu0 %vm8971_vm2, %v11238_v0 }
 0x190   : > { %v7939_v42 = vpop.f32.mrf.mxu0 }
 0x191   : > { %v1708_v43 = vmax.f32 %v1696_v39, %v1706_v40  ;;  %v1415_v44 = vmax.f32 %v1157_v41, 0.0 }
 0x192   : > { %v1159_v45 = vpop.f32.mrf.mxu0 }
 0x193   : > { %1710 = vst.msk [vmem:[#allocation3 + $0x69] sm:$0x3f] %vm1589_vm5, %v1708_v43  ;;  %v1160_v47 = vadd.f32 %v9272_v37, %v1159_v45 }
 0x194   : > { %1513 = vst.msk [vmem:[#allocation2 + $0x160] sm:$0xff] %vm385_vm4, %v1415_v44  ;;  %v7940_v48 = vpop.f32.mrf.mxu0 }
 0x195   : > { %v1416_v49 = vmax.f32 %v1160_v47, 0.0 }
 0x196   : > { %v1164_v50 = vpop.f32.mrf.mxu0  ;;  %8038 = vmatmul.mubr.msk.bf16.gmra.mxu0 %vm791_vm3, %v8773_v46  ;;  %v1961_v55 = vld [vmem:[#allocation3 + $0x61] sm:$0xff]  ;;  %v8776_v46 = vld [vmem:[%s11229_s3 + $0x8] sm:$0xff]  }
 0x197   : > { %1514 = vst.msk [vmem:[#allocation2 + $0x168] sm:$0xff] %vm385_vm4, %v1416_v49  ;;  %v1165_v51 = vadd.f32 %v9272_v37, %v1164_v50  ;;  %8273 = vmatprep.mubr.msk.bf16.mxu0 %vm385_vm4, %v9364_v36  ;;  %v1712_v3 = vld [vmem:[#allocation2 + $0x150] ss:$2 sm:$0xff]  ;;  %v1716_v4 = vld [vmem:[#allocation2 + $0x151] ss:$2 sm:$0xff]  ;;  %8077 = vmatprep.subr.bf16.mxu1 %v8776_v46 }
 0x198   : > { %v7943_v52 = vpop.f32.mrf.mxu0  ;;  %v1719_v10 = vmax.f32 %v1712_v3, %v1716_v4  ;;  %8078 = vmatpush3.bf16.msra.mxu1 %v8776_v46  ;;  %v9538_v50 = vld [vmem:[%s11228_s2] ss:$0 sm:$0xff] }
 0x199   : > { %v1417_v53 = vmax.f32 %v1165_v51, 0.0 }
 0x19a   : > { %v1167_v54 = vpop.f32.mrf.mxu0  ;;  %v1962_v56 = vld [vmem:[#allocation3 + $0x69] sm:$0xff] }
 0x19b   : > { %1515 = vst.msk [vmem:[#allocation2 + $0x170] sm:$0xff] %vm385_vm4, %v1417_v53  ;;  %v1168_v57 = vadd.f32 %v9272_v37, %v1167_v54  ;;  %v1983_v58 = vpack.c.bf16 %v1962_v56, %v1961_v55 }
 0x19c   : > { %v7944_v59 = vpop.f32.mrf.mxu0 }
 0x19d   : > { %v1418_v60 = vmax.f32 %v1168_v57, 0.0  ;;  %8061 = vmatprep.mubr.msk.bf16.mxu1 %vm385_vm4, %v1983_v58 }
 0x19e   : > { %v1172_v61 = vpop.f32.mrf.mxu0  ;;  %8274 = vmatmul.mubr.msk.bf16.vlgmr.msra.gmra.mxu0 %vm385_vm4, %v9397_v22  ;;  %v1714_v12 = vld [vmem:[#allocation2 + $0x160] ss:$2 sm:$0x3f]  ;;  %v1718_v13 = vld [vmem:[#allocation2 + $0x161] ss:$2 sm:$0x3f] }
 0x19f   : > { %1516 = vst.msk [vmem:[#allocation2 + $0x178] sm:$0xff] %vm385_vm4, %v1418_v60  ;;  %v1173_v36 = vadd.f32 %v9272_v37, %v1172_v61  ;;  %8277 = vmatprep.mubr.msk.bf16.mxu0 %vm385_vm4, %v9436_v18  ;;  %v1720_v21 = vmax.f32 %v1714_v12, %v1718_v13 }
 0x1a0   : > { %v7947_v62 = vpop.f32.mrf.mxu0 }
 0x1a1   : > { %v1419_v63 = vmax.f32 %v1173_v36, 0.0 }
 0x1a2   : > { %v1175_v1 = vpop.f32.mrf.mxu0 }
 0x1a3   : > { %1517 = vst.msk [vmem:[#allocation2 + $0x180] sm:$0xff] %vm385_vm4, %v1419_v63  ;;  %v1176_v2 = vadd.f32 %v9272_v37, %v1175_v1 }
 0x1a4   : > { %v7948_v5 = vpop.f32.mrf.mxu0 }
 0x1a5   : > { %v1420_v7 = vmax.f32 %v1176_v2, 0.0 }
 0x1a6   : > { %v1722_v8 = vld [vmem:[#allocation2 + $0x16c] ss:$2 sm:$0xff]  ;;  %v1726_v22 = vld [vmem:[#allocation2 + $0x16d] ss:$2 sm:$0xff]  ;;  %v1180_v9 = vpop.f32.mrf.mxu0  ;;  %8278 = vmatmul.mubr.msk.bf16.gmra.mxu0 %vm385_vm4, %v9469_v6 }
 0x1a7   : > { %v1729_v11 = vmax.f32 %v1722_v8, %v1726_v22  ;;  %1518 = vst.msk [vmem:[#allocation2 + $0x188] sm:$0xff] %vm385_vm4, %v1420_v7  ;;  %v1181_v18 = vadd.f32 %v9272_v37, %v1180_v9  ;;  %8281 = vmatprep.mubr.msk.bf16.mxu0 %vm385_vm4, %v1983_v58 }
 0x1a8   : > { %v7951_v14 = vpop.f32.mrf.mxu0 }
 0x1a9   : > { %v1731_v15 = vmax.f32 %v1719_v10, %v1729_v11  ;;  %v1421_v16 = vmax.f32 %v1181_v18, 0.0 }
 0x1aa   : > { %v1724_v17 = vld [vmem:[#allocation2 + $0x17c] ss:$2 sm:$0x3f]  ;;  %v1728_v19 = vld [vmem:[#allocation2 + $0x17d] ss:$2 sm:$0x3f]  ;;  %v1183_v20 = vpop.f32.mrf.mxu0 }
 0x1ab   : > { %1733 = vst.msk [vmem:[#allocation3 + $0x71] sm:$0xff] %vm385_vm4, %v1731_v15  ;;  %v1730_v6 = vmax.f32 %v1724_v17, %v1728_v19  ;;  %1519 = vst.msk [vmem:[#allocation2 + $0x190] sm:$0xff] %vm385_vm4, %v1421_v16  ;;  %v1184_v23 = vadd.f32 %v9272_v37, %v1183_v20 }
 0x1ac   : > { %v7952_v24 = vpop.f32.mrf.mxu0 }
 0x1ad   : > { %v1732_v25 = vmax.f32 %v1720_v21, %v1730_v6  ;;  %v1422_v26 = vmax.f32 %v1184_v23, 0.0 }
 0x1ae   : > { %v1188_v27 = vpop.f32.mrf.mxu0 }
 0x1af   : > { %1734 = vst.msk [vmem:[#allocation3 + $0x79] sm:$0x3f] %vm1589_vm5, %v1732_v25  ;;  %v1189_v28 = vadd.f32 %v9272_v37, %v1188_v27 }
 0x1b0   : > { %1520 = vst.msk [vmem:[#allocation2 + $0x198] sm:$0xff] %vm385_vm4, %v1422_v26  ;;  %v7955_v29 = vpop.f32.mrf.mxu0 }
 0x1b1   : > { %v1423_v30 = vmax.f32 %v1189_v28, 0.0  ;;  %v8777_v28 = vld [vmem:[%s11229_s3] sm:$0xff]  }
 0x1b2   : > { %v1191_v31 = vpop.f32.mrf.mxu0  ;;  %v1963_v38 = vld [vmem:[#allocation3 + $0x71] sm:$0xff]  ;;  %8079 = vmatprep.subr.bf16.mxu1 %v8777_v28 }
 0x1b3   : > { %1521 = vst.msk [vmem:[#allocation2 + $0x1a0] sm:$0xff] %vm385_vm4, %v1423_v30  ;;  %v1192_v32 = vadd.f32 %v9272_v37, %v1191_v31  ;;  %v1736_v52 = vld [vmem:[#allocation2 + $0x188] ss:$2 sm:$0xff]  ;;  %8080 = vmatpush3.bf16.msra.mxu1 %v8777_v28 }
 0x1b4   : > { %v7956_v33 = vpop.f32.mrf.mxu0 }
 0x1b5   : > { %v1424_v34 = vmax.f32 %v1192_v32, 0.0 }
 0x1b6   : > { %v1196_v35 = vpop.f32.mrf.mxu0  ;;  %v1964_v39 = vld [vmem:[#allocation3 + $0x79] sm:$0xff] }
 0x1b7   : > { %1522 = vst.msk [vmem:[#allocation2 + $0x1a8] sm:$0xff] %vm385_vm4, %v1424_v34  ;;  %v1197_v40 = vadd.f32 %v9272_v37, %v1196_v35  ;;  %v1984_v41 = vpack.c.bf16 %v1964_v39, %v1963_v38  ;;  %v2955_v0 = vld [vmem:[#allocation3 + $0x79] sm:$0xff] }
 0x1b8   : > { %v7959_v42 = vpop.f32.mrf.mxu0 }
 0x1b9   : > { %v1425_v43 = vmax.f32 %v1197_v40, 0.0  ;;  %8062 = vmatmul.mubr.msk.bf16.gmra.mxu1 %vm385_vm4, %v1984_v41  ;;  %8282 = vmatmul.mubr.msk.bf16.gmra.mxu0 %vm385_vm4, %v1984_v41 }
 0x1ba   : > { %v1199_v44 = vpop.f32.mrf.mxu0  ;;  %v1738_v61 = vld [vmem:[#allocation2 + $0x198] ss:$2 sm:$0x3f]  ;;  %v1742_v36 = vld [vmem:[#allocation2 + $0x199] ss:$2 sm:$0x3f] }
 0x1bb   : > { %1523 = vst.msk [vmem:[#allocation2 + $0x1b0] sm:$0xff] %vm385_vm4, %v1425_v43  ;;  %v1200_v45 = vadd.f32 %v9272_v37, %v1199_v44  ;;  %v1740_v37 = vld [vmem:[#allocation2 + $0x189] ss:$2 sm:$0xff]  ;;  %v1744_v5 = vmax.f32 %v1738_v61, %v1742_v36 }
 0x1bc   : > { %v7960_v47 = vpop.f32.mrf.mxu0  ;;  %v1743_v58 = vmax.f32 %v1736_v52, %v1740_v37 }
 0x1bd   : > { %v1426_v48 = vmax.f32 %v1200_v45, 0.0 }
 0x1be   : > { %v1204_v49 = vpop.f32.mrf.mxu0 }
 0x1bf   : > { %1524 = vst.msk [vmem:[#allocation2 + $0x1b8] sm:$0xff] %vm385_vm4, %v1426_v48  ;;  %v1205_v51 = vadd.f32 %v9538_v50, %v1204_v49 }
 0x1c0   : > { %v7963_v53 = vpop.f32.mrf.mxu0 }
 0x1c1   : > { %v1427_v54 = vmax.f32 %v1205_v51, 0.0 }
 0x1c2   : > { %v1746_v55 = vld [vmem:[#allocation2 + $0x1a4] ss:$2 sm:$0xff]  ;;  %v1750_v56 = vld [vmem:[#allocation2 + $0x1a5] ss:$2 sm:$0xff]  ;;  %v1207_v57 = vpop.f32.mrf.mxu0 }
 0x1c3   : > { %v1753_v59 = vmax.f32 %v1746_v55, %v1750_v56  ;;  %1525 = vst.msk [vmem:[#allocation2 + $0x1c0] sm:$0xff] %vm385_vm4, %v1427_v54  ;;  %v1208_v60 = vadd.f32 %v9538_v50, %v1207_v57 }
 0x1c4   : > { %v7964_v62 = vpop.f32.mrf.mxu0 }
 0x1c5   : > { %v1755_v63 = vmax.f32 %v1743_v58, %v1753_v59  ;;  %v1428_v1 = vmax.f32 %v1208_v60, 0.0 }
 0x1c6   : > { %v1748_v2 = vld [vmem:[#allocation2 + $0x1b4] ss:$2 sm:$0x3f]  ;;  %v1752_v3 = vld [vmem:[#allocation2 + $0x1b5] ss:$2 sm:$0x3f]  ;;  %v1212_v4 = vpop.f32.mrf.mxu0 }
 0x1c7   : > { %1757 = vst.msk [vmem:[#allocation3 + $0x81] sm:$0xff] %vm385_vm4, %v1755_v63  ;;  %v1754_v7 = vmax.f32 %v1748_v2, %v1752_v3  ;;  %1526 = vst.msk [vmem:[#allocation2 + $0x1c8] sm:$0xff] %vm385_vm4, %v1428_v1  ;;  %v1213_v8 = vadd.f32 %v9538_v50, %v1212_v4  ;;  %v9575_v1 = vld [vmem:[%s11229_s3 + $0x28] sm:$0xff]  }
 0x1c8   : > { %v7967_v22 = vpop.f32.mrf.mxu0  ;;  %8109 = vmatprep.subr.bf16.mxu1 %v9575_v1 }
 0x1c9   : > { %v1756_v9 = vmax.f32 %v1744_v5, %v1754_v7  ;;  %v1429_v10 = vmax.f32 %v1213_v8, 0.0 }
 0x1ca   : > { %v1215_v11 = vpop.f32.mrf.mxu0 }
 0x1cb   : > { %1758 = vst.msk [vmem:[#allocation3 + $0x89] sm:$0x3f] %vm1589_vm5, %v1756_v9  ;;  %v1216_v18 = vadd.f32 %v9538_v50, %v1215_v11 }
 0x1cc   : > { %1527 = vst.msk [vmem:[#allocation2 + $0x1d0] sm:$0xff] %vm385_vm4, %v1429_v10  ;;  %v7968_v12 = vpop.f32.mrf.mxu0 }
 0x1cd   : > { %v1430_v13 = vmax.f32 %v1216_v18, 0.0 }
 0x1ce   : > { %v1220_v14 = vpop.f32.mrf.mxu0  ;;  %v1965_v20 = vld [vmem:[#allocation3 + $0x81] sm:$0xff]  ;;  %v1760_v33 = vld [vmem:[#allocation2 + $0x1c0] ss:$2 sm:$0xff]  ;;  %v1764_v34 = vld [vmem:[#allocation2 + $0x1c1] ss:$2 sm:$0xff] }
 0x1cf   : > { %1528 = vst.msk [vmem:[#allocation2 + $0x1d8] sm:$0xff] %vm385_vm4, %v1430_v13  ;;  %v1221_v15 = vadd.f32 %v9538_v50, %v1220_v14  ;;  %v1767_v42 = vmax.f32 %v1760_v33, %v1764_v34 }
 0x1d0   : > { %v7971_v16 = vpop.f32.mrf.mxu0 }
 0x1d1   : > { %v1431_v17 = vmax.f32 %v1221_v15, 0.0 }
 0x1d2   : > { %v1223_v19 = vpop.f32.mrf.mxu0  ;;  %v1966_v21 = vld [vmem:[#allocation3 + $0x89] sm:$0xff] }
 0x1d3   : > { %1529 = vst.msk [vmem:[#allocation2 + $0x1e0] sm:$0xff] %vm385_vm4, %v1431_v17  ;;  %v1224_v6 = vadd.f32 %v9538_v50, %v1223_v19  ;;  %v1985_v23 = vpack.c.bf16 %v1966_v21, %v1965_v20 }
 0x1d4   : > { %v7972_v24 = vpop.f32.mrf.mxu0 }
 0x1d5   : > { %v1432_v25 = vmax.f32 %v1224_v6, 0.0  ;;  %8065 = vmatprep.mubr.msk.bf16.mxu1 %vm385_vm4, %v1985_v23  ;;  %8285 = vmatprep.mubr.msk.bf16.mxu0 %vm385_vm4, %v1985_v23 }
 0x1d6   : > { %v1228_v26 = vpop.f32.mrf.mxu0  ;;  %v1762_v45 = vld [vmem:[#allocation2 + $0x1d0] ss:$2 sm:$0x3f]  ;;  %v1766_v46 = vld [vmem:[#allocation2 + $0x1d1] ss:$2 sm:$0x3f] }
 0x1d7   : > { %1530 = vst.msk [vmem:[#allocation2 + $0x1e8] sm:$0xff] %vm385_vm4, %v1432_v25  ;;  %v1229_v27 = vadd.f32 %v9538_v50, %v1228_v26  ;;  %v1768_v53 = vmax.f32 %v1762_v45, %v1766_v46 }
 0x1d8   : > { %v7975_v29 = vpop.f32.mrf.mxu0 }
 0x1d9   : > { %v1433_v30 = vmax.f32 %v1229_v27, 0.0 }
 0x1da   : > { %v1231_v31 = vpop.f32.mrf.mxu0 }
 0x1db   : > { %1531 = vst.msk [vmem:[#allocation2 + $0x1f0] sm:$0xff] %vm385_vm4, %v1433_v30  ;;  %v1232_v32 = vadd.f32 %v9538_v50, %v1231_v31 }
 0x1dc   : > { %v7976_v35 = vpop.f32.mrf.mxu0 }
 0x1dd   : > { %v1434_v38 = vmax.f32 %v1232_v32, 0.0 }
 0x1de   : > { %v1770_v39 = vld [vmem:[#allocation2 + $0x1dc] ss:$2 sm:$0xff]  ;;  %v1774_v40 = vld [vmem:[#allocation2 + $0x1dd] ss:$2 sm:$0xff]  ;;  %v1236_v41 = vpop.f32.mrf.mxu0 }
 0x1df   : > { %v1777_v43 = vmax.f32 %v1770_v39, %v1774_v40  ;;  %1532 = vst.msk [vmem:[#allocation2 + $0x1f8] sm:$0xff] %vm385_vm4, %v1434_v38  ;;  %v1237_v44 = vadd.f32 %v9538_v50, %v1236_v41 }
 0x1e0   : > { %v7979_v47 = vpop.f32.mrf.mxu0 }
 0x1e1   : > { %v1779_v48 = vmax.f32 %v1767_v42, %v1777_v43  ;;  %v1435_v49 = vmax.f32 %v1237_v44, 0.0 }
 0x1e2   : > { %v1772_v51 = vld [vmem:[#allocation2 + $0x1ec] ss:$2 sm:$0x3f]  ;;  %v1776_v52 = vld [vmem:[#allocation2 + $0x1ed] ss:$2 sm:$0x3f]  ;;  %v1239_v37 = vpop.f32.mrf.mxu0 }
 0x1e3   : > { %1781 = vst.msk [vmem:[#allocation3 + $0x91] sm:$0xff] %vm385_vm4, %v1779_v48  ;;  %v1778_v54 = vmax.f32 %v1772_v51, %v1776_v52  ;;  %1533 = vst.msk [vmem:[#allocation2 + $0x200] sm:$0xff] %vm385_vm4, %v1435_v49  ;;  %v1240_v55 = vadd.f32 %v9538_v50, %v1239_v37 }
 0x1e4   : > { %v7980_v56 = vpop.f32.mrf.mxu0 }
 0x1e5   : > { %v1780_v57 = vmax.f32 %v1768_v53, %v1778_v54  ;;  %v1436_v58 = vmax.f32 %v1240_v55, 0.0 }
 0x1e6   : > { %v1244_v59 = vpop.f32.mrf.mxu0 }
 0x1e7   : > { %1782 = vst.msk [vmem:[#allocation3 + $0x99] sm:$0x3f] %vm1589_vm5, %v1780_v57  ;;  %v1245_v60 = vadd.f32 %v9538_v50, %v1244_v59 }
 0x1e8   : > { %1534 = vst.msk [vmem:[#allocation2 + $0x208] sm:$0xff] %vm385_vm4, %v1436_v58  ;;  %v7983_v61 = vpop.f32.mrf.mxu0 }
 0x1e9   : > { %v1437_v36 = vmax.f32 %v1245_v60, 0.0 }
 0x1ea   : > { %v1247_v62 = vpop.f32.mrf.mxu0  ;;  %v1967_v5 = vld [vmem:[#allocation3 + $0x91] sm:$0xff] }
 0x1eb   : > { %1535 = vst.msk [vmem:[#allocation2 + $0x210] sm:$0xff] %vm385_vm4, %v1437_v36  ;;  %v1248_v63 = vadd.f32 %v9538_v50, %v1247_v62  ;;  %v1784_v16 = vld [vmem:[#allocation2 + $0x1f8] ss:$2 sm:$0xff]  ;;  %v1788_v17 = vld [vmem:[#allocation2 + $0x1f9] ss:$2 sm:$0xff] }
 0x1ec   : > { %v7984_v2 = vpop.f32.mrf.mxu0  ;;  %v1791_v24 = vmax.f32 %v1784_v16, %v1788_v17 }
 0x1ed   : > { %v1438_v3 = vmax.f32 %v1248_v63, 0.0 }
 0x1ee   : > { %v1252_v4 = vpop.f32.mrf.mxu0  ;;  %v1968_v7 = vld [vmem:[#allocation3 + $0x99] sm:$0xff] }
 0x1ef   : > { %1536 = vst.msk [vmem:[#allocation2 + $0x218] sm:$0xff] %vm385_vm4, %v1438_v3  ;;  %v1253_v8 = vadd.f32 %v9538_v50, %v1252_v4  ;;  %v1986_v22 = vpack.c.bf16 %v1968_v7, %v1967_v5 }
 0x1f0   : > { %v7987_v9 = vpop.f32.mrf.mxu0 }
 0x1f1   : > { %v1439_v10 = vmax.f32 %v1253_v8, 0.0  ;;  %8066 = vmatmul.mubr.msk.bf16.gmra.mxu1 %vm385_vm4, %v1986_v22  ;;  %8286 = vmatmul.mubr.msk.bf16.gmra.mxu0 %vm385_vm4, %v1986_v22 }
 0x1f2   : > { %v1255_v11 = vpop.f32.mrf.mxu0  ;;  %v1786_v27 = vld [vmem:[#allocation2 + $0x208] ss:$2 sm:$0x3f]  ;;  %v1790_v28 = vld [vmem:[#allocation2 + $0x209] ss:$2 sm:$0x3f] }
 0x1f3   : > { %1537 = vst.msk [vmem:[#allocation2 + $0x220] sm:$0xff] %vm385_vm4, %v1439_v10  ;;  %v1256_v18 = vadd.f32 %v9538_v50, %v1255_v11  ;;  %v1792_v35 = vmax.f32 %v1786_v27, %v1790_v28 }
 0x1f4   : > { %v7988_v12 = vpop.f32.mrf.mxu0 }
 0x1f5   : > { %v1440_v13 = vmax.f32 %v1256_v18, 0.0 }
 0x1f6   : > { %v1260_v14 = vpop.f32.mrf.mxu0 }
 0x1f7   : > { %1538 = vst.msk [vmem:[#allocation2 + $0x228] sm:$0xff] %vm385_vm4, %v1440_v13  ;;  %v1261_v15 = vadd.f32 %v9538_v50, %v1260_v14 }
 0x1f8   : > { %v7991_v19 = vpop.f32.mrf.mxu0 }
 0x1f9   : > { %v1441_v20 = vmax.f32 %v1261_v15, 0.0 }
 0x1fa   : > { %v1794_v21 = vld [vmem:[#allocation2 + $0x214] ss:$2 sm:$0xff]  ;;  %v1798_v6 = vld [vmem:[#allocation2 + $0x215] ss:$2 sm:$0xff]  ;;  %v1263_v23 = vpop.f32.mrf.mxu0 }
 0x1fb   : > { %v1801_v25 = vmax.f32 %v1794_v21, %v1798_v6  ;;  %1539 = vst.msk [vmem:[#allocation2 + $0x230] sm:$0xff] %vm385_vm4, %v1441_v20  ;;  %v1264_v26 = vadd.f32 %v9538_v50, %v1263_v23 }
 0x1fc   : > { %v7992_v29 = vpop.f32.mrf.mxu0 }
 0x1fd   : > { %v1803_v30 = vmax.f32 %v1791_v24, %v1801_v25  ;;  %v1442_v31 = vmax.f32 %v1264_v26, 0.0 }
 0x1fe   : > { %v1796_v32 = vld [vmem:[#allocation2 + $0x224] ss:$2 sm:$0x3f]  ;;  %v1800_v33 = vld [vmem:[#allocation2 + $0x225] ss:$2 sm:$0x3f]  ;;  %v1268_v34 = vpop.f32.mrf.mxu0 }
 0x1ff   : > { %1805 = vst.msk [vmem:[#allocation3 + $0xa1] sm:$0xff] %vm385_vm4, %v1803_v30  ;;  %v1802_v38 = vmax.f32 %v1796_v32, %v1800_v33  ;;  %1540 = vst.msk [vmem:[#allocation2 + $0x238] sm:$0xff] %vm385_vm4, %v1442_v31  ;;  %v1269_v39 = vadd.f32 %v9538_v50, %v1268_v34 }
 0x200   : > { %v7995_v40 = vpop.f32.mrf.mxu0 }
 0x201   : > { %v1804_v41 = vmax.f32 %v1792_v35, %v1802_v38  ;;  %v1443_v42 = vmax.f32 %v1269_v39, 0.0 }
 0x202   : > { %v1271_v43 = vpop.f32.mrf.mxu0 }
 0x203   : > { %1806 = vst.msk [vmem:[#allocation3 + $0xa9] sm:$0x3f] %vm1589_vm5, %v1804_v41  ;;  %v1272_v44 = vadd.f32 %v9538_v50, %v1271_v43 }
 0x204   : > { %1541 = vst.msk [vmem:[#allocation2 + $0x240] sm:$0xff] %vm385_vm4, %v1443_v42  ;;  %v7996_v45 = vpop.f32.mrf.mxu0 }
 0x205   : > { %v1444_v46 = vmax.f32 %v1272_v44, 0.0 }
 0x206   : > { %v1276_v47 = vpop.f32.mrf.mxu0  ;;  %v1969_v37 = vld [vmem:[#allocation3 + $0xa1] sm:$0xff] }
 0x207   : > { %1542 = vst.msk [vmem:[#allocation2 + $0x248] sm:$0xff] %vm385_vm4, %v1444_v46  ;;  %v1277_v48 = vadd.f32 %v9538_v50, %v1276_v47  ;;  %v1808_v63 = vld [vmem:[#allocation2 + $0x230] ss:$2 sm:$0xff]  ;;  %v1812_v2 = vld [vmem:[#allocation2 + $0x231] ss:$2 sm:$0xff] }
 0x208   : > { %v7999_v49 = vpop.f32.mrf.mxu0  ;;  %v1815_v22 = vmax.f32 %v1808_v63, %v1812_v2 }
 0x209   : > { %v1445_v51 = vmax.f32 %v1277_v48, 0.0 }
 0x20a   : > { %v1279_v52 = vpop.f32.mrf.mxu0  ;;  %v1970_v53 = vld [vmem:[#allocation3 + $0xa9] sm:$0xff] }
 0x20b   : > { %1543 = vst.msk [vmem:[#allocation2 + $0x250] sm:$0xff] %vm385_vm4, %v1445_v51  ;;  %v1280_v54 = vadd.f32 %v9538_v50, %v1279_v52  ;;  %v9598_v55 = vpack.c.bf16 %v1970_v53, %v1969_v37 }
 0x20c   : > { %v8000_v56 = vpop.f32.mrf.mxu0 }
 0x20d   : > { %v1446_v57 = vmax.f32 %v1280_v54, 0.0  ;;  %8069 = vmatprep.mubr.msk.bf16.mxu1 %vm385_vm4, %v9598_v55  ;;  %8289 = vmatprep.mubr.msk.bf16.mxu0 %vm385_vm4, %v9598_v55 }
 0x20e   : > { %v1284_v58 = vpop.f32.mrf.mxu0  ;;  %v1810_v11 = vld [vmem:[#allocation2 + $0x240] ss:$2 sm:$0x3f]  ;;  %v1814_v18 = vld [vmem:[#allocation2 + $0x241] ss:$2 sm:$0x3f] }
 0x20f   : > { %1544 = vst.msk [vmem:[#allocation2 + $0x258] sm:$0xff] %vm385_vm4, %v1446_v57  ;;  %v1285_v59 = vadd.f32 %v9538_v50, %v1284_v58  ;;  %v1816_v19 = vmax.f32 %v1810_v11, %v1814_v18 }
 0x210   : > { %v8003_v60 = vpop.f32.mrf.mxu0 }
 0x211   : > { %v1447_v61 = vmax.f32 %v1285_v59, 0.0 }
 0x212   : > { %v1287_v36 = vpop.f32.mrf.mxu0 }
 0x213   : > { %1545 = vst.msk [vmem:[#allocation2 + $0x260] sm:$0xff] %vm385_vm4, %v1447_v61  ;;  %v1288_v62 = vadd.f32 %v9538_v50, %v1287_v36 }
 0x214   : > { %v8004_v3 = vpop.f32.mrf.mxu0 }
 0x215   : > { %v1448_v4 = vmax.f32 %v1288_v62, 0.0 }
 0x216   : > { %v1818_v5 = vld [vmem:[#allocation2 + $0x24c] ss:$2 sm:$0xff]  ;;  %v1822_v7 = vld [vmem:[#allocation2 + $0x24d] ss:$2 sm:$0xff]  ;;  %v1292_v8 = vpop.f32.mrf.mxu0 }
 0x217   : > { %v1825_v9 = vmax.f32 %v1818_v5, %v1822_v7  ;;  %1546 = vst.msk [vmem:[#allocation2 + $0x268] sm:$0xff] %vm385_vm4, %v1448_v4  ;;  %v1293_v10 = vadd.f32 %v9538_v50, %v1292_v8 }
 0x218   : > { %v8007_v12 = vpop.f32.mrf.mxu0 }
 0x219   : > { %v1827_v13 = vmax.f32 %v1815_v22, %v1825_v9  ;;  %v1449_v14 = vmax.f32 %v1293_v10, 0.0 }
 0x21a   : > { %v1820_v15 = vld [vmem:[#allocation2 + $0x25c] ss:$2 sm:$0x3f]  ;;  %v1824_v16 = vld [vmem:[#allocation2 + $0x25d] ss:$2 sm:$0x3f]  ;;  %v1295_v17 = vpop.f32.mrf.mxu0 }
 0x21b   : > { %1829 = vst.msk [vmem:[#allocation3 + $0xb1] sm:$0xff] %vm385_vm4, %v1827_v13  ;;  %v1826_v20 = vmax.f32 %v1820_v15, %v1824_v16  ;;  %1547 = vst.msk [vmem:[#allocation2 + $0x270] sm:$0xff] %vm385_vm4, %v1449_v14  ;;  %v1296_v21 = vadd.f32 %v9538_v50, %v1295_v17 }
 0x21c   : > { %v8008_v6 = vpop.f32.mrf.mxu0 }
 0x21d   : > { %v1828_v23 = vmax.f32 %v1816_v19, %v1826_v20  ;;  %v1450_v24 = vmax.f32 %v1296_v21, 0.0 }
 0x21e   : > { %v1300_v25 = vpop.f32.mrf.mxu0 }
 0x21f   : > { %1830 = vst.msk [vmem:[#allocation3 + $0xb9] sm:$0x3f] %vm1589_vm5, %v1828_v23  ;;  %v1301_v26 = vadd.f32 %v9538_v50, %v1300_v25 }
 0x220   : > { %1548 = vst.msk [vmem:[#allocation2 + $0x278] sm:$0xff] %vm385_vm4, %v1450_v24  ;;  %v8011_v27 = vpop.f32.mrf.mxu0 }
 0x221   : > { %v1451_v28 = vmax.f32 %v1301_v26, 0.0 }
 0x222   : > { %v1303_v29 = vpop.f32.mrf.mxu0  ;;  %v1971_v34 = vld [vmem:[#allocation3 + $0xb1] sm:$0xff]  ;;  %v1836_v49 = vld [vmem:[#allocation2 + $0x269] ss:$2 sm:$0xff] }
 0x223   : > { %1549 = vst.msk [vmem:[#allocation2 + $0x280] sm:$0xff] %vm385_vm4, %v1451_v28  ;;  %v1304_v30 = vadd.f32 %v9538_v50, %v1303_v29  ;;  %v1832_v48 = vld [vmem:[#allocation2 + $0x268] ss:$2 sm:$0xff] }
 0x224   : > { %v8012_v31 = vpop.f32.mrf.mxu0  ;;  %v1839_v56 = vmax.f32 %v1832_v48, %v1836_v49 }
 0x225   : > { %v1452_v32 = vmax.f32 %v1304_v30, 0.0 }
 0x226   : > { %v1308_v33 = vpop.f32.mrf.mxu0  ;;  %v1972_v35 = vld [vmem:[#allocation3 + $0xb9] sm:$0xff] }
 0x227   : > { %1550 = vst.msk [vmem:[#allocation2 + $0x288] sm:$0xff] %vm385_vm4, %v1452_v32  ;;  %v1309_v38 = vadd.f32 %v9538_v50, %v1308_v33  ;;  %v9620_v39 = vpack.c.bf16 %v1972_v35, %v1971_v34 }
 0x228   : > { %v8015_v40 = vpop.f32.mrf.mxu0 }
 0x229   : > { %v1453_v41 = vmax.f32 %v1309_v38, 0.0  ;;  %8070 = vmatmul.mubr.msk.bf16.gmra.mxu1 %vm385_vm4, %v9620_v39  ;;  %8290 = vmatmul.mubr.msk.bf16.gmra.mxu0 %vm385_vm4, %v9620_v39 }
 0x22a   : > { %v1311_v42 = vpop.f32.mrf.mxu0  ;;  %v1834_v59 = vld [vmem:[#allocation2 + $0x278] ss:$2 sm:$0x3f]  ;;  %v1838_v60 = vld [vmem:[#allocation2 + $0x279] ss:$2 sm:$0x3f] }
 0x22b   : > { %1551 = vst.msk [vmem:[#allocation2 + $0x290] sm:$0xff] %vm385_vm4, %v1453_v41  ;;  %v1312_v43 = vadd.f32 %v9538_v50, %v1311_v42  ;;  %v1840_v4 = vmax.f32 %v1834_v59, %v1838_v60 }
 0x22c   : > { %v8016_v44 = vpop.f32.mrf.mxu0 }
 0x22d   : > { %v1454_v45 = vmax.f32 %v1312_v43, 0.0 }
 0x22e   : > { %v1316_v46 = vpop.f32.mrf.mxu0 }
 0x22f   : > { %1552 = vst.msk [vmem:[#allocation2 + $0x298] sm:$0xff] %vm385_vm4, %v1454_v45  ;;  %v1317_v47 = vadd.f32 %v9538_v50, %v1316_v46 }
 0x230   : > { %v8019_v51 = vpop.f32.mrf.mxu0 }
 0x231   : > { %v1455_v52 = vmax.f32 %v1317_v47, 0.0 }
 0x232   : > { %v1842_v37 = vld [vmem:[#allocation2 + $0x284] ss:$2 sm:$0xff]  ;;  %v1846_v53 = vld [vmem:[#allocation2 + $0x285] ss:$2 sm:$0xff]  ;;  %v1319_v54 = vpop.f32.mrf.mxu0 }
 0x233   : > { %v1849_v57 = vmax.f32 %v1842_v37, %v1846_v53  ;;  %1553 = vst.msk [vmem:[#allocation2 + $0x2a0] sm:$0xff] %vm385_vm4, %v1455_v52  ;;  %v1320_v58 = vadd.f32 %v9538_v50, %v1319_v54 }
 0x234   : > { %v8020_v61 = vpop.f32.mrf.mxu0 }
 0x235   : > { %v1851_v36 = vmax.f32 %v1839_v56, %v1849_v57  ;;  %v1456_v62 = vmax.f32 %v1320_v58, 0.0 }
 0x236   : > { %v1844_v63 = vld [vmem:[#allocation2 + $0x294] ss:$2 sm:$0x3f]  ;;  %v1848_v2 = vld [vmem:[#allocation2 + $0x295] ss:$2 sm:$0x3f]  ;;  %v1324_v3 = vpop.f32.mrf.mxu0 }
 0x237   : > { %1853 = vst.msk [vmem:[#allocation3 + $0xc1] sm:$0xff] %vm385_vm4, %v1851_v36  ;;  %v1850_v5 = vmax.f32 %v1844_v63, %v1848_v2  ;;  %1554 = vst.msk [vmem:[#allocation2 + $0x2a8] sm:$0xff] %vm385_vm4, %v1456_v62  ;;  %v1325_v7 = vadd.f32 %v9538_v50, %v1324_v3  ;;  %v1903_v2 = vld [vmem:[#allocation3] sm:$0xff]  ;;  %v1904_v3 = vld [vmem:[#allocation3 + $0x8] sm:$0xff] }
 0x238   : > { %v8023_v8 = vpop.f32.mrf.mxu0 }
 0x239   : > { %v1852_v22 = vmax.f32 %v1840_v4, %v1850_v5  ;;  %v1457_v9 = vmax.f32 %v1325_v7, 0.0  ;;  %v1892_v5 = vld [vmem:[#allocation2 + $0x304] ss:$2 sm:$0x3f] }
 0x23a   : > { %v1327_v10 = vpop.f32.mrf.mxu0  ;;  %v1896_v8 = vld [vmem:[#allocation2 + $0x305] ss:$2 sm:$0x3f] }
 0x23b   : > { %1854 = vst.msk [vmem:[#allocation3 + $0xc9] sm:$0x3f] %vm1589_vm5, %v1852_v22  ;;  %v1328_v11 = vadd.f32 %v9538_v50, %v1327_v10  ;;  %v1931_v10 = vpack.c.bf16 %v1904_v3, %v1903_v2 }
 0x23c   : > { %1555 = vst.msk [vmem:[#allocation2 + $0x2b0] sm:$0xff] %vm385_vm4, %v1457_v9  ;;  %v8024_v18 = vpop.f32.mrf.mxu0 }
 0x23d   : > { %v1458_v12 = vmax.f32 %v1328_v11, 0.0  ;;  %v1898_v18 = vmax.f32 %v1892_v5, %v1896_v8  ;;  %v2395_v8 = vld [vmem:[#allocation3 + $0xa] sm:$0xff] }
 0x23e   : > { %v1332_v13 = vpop.f32.mrf.mxu0  ;;  %v1973_v19 = vld [vmem:[#allocation3 + $0xc1] sm:$0xff]  ;;  %v1856_v31 = vld [vmem:[#allocation2 + $0x2a0] ss:$2 sm:$0xff]  ;;  %v1860_v32 = vld [vmem:[#allocation2 + $0x2a1] ss:$2 sm:$0xff] }
 0x23f   : > { %1556 = vst.msk [vmem:[#allocation2 + $0x2b8] sm:$0xff] %vm385_vm4, %v1458_v12  ;;  %v1333_v14 = vadd.f32 %v9538_v50, %v1332_v13  ;;  %v1863_v41 = vmax.f32 %v1856_v31, %v1860_v32  ;;  %v9687_v31 = vld [vmem:[%s11229_s3 + $0x38] sm:$0xff]   ;;  %v1910_v32 = vld [vmem:[#allocation3 + $0x38] sm:$0xff]  ;;  %v1927_v3 = vld [vmem:[#allocation3 + $0xc0] sm:$0xff] }
 0x240   : > { %v8027_v15 = vpop.f32.mrf.mxu0 }
 0x241   : > { %v1459_v16 = vmax.f32 %v1333_v14, 0.0 }
 0x242   : > { %v1335_v17 = vpop.f32.mrf.mxu0  ;;  %v1974_v20 = vld [vmem:[#allocation3 + $0xc9] sm:$0xff] }
 0x243   : > { %1557 = vst.msk [vmem:[#allocation2 + $0x2c0] sm:$0xff] %vm385_vm4, %v1459_v16  ;;  %v1336_v21 = vadd.f32 %v9538_v50, %v1335_v17  ;;  %v9642_v6 = vpack.c.bf16 %v1974_v20, %v1973_v19  ;;  %v1906_v16 = vld [vmem:[#allocation3 + $0x18] sm:$0xff]  ;;  %v1908_v19 = vld [vmem:[#allocation3 + $0x28] sm:$0xff] }
 0x244   : > { %v8028_v23 = vpop.f32.mrf.mxu0 }
 0x245   : > { %v1460_v24 = vmax.f32 %v1336_v21, 0.0  ;;  %8073 = vmatprep.mubr.msk.bf16.mxu1 %vm385_vm4, %v9642_v6  ;;  %8293 = vmatprep.mubr.msk.bf16.mxu0 %vm385_vm4, %v9642_v6  ;;  %v1905_v23 = vld [vmem:[#allocation3 + $0x10] sm:$0xff] }
 0x246   : > { %v1340_v25 = vpop.f32.mrf.mxu0  ;;  %v1858_v44 = vld [vmem:[#allocation2 + $0x2b0] ss:$2 sm:$0x3f]  ;;  %v1862_v45 = vld [vmem:[#allocation2 + $0x2b1] ss:$2 sm:$0x3f] }
 0x247   : > { %1558 = vst.msk [vmem:[#allocation2 + $0x2c8] sm:$0xff] %vm385_vm4, %v1460_v24  ;;  %v1341_v26 = vadd.f32 %v9538_v50, %v1340_v25  ;;  %v1864_v37 = vmax.f32 %v1858_v44, %v1862_v45  ;;  %v1916_v44 = vld [vmem:[#allocation3 + $0x68] sm:$0xff]  ;;  %v1913_v45 = vld [vmem:[#allocation3 + $0x50] sm:$0xff] }
 0x248   : > { %v8031_v27 = vpop.f32.mrf.mxu0 }
 0x249   : > { %v1461_v28 = vmax.f32 %v1341_v26, 0.0  ;;  %v9671_v26 = vpack.c.bf16 %v1906_v16, %v1905_v23  ;;  %v1907_v27 = vld [vmem:[#allocation3 + $0x20] sm:$0xff] }
 0x24a   : > { %v1343_v29 = vpop.f32.mrf.mxu0 }
 0x24b   : > { %1559 = vst.msk [vmem:[#allocation2 + $0x2d0] sm:$0xff] %vm385_vm4, %v1461_v28  ;;  %v1344_v30 = vadd.f32 %v9538_v50, %v1343_v29  ;;  %v8779_v28 = vld [vmem:[%s11229_s3 + $0x20] sm:$0xff]   ;;  %v9676_v29 = vpack.c.bf16 %v1908_v19, %v1907_v27  ;;  %v2401_v19 = vld [vmem:[#allocation3 + $0x3a] sm:$0xff] }
 0x24c   : > { %v8032_v33 = vpop.f32.mrf.mxu0  ;;  %v2405_v27 = vld [vmem:[#allocation3 + $0x5a] sm:$0xff] }
 0x24d   : > { %v1462_v34 = vmax.f32 %v1344_v30, 0.0  ;;  %v1912_v33 = vld [vmem:[#allocation3 + $0x48] sm:$0xff] }
 0x24e   : > { %v1866_v35 = vld [vmem:[#allocation2 + $0x2bc] ss:$2 sm:$0xff]  ;;  %v1870_v38 = vld [vmem:[#allocation2 + $0x2bd] ss:$2 sm:$0xff]  ;;  %v1348_v40 = vpop.f32.mrf.mxu0 }
 0x24f   : > { %v1873_v42 = vmax.f32 %v1866_v35, %v1870_v38  ;;  %1560 = vst.msk [vmem:[#allocation2 + $0x2d8] sm:$0xff] %vm385_vm4, %v1462_v34  ;;  %v1349_v43 = vadd.f32 %v9538_v50, %v1348_v40  ;;  %v1909_v34 = vld [vmem:[#allocation3 + $0x30] sm:$0xff]  ;;  %v1911_v38 = vld [vmem:[#allocation3 + $0x40] sm:$0xff] }
 0x250   : > { %v8035_v46 = vpop.f32.mrf.mxu0  ;;  %v9689_v35 = vpack.c.bf16 %v1910_v32, %v1909_v34  ;;  %v2406_v32 = vld [vmem:[#allocation3 + $0x62] sm:$0xff]  ;;  %v2409_v34 = vld [vmem:[#allocation3 + $0x7a] sm:$0xff] }
 0x251   : > { %v1875_v47 = vmax.f32 %v1863_v41, %v1873_v42  ;;  %v1463_v48 = vmax.f32 %v1349_v43, 0.0  ;;  %v1914_v43 = vld [vmem:[#allocation3 + $0x58] sm:$0xff] }
 0x252   : > { %v1868_v49 = vld [vmem:[#allocation2 + $0x2cc] ss:$2 sm:$0x3f]  ;;  %v1872_v51 = vld [vmem:[#allocation2 + $0x2cd] ss:$2 sm:$0x3f]  ;;  %v1351_v52 = vpop.f32.mrf.mxu0  ;;  %v9702_v46 = vpack.c.bf16 %v1914_v43, %v1913_v45 }
 0x253   : > { %1877 = vst.msk [vmem:[#allocation3 + $0xd1] sm:$0xff] %vm385_vm4, %v1875_v47  ;;  %v1874_v53 = vmax.f32 %v1868_v49, %v1872_v51  ;;  %1561 = vst.msk [vmem:[#allocation2 + $0x2e0] sm:$0xff] %vm385_vm4, %v1463_v48  ;;  %v1352_v54 = vadd.f32 %v9538_v50, %v1351_v52  ;;  %v1915_v47 = vld [vmem:[#allocation3 + $0x60] sm:$0xff]  ;;  %v1918_v49 = vld [vmem:[#allocation3 + $0x78] sm:$0xff] }
 0x254   : > { %v8036_v56 = vpop.f32.mrf.mxu0  ;;  %11261 = vst [vmem:[#allocation11_spill] sm:$0xff] %v9702_v46  ;;  %v9704_v48 = vpack.c.bf16 %v1916_v44, %v1915_v47  ;;  %v1920_v51 = vld [vmem:[#allocation3 + $0x88] sm:$0xff]  ;;  %v1917_v52 = vld [vmem:[#allocation3 + $0x70] sm:$0xff]  ;;  %v2413_v45 = vld [vmem:[#allocation3 + $0x9a] sm:$0xff] }
 0x255   : > { %v1876_v57 = vmax.f32 %v1864_v37, %v1874_v53  ;;  %v1464_v58 = vmax.f32 %v1352_v54, 0.0  ;;  %v9710_v37 = vpack.c.bf16 %v1918_v49, %v1917_v52  ;;  %v1919_v53 = vld [vmem:[#allocation3 + $0x80] sm:$0xff]  ;;  %v1922_v56 = vld [vmem:[#allocation3 + $0x98] sm:$0xff]  ;;  %v2415_v47 = vld [vmem:[#allocation3 + $0xaa] sm:$0xff] }
 0x256   : > { %v1356_v59 = vpop.f32.mrf.mxu0  ;;  %11262 = vst [vmem:[#allocation12_spill] sm:$0xff] %v9704_v48  ;;  %v9712_v54 = vpack.c.bf16 %v1920_v51, %v1919_v53  ;;  %v2410_v43 = vld [vmem:[#allocation3 + $0x82] sm:$0xff]  ;;  %v2412_v49 = vld [vmem:[#allocation3 + $0x92] sm:$0xff] }
 0x257   : > { %1878 = vst.msk [vmem:[#allocation3 + $0xd9] sm:$0x3f] %vm1589_vm5, %v1876_v57  ;;  %v1357_v60 = vadd.f32 %v9538_v50, %v1356_v59  ;;  %11263 = vst [vmem:[#allocation13_spill] sm:$0xff] %v9710_v37  ;;  %v1924_v57 = vld [vmem:[#allocation3 + $0xa8] sm:$0xff]  ;;  %v9778_v51 = vpack.c.bf16 %v2413_v45, %v2412_v49  ;;  %v2942_v45 = vld [vmem:[#allocation3 + $0x11] sm:$0xff] }
 0x258   : > { %1562 = vst.msk [vmem:[#allocation2 + $0x2e8] sm:$0xff] %vm385_vm4, %v1464_v58  ;;  %v8039_v61 = vpop.f32.mrf.mxu0  ;;  %11264 = vst [vmem:[#allocation14_spill] sm:$0xff] %v9712_v54  ;;  %v1921_v58 = vld [vmem:[#allocation3 + $0x90] sm:$0xff]  ;;  %v2414_v52 = vld [vmem:[#allocation3 + $0xa2] sm:$0xff] }
 0x259   : > { %v1465_v36 = vmax.f32 %v1357_v60, 0.0  ;;  %v9718_v59 = vpack.c.bf16 %v1922_v56, %v1921_v58  ;;  %v1923_v60 = vld [vmem:[#allocation3 + $0xa0] sm:$0xff]  ;;  %v9780_v53 = vpack.c.bf16 %v2415_v47, %v2414_v52  ;;  %v2416_v58 = vld [vmem:[#allocation3 + $0xb2] sm:$0xff]  ;;  %v2945_v52 = vld [vmem:[#allocation3 + $0x29] sm:$0xff] }
 0x25a   : > { %v1359_v62 = vpop.f32.mrf.mxu0  ;;  %v1975_v22 = vld [vmem:[#allocation3 + $0xd1] sm:$0xff]  ;;  %v9720_v61 = vpack.c.bf16 %v1924_v57, %v1923_v60  ;;  %v2417_v56 = vld [vmem:[#allocation3 + $0xba] sm:$0xff] }
 0x25b   : > { %1563 = vst.msk [vmem:[#allocation2 + $0x2f0] sm:$0xff] %vm385_vm4, %v1465_v36  ;;  %v1360_v63 = vadd.f32 %v9538_v50, %v1359_v62  ;;  %v1880_v14 = vld [vmem:[#allocation2 + $0x2d8] ss:$2 sm:$0xff]  ;;  %v1884_v15 = vld [vmem:[#allocation2 + $0x2d9] ss:$2 sm:$0xff]  ;;  %11265 = vst [vmem:[#allocation15_spill] sm:$0xff] %v9718_v59  ;;  %v9786_v60 = vpack.c.bf16 %v2417_v56, %v2416_v58 }
 0x25c   : > { %v8040_v4 = vpop.f32.mrf.mxu0  ;;  %v1887_v24 = vmax.f32 %v1880_v14, %v1884_v15  ;;  %11266 = vst [vmem:[#allocation16_spill] sm:$0xff] %v9720_v61  ;;  %v1926_v36 = vld [vmem:[#allocation3 + $0xb8] sm:$0xff]  ;;  %v1928_v62 = vld [vmem:[#allocation3 + $0xc8] sm:$0xff]  ;;  %v8781_v15 = vld [vmem:[%s11229_s3 + $0x30] sm:$0xff]  }
 0x25d   : > { %v1466_v7 = vmax.f32 %v1360_v63, 0.0  ;;  %v1925_v63 = vld [vmem:[#allocation3 + $0xb0] sm:$0xff]  ;;  %v9728_v4 = vpack.c.bf16 %v1928_v62, %v1927_v3  ;;  %v2398_v14 = vld [vmem:[#allocation3 + $0x22] sm:$0xff]  ;;  %v9794_v3 = vpop.f32.mrf.mxu1 }
 0x25e   : > { %v1976_v9 = vld [vmem:[#allocation3 + $0xd9] sm:$0xff]  ;;  %v9726_v2 = vpack.c.bf16 %v1926_v36, %v1925_v63  ;;  %v2419_v57 = vld [vmem:[#allocation3 + $0xca] sm:$0xff]  ;;  %v2418_v36 = vld [vmem:[#allocation3 + $0xc2] sm:$0xff] }
 0x25f   : > { %1564 = vst.msk [vmem:[#allocation2 + $0x2f8] sm:$0xff] %vm385_vm4, %v1466_v7  ;;  %v9663_v11 = vpack.c.bf16 %v1976_v9, %v1975_v22  ;;  %11268 = vst [vmem:[#allocation18_spill] sm:$0xff] %v9728_v4  ;;  %v1930_v5 = vld [vmem:[#allocation3 + $0xd8] sm:$0xff]  ;;  %v2394_v7 = vld [vmem:[#allocation3 + $0x2] sm:$0xff]  ;;  %v9788_v62 = vpack.c.bf16 %v2419_v57, %v2418_v36 }
 0x260   : > { %11267 = vst [vmem:[#allocation17_spill] sm:$0xff] %v9726_v2  ;;  %v1929_v22 = vld [vmem:[#allocation3 + $0xd0] sm:$0xff]  ;;  %v2947_v57 = vld [vmem:[#allocation3 + $0x39] sm:$0xff]  ;;  %v2944_v58 = vld [vmem:[#allocation3 + $0x21] sm:$0xff] }
 0x261   : > { %8074 = vmatmul.mubr.msk.bf16.gmra.mxu1 %vm385_vm4, %v9663_v11  ;;  %8294 = vmatmul.mubr.msk.bf16.gmra.mxu0 %vm385_vm4, %v9663_v11  ;;  %v9734_v9 = vpack.c.bf16 %v1930_v5, %v1929_v22  ;;  %v2420_v5 = vld [vmem:[#allocation3 + $0xd2] sm:$0xff]  ;;  %v2971_v36 = vpack.c.bf16 %v2945_v52, %v2944_v58  ;;  %v2948_v52 = vld [vmem:[#allocation3 + $0x41] sm:$0xff] }
 0x262   : > { %v1882_v50 = vld [vmem:[#allocation2 + $0x2e8] ss:$2 sm:$0x3f]  ;;  %v1886_v12 = vld [vmem:[#allocation2 + $0x2e9] ss:$2 sm:$0x3f]  ;;  %8081 = vmatprep.mubr.msk.bf16.mxu1 %vm385_vm4, %v1931_v10  ;;  %v2422_v10 = vpack.c.bf16 %v2395_v8, %v2394_v7  ;;  %v9798_v8 = vpop.f32.mrf.mxu1 }
 0x263   : > { %v1888_v13 = vmax.f32 %v1882_v50, %v1886_v12  ;;  %11269 = vst [vmem:[#allocation19_spill] sm:$0xff] %v9734_v9  ;;  %v2399_v50 = vld [vmem:[#allocation3 + $0x2a] sm:$0xff]  ;;  %v2396_v12 = vld [vmem:[#allocation3 + $0x12] sm:$0xff] }
 0x264   : > { %v9744_v16 = vpack.c.bf16 %v2399_v50, %v2398_v14  ;;  %v9804_v22 = vpop.f32.mrf.mxu1 }
 0x265   : > { %v1900_v17 = vmax.f32 %v1888_v13, %v1898_v18  ;;  %v2397_v18 = vld [vmem:[#allocation3 + $0x1a] sm:$0xff] }
 0x266   : > { %v1890_v20 = vld [vmem:[#allocation2 + $0x2f4] ss:$2 sm:$0xff]  ;;  %v1894_v21 = vld [vmem:[#allocation2 + $0x2f5] ss:$2 sm:$0xff]  ;;  %v9739_v13 = vpack.c.bf16 %v2397_v18, %v2396_v12  ;;  %11270 = vst [vmem:[#allocation20_spill] sm:$0xff] %v9744_v16  ;;  %v9809_v18 = vpop.f32.mrf.mxu1 }
 0x267   : > { %1902 = vst.msk [vmem:[#allocation3 + $0xe9] sm:$0x3f] %vm1589_vm5, %v1900_v17  ;;  %v1897_v25 = vmax.f32 %v1890_v20, %v1894_v21  ;;  %v8782_v17 = vld [vmem:[%s11229_s3 + $0x48] sm:$0xff]   ;;  %v2403_v20 = vld [vmem:[#allocation3 + $0x4a] sm:$0xff] }
 0x268   : > { %v2400_v21 = vld [vmem:[#allocation3 + $0x32] sm:$0xff]  ;;  %v9815_v50 = vpop.f32.mrf.mxu1 }
 0x269   : > { %v1899_v30 = vmax.f32 %v1887_v24, %v1897_v25  ;;  %8082 = vmatmul.mubr.msk.bf16.vlgmr.msra.gmra.mxu1 %vm385_vm4, %v9671_v26  ;;  %v9754_v23 = vpack.c.bf16 %v2401_v19, %v2400_v21  ;;  %v2402_v24 = vld [vmem:[#allocation3 + $0x42] sm:$0xff] }
 0x26a   : > { %8110 = vmatpush3.bf16.msra.mxu1 %v9575_v1  ;;  %8085 = vmatprep.mubr.msk.bf16.mxu1 %vm385_vm4, %v9676_v29  ;;  %v9692_v1 = vpack.c.bf16 %v1912_v33, %v1911_v38  ;;  %v9756_v25 = vpack.c.bf16 %v2403_v20, %v2402_v24  ;;  %v2411_v38 = vld [vmem:[#allocation3 + $0x8a] sm:$0xff]  ;;  %v9820_v12 = vpop.f32.mrf.mxu1 }
 0x26b   : > { %1901 = vst.msk [vmem:[#allocation3 + $0xe1] sm:$0xff] %vm385_vm4, %v1899_v30  ;;  %8111 = vmatprep.subr.bf16.mxu1 %v8779_v28  ;;  %11271 = vst [vmem:[#allocation21_spill] sm:$0xff] %v9754_v23  ;;  %v2404_v30 = vld [vmem:[#allocation3 + $0x52] sm:$0xff]  ;;  %v9772_v44 = vpack.c.bf16 %v2411_v38, %v2410_v43 }
 0x26c   : > { %11272 = vst [vmem:[#allocation22_spill] sm:$0xff] %v9756_v25  ;;  %v9826_v14 = vpop.f32.mrf.mxu1 }
 0x26e   : > { %8112 = vmatpush3.bf16.msra.mxu1 %v8779_v28  ;;  %v3789_v40 = vld [vmem:[#allocation3 + $0xe9] sm:$0xff] }
 0x26f   : > { %8141 = vmatprep.subr.bf16.mxu1 %v9687_v31  ;;  %v2407_v28 = vld [vmem:[#allocation3 + $0x6a] sm:$0xff] }
 0x270   : > { %v9764_v33 = vpack.c.bf16 %v2407_v28, %v2406_v32 }
 0x271   : > { %8086 = vmatmul.mubr.msk.bf16.gmra.mxu1 %vm385_vm4, %v9689_v35 }
 0x272   : > { %8089 = vmatprep.mubr.msk.bf16.mxu1 %vm385_vm4, %v9692_v1  ;;  %v3788_v41 = vld [vmem:[#allocation3 + $0xe1] sm:$0xff] }
 0x273   : > { %v9698_v42 = vpack.c.bf16 %v3789_v40, %v3788_v41  ;;  %v2408_v40 = vld [vmem:[#allocation3 + $0x72] sm:$0xff]  ;;  %v2421_v63 = vld [vmem:[#allocation3 + $0xda] sm:$0xff] }
 0x274   : > { %v9770_v41 = vpack.c.bf16 %v2409_v34, %v2408_v40  ;;  %v9796_v7 = vpack.c.bf16 %v2421_v63, %v2420_v5  ;;  %v2694_v32 = vld [vmem:[#allocation3 + $0xe0] sm:$0xff]  ;;  %v2695_v34 = vld [vmem:[#allocation3 + $0xe8] sm:$0xff]  ;;  %v2946_v63 = vld [vmem:[#allocation3 + $0x31] sm:$0xff] }
 0x275   : > { %8297 = vmatprep.mubr.msk.bf16.mxu0 %vm385_vm4, %v9698_v42  ;;  %v2943_v40 = vld [vmem:[#allocation3 + $0x19] sm:$0xff]  ;;  %v9864_v43 = vpack.c.bf16 %v2695_v34, %v2694_v32 }
 0x276   : > { %v2970_v47 = vpack.c.bf16 %v2943_v40, %v2942_v45  ;;  %v8785_v5 = vld [vmem:[%s11229_s3 + $0x50] sm:$0xff]   ;;  %v9885_v40 = vld [vmem:[%s11229_s3 + $0x68] sm:$0xff]   ;;  %v2949_v45 = vld [vmem:[#allocation3 + $0x49] sm:$0xff] }
 0x277   : > { %11274 = vst [vmem:[#allocation24_spill] sm:$0xff] %v9864_v43  ;;  %v2973_v58 = vpack.c.bf16 %v2949_v45, %v2948_v52 }
 0x279   : > { %8090 = vmatmul.mubr.msk.bf16.gmra.mxu1 %vm385_vm4, %v9702_v46 }
 0x27a   : > { %8093 = vmatprep.mubr.msk.bf16.mxu1 %vm385_vm4, %v9704_v48 }
 0x281   : > { %8094 = vmatmul.mubr.msk.bf16.gmra.mxu1 %vm385_vm4, %v9710_v37 }
 0x282   : > { %8097 = vmatprep.mubr.msk.bf16.mxu1 %vm385_vm4, %v9712_v54 }
 0x289   : > { %8098 = vmatmul.mubr.msk.bf16.gmra.mxu1 %vm385_vm4, %v9718_v59 }
 0x28a   : > { %8101 = vmatprep.mubr.msk.bf16.mxu1 %vm385_vm4, %v9720_v61 }
 0x291   : > { %8102 = vmatmul.mubr.msk.bf16.gmra.mxu1 %vm385_vm4, %v9726_v2 }
 0x292   : > { %8105 = vmatprep.mubr.msk.bf16.mxu1 %vm385_vm4, %v9728_v4 }
 0x299   : > { %8106 = vmatmul.mubr.msk.bf16.gmra.mxu1 %vm385_vm4, %v9734_v9 }
 0x29a   : > { %8113 = vmatprep.mubr.msk.bf16.mxu1 %vm385_vm4, %v2422_v10  ;;  %v8783_v10 = vld [vmem:[%s11229_s3 + $0x40] sm:$0xff]  }
 0x2a1   : > { %8114 = vmatmul.mubr.msk.bf16.vlgmr.msra.gmra.mxu1 %vm385_vm4, %v9739_v13 }
 0x2a2   : > { %8142 = vmatpush3.bf16.msra.mxu1 %v9687_v31  ;;  %8117 = vmatprep.mubr.msk.bf16.mxu1 %vm385_vm4, %v9744_v16  ;;  %v9762_v31 = vpack.c.bf16 %v2405_v27, %v2404_v30 }
 0x2a3   : > { %8143 = vmatprep.subr.bf16.mxu1 %v8781_v15 }
 0x2a4   : > { %11273 = vst [vmem:[#allocation23_spill] sm:$0xff] %v9762_v31 }
 0x2a6   : > { %8144 = vmatpush3.bf16.msra.mxu1 %v8781_v15  ;;  %v9828_v15 = vpop.f32.mrf.mxu1 }
 0x2a7   : > { %8173 = vmatprep.subr.bf16.mxu1 %v8782_v17 }
 0x2a9   : > { %8118 = vmatmul.mubr.msk.bf16.gmra.mxu1 %vm385_vm4, %v9754_v23 }
 0x2aa   : > { %8121 = vmatprep.mubr.msk.bf16.mxu1 %vm385_vm4, %v9756_v25 }
 0x2b1   : > { %8122 = vmatmul.mubr.msk.bf16.gmra.mxu1 %vm385_vm4, %v9762_v31 }
 0x2b2   : > { %8125 = vmatprep.mubr.msk.bf16.mxu1 %vm385_vm4, %v9764_v33 }
 0x2b9   : > { %8126 = vmatmul.mubr.msk.bf16.gmra.mxu1 %vm385_vm4, %v9770_v41 }
 0x2ba   : > { %8129 = vmatprep.mubr.msk.bf16.mxu1 %vm385_vm4, %v9772_v44 }
 0x2c1   : > { %8130 = vmatmul.mubr.msk.bf16.gmra.mxu1 %vm385_vm4, %v9778_v51 }
 0x2c2   : > { %8133 = vmatprep.mubr.msk.bf16.mxu1 %vm385_vm4, %v9780_v53 }
 0x2c9   : > { %8134 = vmatmul.mubr.msk.bf16.gmra.mxu1 %vm385_vm4, %v9786_v60 }
 0x2ca   : > { %8137 = vmatprep.mubr.msk.bf16.mxu1 %vm385_vm4, %v9788_v62 }
 0x2d1   : > { %8138 = vmatmul.mubr.msk.bf16.gmra.mxu1 %vm385_vm4, %v9796_v7 }
 0x2d2   : > { %8145 = vmatprep.mubr.msk.bf16.mxu1 %vm385_vm4, %v9671_v26  ;;  %v8784_v26 = vld [vmem:[%s11229_s3 + $0x58] sm:$0xff]  }
 0x2d9   : > { %8146 = vmatmul.mubr.msk.bf16.vlgmr.msra.gmra.mxu1 %vm385_vm4, %v9676_v29 }
 0x2da   : > { %8174 = vmatpush3.bf16.msra.mxu1 %v8782_v17  ;;  %8149 = vmatprep.mubr.msk.bf16.mxu1 %vm385_vm4, %v9689_v35  ;;  %v9830_v17 = vpop.f32.mrf.mxu1 }
 0x2db   : > { %8175 = vmatprep.subr.bf16.mxu1 %v8783_v10 }
 0x2dc   : > { %v9836_v19 = vpop.f32.mrf.mxu1 }
 0x2de   : > { %8176 = vmatpush3.bf16.msra.mxu1 %v8783_v10  ;;  %v9838_v20 = vpop.f32.mrf.mxu1  ;;  %v2972_v10 = vpack.c.bf16 %v2947_v57, %v2946_v63  ;;  %v2950_v63 = vld [vmem:[#allocation3 + $0x51] sm:$0xff] }
 0x2df   : > { %8205 = vmatprep.subr.bf16.mxu1 %v8784_v26 }
 0x2e0   : > { %v9844_v21 = vpop.f32.mrf.mxu1 }
 0x2e1   : > { %8150 = vmatmul.mubr.msk.bf16.gmra.mxu1 %vm385_vm4, %v9692_v1 }
 0x2e2   : > { %8153 = vmatprep.mubr.msk.bf16.mxu1 %vm385_vm4, %v9702_v46  ;;  %v9846_v24 = vpop.f32.mrf.mxu1 }
 0x2e4   : > { %v9852_v27 = vpop.f32.mrf.mxu1 }
 0x2e6   : > { %v9854_v28 = vpop.f32.mrf.mxu1 }
 0x2e8   : > { %v9860_v30 = vpop.f32.mrf.mxu1 }
 0x2e9   : > { %8154 = vmatmul.mubr.msk.bf16.gmra.mxu1 %vm385_vm4, %v9704_v48 }
 0x2ea   : > { %8157 = vmatprep.mubr.msk.bf16.mxu1 %vm385_vm4, %v9710_v37  ;;  %v9862_v38 = vpop.f32.mrf.mxu1 }
 0x2ec   : > { %v9866_v49 = vpop.f32.mrf.mxu1 }
 0x2ee   : > { %v9871_v56 = vpop.f32.mrf.mxu1 }
 0x2f0   : > { %v9876_v32 = vpop.f32.mrf.mxu1 }
 0x2f1   : > { %8158 = vmatmul.mubr.msk.bf16.gmra.mxu1 %vm385_vm4, %v9712_v54  ;;  %11275 = vst [vmem:[#allocation25_spill] sm:$0xff] %v9876_v32  ;;  %v2958_v54 = vld [vmem:[#allocation3 + $0x91] sm:$0xff] }
 0x2f2   : > { %8161 = vmatprep.mubr.msk.bf16.mxu1 %vm385_vm4, %v9718_v59  ;;  %v9880_v34 = vpop.f32.mrf.mxu1 }
 0x2f3   : > { %11276 = vst [vmem:[#allocation26_spill] sm:$0xff] %v9880_v34 }
 0x2f4   : > { %v9887_v57 = vpop.f32.mrf.mxu1 }
 0x2f5   : > { %11277 = vst [vmem:[#allocation27_spill] sm:$0xff] %v9887_v57 }
 0x2f9   : > { %8162 = vmatmul.mubr.msk.bf16.gmra.mxu1 %vm385_vm4, %v9720_v61 }
 0x2fa   : > { %8165 = vmatprep.mubr.msk.bf16.mxu1 %vm385_vm4, %v9726_v2  ;;  %v2954_v2 = vld [vmem:[#allocation3 + $0x71] sm:$0xff] }
 0x301   : > { %8166 = vmatmul.mubr.msk.bf16.gmra.mxu1 %vm385_vm4, %v9728_v4 }
 0x302   : > { %8169 = vmatprep.mubr.msk.bf16.mxu1 %vm385_vm4, %v9734_v9 }
 0x309   : > { %8170 = vmatmul.mubr.msk.bf16.gmra.mxu1 %vm385_vm4, %v9864_v43  ;;  %v2952_v43 = vld [vmem:[#allocation3 + $0x61] sm:$0xff] }
 0x30a   : > { %8177 = vmatprep.mubr.msk.bf16.mxu1 %vm385_vm4, %v2970_v47  ;;  %v2951_v47 = vld [vmem:[#allocation3 + $0x59] sm:$0xff] }
 0x311   : > { %8178 = vmatmul.mubr.msk.bf16.vlgmr.msra.gmra.mxu1 %vm385_vm4, %v2971_v36  ;;  %v9892_v36 = vpop.f32.mrf.mxu1 }
 0x312   : > { %8206 = vmatpush3.bf16.msra.mxu1 %v8784_v26  ;;  %8181 = vmatprep.mubr.msk.bf16.mxu1 %vm385_vm4, %v2972_v10  ;;  %v2974_v26 = vpack.c.bf16 %v2951_v47, %v2950_v63  ;;  %11278 = vst [vmem:[#allocation28_spill] sm:$0xff] %v9892_v36  ;;  %v2953_v10 = vld [vmem:[#allocation3 + $0x69] sm:$0xff]  ;;  %v2956_v63 = vld [vmem:[#allocation3 + $0x81] sm:$0xff] }
 0x313   : > { %8207 = vmatprep.subr.bf16.mxu1 %v8785_v5  ;;  %v2167_v9 = vpop.f32.mrf.mxu1  ;;  %v2975_v4 = vpack.c.bf16 %v2953_v10, %v2952_v43  ;;  %v2957_v47 = vld [vmem:[#allocation3 + $0x89] sm:$0xff]  ;;  %v3790_v10 = vld [vmem:[#allocation3 + $0xf1] sm:$0xff] }
 0x314   : > { %v2977_v59 = vpack.c.bf16 %v2957_v47, %v2956_v63 }
 0x316   : > { %8208 = vmatpush3.bf16.msra.mxu1 %v8785_v5  ;;  %v2976_v5 = vpack.c.bf16 %v2955_v0, %v2954_v2 }
 0x317   : > { %8237 = vmatprep.subr.bf16.mxu1 %v9885_v40 }
 0x319   : > { %8182 = vmatmul.mubr.msk.bf16.gmra.mxu1 %vm385_vm4, %v2973_v58  ;;  %v2959_v58 = vld [vmem:[#allocation3 + $0x99] sm:$0xff] }
 0x31a   : > { %8185 = vmatprep.mubr.msk.bf16.mxu1 %vm385_vm4, %v2974_v26  ;;  %v2978_v37 = vpack.c.bf16 %v2959_v58, %v2958_v54 }
 0x321   : > { %v8075_v61 = vpop.f32.mrf.mxu1  ;;  %8186 = vmatmul.mubr.msk.bf16.gmra.mxu1 %vm385_vm4, %v2975_v4 }
 0x322   : > { %8189 = vmatprep.mubr.msk.bf16.mxu1 %vm385_vm4, %v2976_v5  ;;  %v3791_v5 = vld [vmem:[#allocation3 + $0xf9] sm:$0xff] }
 0x323   : > { %v2180_v45 = vpop.f32.mrf.mxu1  ;;  %v3805_v54 = vpack.c.bf16 %v3791_v5, %v3790_v10 }
 0x325   : > { %v8076_v52 = vpop.f32.mrf.mxu1  ;;  %8298 = vmatmul.mubr.msk.bf16.gmra.mxu0 %vm385_vm4, %v3805_v54 }
 0x327   : > { %v2183_v26 = vpop.f32.mrf.mxu1 }
 0x329   : > { %v8083_v36 = vpop.f32.mrf.mxu1  ;;  %8190 = vmatmul.mubr.msk.bf16.gmra.mxu1 %vm385_vm4, %v2977_v59 }
 0x32a   : > { %8193 = vmatprep.mubr.msk.bf16.mxu1 %vm385_vm4, %v2978_v37 }
 0x32b   : > { %v2283_v0 = vpop.f32.mrf.mxu1 }
 0x32d   : > { %v8084_v2 = vpop.f32.mrf.mxu1 }
 0x32f   : > { %v2286_v43 = vpop.f32.mrf.mxu1 }
 0x331   : > { %v9898_v4 = vpop.f32.mrf.mxu1  ;;  %8194 = vmatmul.mubr.msk.bf16.gmra.mxu1 %vm385_vm4, %v9598_v55 }
 0x332   : > { %8197 = vmatprep.mubr.msk.bf16.mxu1 %vm385_vm4, %v9620_v39 }
 0x333   : > { %v9904_v47 = vpop.f32.mrf.mxu1 }
 0x335   : > { %v9906_v58 = vpop.f32.mrf.mxu1 }
 0x337   : > { %v9909_v37 = vpop.f32.mrf.mxu1 }
 0x339   : > { %v9911_v59 = vpop.f32.mrf.mxu1  ;;  %8198 = vmatmul.mubr.msk.bf16.gmra.mxu1 %vm385_vm4, %v9642_v6 }
 0x33a   : > { %8201 = vmatprep.mubr.msk.bf16.mxu1 %vm385_vm4, %v9663_v11  ;;  %v8787_v11 = vld [vmem:[%s11229_s3 + $0x60] sm:$0xff]  }
 0x33b   : > { %v9917_v55 = vpop.f32.mrf.mxu1 }
 0x33d   : > { %v9919_v39 = vpop.f32.mrf.mxu1 }
 0x33f   : > { %v9921_v63 = vpop.f32.mrf.mxu1 }
 0x341   : > { %v9923_v10 = vpop.f32.mrf.mxu1  ;;  %8202 = vmatmul.mubr.msk.bf16.gmra.mxu1 %vm385_vm4, %v9698_v42 }
 0x342   : > { %8209 = vmatprep.mubr.msk.bf16.mxu1 %vm385_vm4, %v9739_v13  ;;  %v9950_v13 = vld [vmem:[%s11229_s3 + $0x88] sm:$0xff]  }
 0x343   : > { %v9929_v5 = vpop.f32.mrf.mxu1 }
 0x345   : > { %v9931_v6 = vpop.f32.mrf.mxu1 }
 0x347   : > { %v9933_v54 = vpop.f32.mrf.mxu1 }
 0x349   : > { %v9938_v48 = vpop.f32.mrf.mxu1  ;;  %8210 = vmatmul.mubr.msk.bf16.vlgmr.msra.gmra.mxu1 %vm385_vm4, %v9744_v16 }
 0x34a   : > { %8238 = vmatpush3.bf16.msra.mxu1 %v9885_v40  ;;  %8213 = vmatprep.mubr.msk.bf16.mxu1 %vm385_vm4, %v9754_v23 }
 0x34b   : > { %v9945_v42 = vpop.f32.mrf.mxu1  ;;  %8239 = vmatprep.subr.bf16.mxu1 %v8787_v11 }
 0x34d   : > { %v9952_v57 = vpop.f32.mrf.mxu1 }
 0x34e   : > { %11279 = vst [vmem:[#allocation29_spill] sm:$0xff] %v9952_v57  ;;  %8240 = vmatpush3.bf16.msra.mxu1 %v8787_v11 }
 0x34f   : > { %v9954_v46 = vpop.f32.mrf.mxu1  ;;  %8301 = vmatprep.subr.bf16.mxu1 %v9950_v13 }
 0x350   : > { %11280 = vst [vmem:[#allocation30_spill] sm:$0xff] %v9954_v46 }
 0x351   : > { %v9957_v16 = vpop.f32.mrf.mxu1  ;;  %8214 = vmatmul.mubr.msk.bf16.gmra.mxu1 %vm385_vm4, %v9756_v25 }
 0x352   : > { %11281 = vst [vmem:[#allocation31_spill] sm:$0xff] %v9957_v16  ;;  %8217 = vmatprep.mubr.msk.bf16.mxu1 %vm385_vm4, %v9762_v31 }
 0x353   : > { %v9963_v40 = vpop.f32.mrf.mxu1 }
 0x354   : > { %11282 = vst [vmem:[#allocation32_spill] sm:$0xff] %v9963_v40 }
 0x355   : > { %v9965_v23 = vpop.f32.mrf.mxu1 }
 0x356   : > { %11283 = vst [vmem:[#allocation33_spill] sm:$0xff] %v9965_v23  ;;  %v2292_v23 = vadd.f32 %v8083_v36, %v9794_v3  ;;  %v2287_v3 = vadd.f32 %v2286_v43, %v9809_v18 }
 0x357   : > { %v2366_v34 = vpop.f32.mrf.mxu1 }
 0x358   : > { %v9967_v32 = vadd.f32 %v2366_v34, %v2167_v9 }
 0x359   : > { %v8107_v11 = vpop.f32.mrf.mxu1  ;;  %8218 = vmatmul.mubr.msk.bf16.gmra.mxu1 %vm385_vm4, %v9764_v33 }
 0x35a   : > { %v9971_v46 = vadd.f32 %v8107_v11, %v8075_v61  ;;  %8221 = vmatprep.mubr.msk.bf16.mxu1 %vm385_vm4, %v9770_v41  ;;  %v2284_v61 = vadd.f32 %v2283_v0, %v9798_v8 }
 0x35b   : > { %v2379_v25 = vpop.f32.mrf.mxu1 }
 0x35c   : > { %v9975_v16 = vadd.f32 %v2379_v25, %v2180_v45 }
 0x35d   : > { %v8108_v31 = vpop.f32.mrf.mxu1 }
 0x35e   : > { %v9977_v57 = vadd.f32 %v8108_v31, %v8076_v52  ;;  %v2295_v31 = vadd.f32 %v8084_v2, %v9804_v22  ;;  %v2300_v22 = vadd.f32 %v9904_v47, %v9820_v12  ;;  %v2311_v2 = vadd.f32 %v9906_v58, %v9826_v14 }
 0x35f   : > { %v2382_v40 = vpop.f32.mrf.mxu1  ;;  %v2324_v12 = vadd.f32 %v9911_v59, %v9830_v17  ;;  %v2316_v14 = vadd.f32 %v9917_v55, %v9836_v19  ;;  %v3242_v17 = vld [vmem:[#allocation3 + $0xe2] sm:$0xff]  ;;  %v3243_v59 = vld [vmem:[#allocation3 + $0xea] sm:$0xff] }
 0x360   : > { %v9980_v9 = vadd.f32 %v2382_v40, %v2183_v26  ;;  %v2308_v40 = vadd.f32 %v9898_v4, %v9815_v50  ;;  %v2303_v4 = vadd.f32 %v9909_v37, %v9828_v15  ;;  %v2327_v37 = vadd.f32 %v9919_v39, %v9838_v20 }
 0x361   : > { %v8115_v34 = vpop.f32.mrf.mxu1  ;;  %8222 = vmatmul.mubr.msk.bf16.gmra.mxu1 %vm385_vm4, %v9772_v44  ;;  %v10035_v55 = vpack.c.bf16 %v3243_v59, %v3242_v17  ;;  %v2332_v20 = vadd.f32 %v9929_v5, %v9852_v27  ;;  %v8789_v27 = vld [vmem:[%s11229_s3 + $0x80] sm:$0xff]  }
 0x362   : > { %v9985_v11 = vadd.f32 %v8115_v34, %v2292_v23  ;;  %8225 = vmatprep.mubr.msk.bf16.mxu1 %vm385_vm4, %v9778_v51  ;;  %v11291_v17 = vld [vmem:[#allocation32_spill] sm:$0xff] }
 0x363   : > { %v2529_v25 = vpop.f32.mrf.mxu1 }
 0x364   : > { %v9990_v45 = vadd.f32 %v2529_v25, %v2284_v61 }
 0x365   : > { %v8116_v52 = vpop.f32.mrf.mxu1 }
 0x366   : > { %v9993_v36 = vadd.f32 %v8116_v52, %v2295_v31 }
 0x367   : > { %v2532_v26 = vpop.f32.mrf.mxu1 }
 0x368   : > { %v9997_v8 = vadd.f32 %v2532_v26, %v2287_v3  ;;  %v2319_v3 = vadd.f32 %v9921_v63, %v9844_v21  ;;  %v2343_v63 = vadd.f32 %v9931_v6, %v9854_v28  ;;  %v2348_v28 = vadd.f32 %v9945_v42, %v9866_v49  ;;  %v11287_v42 = vld [vmem:[#allocation26_spill] sm:$0xff] }
 0x369   : > { %v8119_v23 = vpop.f32.mrf.mxu1  ;;  %8226 = vmatmul.mubr.msk.bf16.gmra.mxu1 %vm385_vm4, %v9780_v53 }
 0x36a   : > { %v10003_v0 = vadd.f32 %v8119_v23, %v2308_v40  ;;  %8229 = vmatprep.mubr.msk.bf16.mxu1 %vm385_vm4, %v9786_v60 }
 0x36b   : > { %v2545_v18 = vpop.f32.mrf.mxu1 }
 0x36c   : > { %v10009_v43 = vadd.f32 %v2545_v18, %v2300_v22 }
 0x36d   : > { %v8120_v50 = vpop.f32.mrf.mxu1 }
 0x36e   : > { %v10013_v34 = vadd.f32 %v8120_v50, %v2311_v2 }
 0x36f   : > { %v2548_v61 = vpop.f32.mrf.mxu1 }
 0x370   : > { %v10017_v47 = vadd.f32 %v2548_v61, %v2303_v4  ;;  %v11285_v61 = vld [vmem:[#allocation25_spill] sm:$0xff] }
 0x371   : > { %v8123_v25 = vpop.f32.mrf.mxu1  ;;  %8230 = vmatmul.mubr.msk.bf16.gmra.mxu1 %vm385_vm4, %v9788_v62 }
 0x372   : > { %v10023_v58 = vadd.f32 %v8123_v25, %v2324_v12  ;;  %8233 = vmatprep.mubr.msk.bf16.mxu1 %vm385_vm4, %v9796_v7  ;;  %v2340_v7 = vadd.f32 %v9923_v10, %v9846_v24  ;;  %v2335_v10 = vadd.f32 %v9933_v54, %v9860_v30 }
 0x373   : > { %v2561_v15 = vpop.f32.mrf.mxu1 }
 0x374   : > { %v10029_v31 = vadd.f32 %v2561_v15, %v2316_v14 }
 0x375   : > { %v8124_v52 = vpop.f32.mrf.mxu1 }
 0x376   : > { %v10033_v26 = vadd.f32 %v8124_v52, %v2327_v37  ;;  %v11289_v37 = vld [vmem:[#allocation11_spill] sm:$0xff] }
 0x377   : > { %v2564_v19 = vpop.f32.mrf.mxu1 }
 0x378   : > { %v10039_v40 = vadd.f32 %v2564_v19, %v2319_v3  ;;  %v11292_v3 = vld [vmem:[#allocation12_spill] sm:$0xff] }
 0x379   : > { %v8127_v23 = vpop.f32.mrf.mxu1  ;;  %8234 = vmatmul.mubr.msk.bf16.gmra.mxu1 %vm385_vm4, %v10035_v55 }
 0x37a   : > { %v10045_v39 = vadd.f32 %v8127_v23, %v2340_v7  ;;  %8241 = vmatprep.mubr.msk.bf16.mxu1 %vm385_vm4, %v9676_v29  ;;  %v2356_v29 = vadd.f32 %v9938_v48, %v9862_v38  ;;  %v11284_v48 = vld [vmem:[#allocation29_spill] sm:$0xff]  ;;  %v11293_v7 = vld [vmem:[#allocation28_spill] sm:$0xff] }
 0x37b   : > { %v2577_v21 = vpop.f32.mrf.mxu1  ;;  %v2359_v38 = vadd.f32 %v11284_v48, %v9871_v56  ;;  %v11290_v56 = vld [vmem:[#allocation27_spill] sm:$0xff]  ;;  %v11294_v23 = vld [vmem:[#allocation33_spill] sm:$0xff] }
 0x37c   : > { %v10051_v22 = vadd.f32 %v2577_v21, %v2332_v20  ;;  %v2364_v59 = vadd.f32 %v11291_v17, %v11290_v56  ;;  %v2375_v20 = vadd.f32 %v11294_v23, %v11293_v7  ;;  %v11300_v56 = vld [vmem:[#allocation18_spill] sm:$0xff]  ;;  %v11301_v7 = vld [vmem:[#allocation19_spill] sm:$0xff]  ;;  %v11302_v23 = vld [vmem:[#allocation24_spill] sm:$0xff] }
 0x37d   : > { %v8128_v24 = vpop.f32.mrf.mxu1 }
 0x37e   : > { %v10055_v18 = vadd.f32 %v8128_v24, %v2343_v63 }
 0x37f   : > { %v2580_v2 = vpop.f32.mrf.mxu1 }
 0x380   : > { %v10062_v5 = vadd.f32 %v2580_v2, %v2335_v10 }
 0x381   : > { %v8131_v50 = vpop.f32.mrf.mxu1  ;;  %8242 = vmatmul.mubr.msk.bf16.vlgmr.msra.gmra.mxu1 %vm385_vm4, %v9689_v35  ;;  %v11286_v35 = vld [vmem:[#allocation30_spill] sm:$0xff] }
 0x382   : > { %v10068_v30 = vadd.f32 %v8131_v50, %v2356_v29  ;;  %8302 = vmatpush3.bf16.msra.mxu1 %v9950_v13  ;;  %8245 = vmatprep.mubr.msk.bf16.mxu1 %vm385_vm4, %v9692_v1  ;;  %v2351_v12 = vadd.f32 %v11286_v35, %v11285_v61  ;;  %v11288_v13 = vld [vmem:[#allocation31_spill] sm:$0xff]  ;;  %v11295_v29 = vld [vmem:[#allocation13_spill] sm:$0xff] }
 0x383   : > { %v2593_v6 = vpop.f32.mrf.mxu1  ;;  %8303 = vmatprep.subr.bf16.mxu1 %v8789_v27  ;;  %v2372_v14 = vadd.f32 %v11288_v13, %v11287_v42 }
 0x384   : > { %v10075_v54 = vadd.f32 %v2593_v6, %v2348_v28  ;;  %v11296_v28 = vld [vmem:[#allocation14_spill] sm:$0xff] }
 0x385   : > { %v8132_v4 = vpop.f32.mrf.mxu1 }
 0x386   : > { %v10079_v25 = vadd.f32 %v8132_v4, %v2359_v38  ;;  %8304 = vmatpush3.bf16.msra.mxu1 %v8789_v27 }
 0x387   : > { %v2596_v49 = vpop.f32.mrf.mxu1 }
 0x388   : > { %v10083_v15 = vadd.f32 %v2596_v49, %v2351_v12  ;;  %v11297_v12 = vld [vmem:[#allocation15_spill] sm:$0xff]  ;;  %v11298_v49 = vld [vmem:[#allocation16_spill] sm:$0xff] }
 0x389   : > { %v8135_v1 = vpop.f32.mrf.mxu1  ;;  %8246 = vmatmul.mubr.msk.bf16.gmra.mxu1 %vm385_vm4, %v11289_v37  ;;  %v11299_v37 = vld [vmem:[#allocation17_spill] sm:$0xff] }
 0x38a   : > { %v10089_v52 = vadd.f32 %v8135_v1, %v2372_v14  ;;  %8249 = vmatprep.mubr.msk.bf16.mxu1 %vm385_vm4, %v11292_v3 }
 0x38b   : > { %v2609_v19 = vpop.f32.mrf.mxu1 }
 0x38c   : > { %v10095_v21 = vadd.f32 %v2609_v19, %v2364_v59 }
 0x38d   : > { %v8136_v63 = vpop.f32.mrf.mxu1 }
 0x38e   : > { %v10097_v24 = vadd.f32 %v8136_v63, %v2375_v20  ;;  %v3517_v20 = vld [vmem:[#allocation3 + $0xf8] sm:$0xff] }
 0x38f   : > { %v2612_v10 = vpop.f32.mrf.mxu1 }
 0x390   : > { %v10100_v2 = vadd.f32 %v2612_v10, %v9967_v32 }
 0x391   : > { %v8139_v27 = vpop.f32.mrf.mxu1  ;;  %8250 = vmatmul.mubr.msk.bf16.gmra.mxu1 %vm385_vm4, %v11295_v29 }
 0x392   : > { %v10105_v50 = vadd.f32 %v8139_v27, %v9971_v46  ;;  %8253 = vmatprep.mubr.msk.bf16.mxu1 %vm385_vm4, %v11296_v28 }
 0x393   : > { %v2625_v6 = vpop.f32.mrf.mxu1 }
 0x394   : > { %v10110_v48 = vadd.f32 %v2625_v6, %v9975_v16 }
 0x395   : > { %v8140_v38 = vpop.f32.mrf.mxu1 }
 0x396   : > { %v10113_v4 = vadd.f32 %v8140_v38, %v9977_v57  ;;  %v11303_v38 = vld [vmem:[#allocation20_spill] sm:$0xff] }
 0x397   : > { %v2628_v32 = vpop.f32.mrf.mxu1 }
 0x398   : > { %v10116_v61 = vadd.f32 %v2628_v32, %v9980_v9 }
 0x399   : > { %v8147_v35 = vpop.f32.mrf.mxu1  ;;  %8254 = vmatmul.mubr.msk.bf16.gmra.mxu1 %vm385_vm4, %v11297_v12 }
 0x39a   : > { %v10121_v46 = vadd.f32 %v8147_v35, %v9985_v11  ;;  %8257 = vmatprep.mubr.msk.bf16.mxu1 %vm385_vm4, %v11298_v49 }
 0x39b   : > { %v2803_v16 = vpop.f32.mrf.mxu1 }
 0x39c   : > { %v10126_v42 = vadd.f32 %v2803_v16, %v9990_v45  ;;  %v11304_v16 = vld [vmem:[#allocation21_spill] sm:$0xff] }
 0x39d   : > { %v8148_v57 = vpop.f32.mrf.mxu1 }
 0x39e   : > { %v10129_v13 = vadd.f32 %v8148_v57, %v9993_v36  ;;  %v11305_v57 = vld [vmem:[#allocation22_spill] sm:$0xff] }
 0x39f   : > { %v2806_v9 = vpop.f32.mrf.mxu1 }
 0x3a0   : > { %v10132_v14 = vadd.f32 %v2806_v9, %v9997_v8 }
 0x3a1   : > { %v8151_v1 = vpop.f32.mrf.mxu1  ;;  %8258 = vmatmul.mubr.msk.bf16.gmra.mxu1 %vm385_vm4, %v11299_v37 }
 0x3a2   : > { %v10137_v11 = vadd.f32 %v8151_v1, %v10003_v0  ;;  %8261 = vmatprep.mubr.msk.bf16.mxu1 %vm385_vm4, %v11300_v56 }
 0x3a3   : > { %v2819_v45 = vpop.f32.mrf.mxu1 }
 0x3a4   : > { %v10142_v17 = vadd.f32 %v2819_v45, %v10009_v43  ;;  %v3516_v43 = vld [vmem:[#allocation3 + $0xf0] sm:$0xff]  ;;  %v11307_v45 = vld [vmem:[#allocation23_spill] sm:$0xff] }
 0x3a5   : > { %v8152_v36 = vpop.f32.mrf.mxu1  ;;  %v3531_v27 = vpack.c.bf16 %v3517_v20, %v3516_v43 }
 0x3a6   : > { %v10145_v59 = vadd.f32 %v8152_v36, %v10013_v34 }
 0x3a7   : > { %v2822_v8 = vpop.f32.mrf.mxu1 }
 0x3a8   : > { %v10148_v3 = vadd.f32 %v2822_v8, %v10017_v47 }
 0x3a9   : > { %v8155_v19 = vpop.f32.mrf.mxu1  ;;  %8262 = vmatmul.mubr.msk.bf16.gmra.mxu1 %vm385_vm4, %v11301_v7 }
 0x3aa   : > { %v10153_v0 = vadd.f32 %v8155_v19, %v10023_v58  ;;  %8265 = vmatprep.mubr.msk.bf16.mxu1 %vm385_vm4, %v11302_v23 }
 0x3ab   : > { %v2835_v63 = vpop.f32.mrf.mxu1 }
 0x3ac   : > { %v10158_v34 = vadd.f32 %v2835_v63, %v10029_v31 }
 0x3ad   : > { %v8156_v10 = vpop.f32.mrf.mxu1 }
 0x3ae   : > { %v10161_v47 = vadd.f32 %v8156_v10, %v10033_v26 }
 0x3af   : > { %v2838_v29 = vpop.f32.mrf.mxu1 }
 0x3b0   : > { %v10164_v28 = vadd.f32 %v2838_v29, %v10039_v40 }
 0x3b1   : > { %v8159_v58 = vpop.f32.mrf.mxu1  ;;  %8266 = vmatmul.mubr.msk.bf16.gmra.mxu1 %vm385_vm4, %v3531_v27  ;;  %v4060_v27 = vld [vmem:[#allocation3 + $0xd2] sm:$0xff] }
 0x3b2   : > { %v10168_v6 = vadd.f32 %v8159_v58, %v10045_v39  ;;  %8305 = vmatprep.mubr.msk.bf16.mxu1 %vm385_vm4, %v11303_v38 }
 0x3b3   : > { %v2851_v31 = vpop.f32.mrf.mxu1 }
 0x3b4   : > { %v10173_v32 = vadd.f32 %v2851_v31, %v10051_v22 }
 0x3b5   : > { %v8160_v35 = vpop.f32.mrf.mxu1 }
 0x3b6   : > { %v10176_v26 = vadd.f32 %v8160_v35, %v10055_v18 }
 0x3b7   : > { %v2854_v12 = vpop.f32.mrf.mxu1 }
 0x3b8   : > { %v10179_v40 = vadd.f32 %v2854_v12, %v10062_v5 }
 0x3b9   : > { %v8163_v49 = vpop.f32.mrf.mxu1  ;;  %8306 = vmatmul.mubr.msk.bf16.vlgmr.msra.gmra.mxu1 %vm385_vm4, %v11304_v16 }
 0x3ba   : > { %v10184_v39 = vadd.f32 %v8163_v49, %v10068_v30  ;;  %8309 = vmatprep.mubr.msk.bf16.mxu1 %vm385_vm4, %v11305_v57 }
 0x3bb   : > { %v2867_v22 = vpop.f32.mrf.mxu1 }
 0x3bc   : > { %v10189_v9 = vadd.f32 %v2867_v22, %v10075_v54 }
 0x3bd   : > { %v8164_v18 = vpop.f32.mrf.mxu1 }
 0x3be   : > { %v10192_v1 = vadd.f32 %v8164_v18, %v10079_v25 }
 0x3bf   : > { %v2870_v5 = vpop.f32.mrf.mxu1 }
 0x3c0   : > { %v10195_v37 = vadd.f32 %v2870_v5, %v10083_v15 }
 0x3c1   : > { %v8167_v56 = vpop.f32.mrf.mxu1  ;;  %8310 = vmatmul.mubr.msk.bf16.gmra.mxu1 %vm385_vm4, %v11307_v45 }
 0x3c2   : > { %11306 = vst [vmem:[#allocation29_spill] sm:$0xff] %v10195_v37  ;;  %v10200_v30 = vadd.f32 %v8167_v56, %v10089_v52  ;;  %8313 = vmatprep.mubr.msk.bf16.mxu1 %vm385_vm4, %v9764_v33 }
 0x3c3   : > { %v2883_v54 = vpop.f32.mrf.mxu1 }
 0x3c4   : > { %v10205_v36 = vadd.f32 %v2883_v54, %v10095_v21 }
 0x3c5   : > { %v8168_v25 = vpop.f32.mrf.mxu1 }
 0x3c6   : > { %v10208_v8 = vadd.f32 %v8168_v25, %v10097_v24 }
 0x3c7   : > { %v2886_v15 = vpop.f32.mrf.mxu1 }
 0x3c8   : > { %v10211_v19 = vadd.f32 %v2886_v15, %v10100_v2 }
 0x3c9   : > { %v8171_v7 = vpop.f32.mrf.mxu1  ;;  %8314 = vmatmul.mubr.msk.bf16.gmra.mxu1 %vm385_vm4, %v9770_v41 }
 0x3ca   : > { %11308 = vst [vmem:[#allocation25_spill] sm:$0xff] %v10211_v19  ;;  %v10216_v52 = vadd.f32 %v8171_v7, %v10105_v50  ;;  %8317 = vmatprep.mubr.msk.bf16.mxu1 %vm385_vm4, %v9772_v44  ;;  %v11310_v7 = vmov 0.0  }
 0x3cb   : > { %v2899_v33 = vpop.f32.mrf.mxu1  ;;  %421 = vst.msk [vmem:[#allocation5] sm:$0xff] %vm420_vm6, %v11310_v7  ;;  %422 = vst.msk [vmem:[#allocation5 + $0x8] sm:$0xff] %vm420_vm6, %v11310_v7 }
 0x3cc   : > { %v10221_v21 = vadd.f32 %v2899_v33, %v10110_v48  ;;  %423 = vst.msk [vmem:[#allocation5 + $0x10] sm:$0xff] %vm420_vm6, %v11310_v7  ;;  %424 = vst.msk [vmem:[#allocation5 + $0x18] sm:$0xff] %vm420_vm6, %v11310_v7 }
 0x3cd   : > { %v8172_v24 = vpop.f32.mrf.mxu1  ;;  %425 = vst.msk [vmem:[#allocation5 + $0x20] sm:$0xff] %vm420_vm6, %v11310_v7  ;;  %426 = vst.msk [vmem:[#allocation5 + $0x28] sm:$0xff] %vm420_vm6, %v11310_v7 }
 0x3ce   : > { %v10224_v23 = vadd.f32 %v8172_v24, %v10113_v4  ;;  %427 = vst.msk [vmem:[#allocation5 + $0x30] sm:$0xff] %vm420_vm6, %v11310_v7  ;;  %428 = vst.msk [vmem:[#allocation5 + $0x38] sm:$0xff] %vm420_vm6, %v11310_v7 }
 0x3cf   : > { %v2902_v2 = vpop.f32.mrf.mxu1  ;;  %429 = vst.msk [vmem:[#allocation5 + $0x40] sm:$0xff] %vm420_vm6, %v11310_v7  ;;  %430 = vst.msk [vmem:[#allocation5 + $0x48] sm:$0xff] %vm420_vm6, %v11310_v7 }
 0x3d0   : > { %v10227_v43 = vadd.f32 %v2902_v2, %v10116_v61  ;;  %431 = vst.msk [vmem:[#allocation5 + $0x50] sm:$0xff] %vm420_vm6, %v11310_v7 }
 0x3d1   : > { %v8179_v20 = vpop.f32.mrf.mxu1  ;;  %8318 = vmatmul.mubr.msk.bf16.gmra.mxu1 %vm385_vm4, %v9778_v51 }
 0x3d2   : > { %v10232_v41 = vadd.f32 %v8179_v20, %v10121_v46  ;;  %8321 = vmatprep.mubr.msk.bf16.mxu1 %vm385_vm4, %v9780_v53 }
 0x3d3   : > { %v3077_v44 = vpop.f32.mrf.mxu1 }
 0x3d4   : > { %v10237_v50 = vadd.f32 %v3077_v44, %v10126_v42  ;;  %v4061_v42 = vld [vmem:[#allocation3 + $0xda] sm:$0xff] }
 0x3d5   : > { %v8180_v48 = vpop.f32.mrf.mxu1  ;;  %v4077_v58 = vpack.c.bf16 %v4061_v42, %v4060_v27 }
 0x3d6   : > { %v10240_v4 = vadd.f32 %v8180_v48, %v10129_v13 }
 0x3d7   : > { %v10242_v61 = vpop.f32.mrf.mxu1 }
 0x3d9   : > { %v8183_v63 = vpop.f32.mrf.mxu1  ;;  %8322 = vmatmul.mubr.msk.bf16.gmra.mxu1 %vm385_vm4, %v9786_v60 }
 0x3da   : > { %v10247_v51 = vadd.f32 %v8183_v63, %v10137_v11  ;;  %8325 = vmatprep.mubr.msk.bf16.mxu1 %vm385_vm4, %v9788_v62  ;;  %v4064_v62 = vld [vmem:[#allocation3 + $0xf2] sm:$0xff] }
 0x3db   : > { %v3093_v53 = vpop.f32.mrf.mxu1 }
 0x3dc   : > { %v10252_v46 = vadd.f32 %v3093_v53, %v10142_v17  ;;  %v4065_v17 = vld [vmem:[#allocation3 + $0xfa] sm:$0xff] }
 0x3dd   : > { %v8184_v10 = vpop.f32.mrf.mxu1  ;;  %v4079_v35 = vpack.c.bf16 %v4065_v17, %v4064_v62 }
 0x3de   : > { %v10255_v13 = vadd.f32 %v8184_v10, %v10145_v59 }
 0x3df   : > { %v10257_v29 = vpop.f32.mrf.mxu1 }
 0x3e1   : > { %v8187_v60 = vpop.f32.mrf.mxu1  ;;  %8326 = vmatmul.mubr.msk.bf16.gmra.mxu1 %vm385_vm4, %v4077_v58 }
 0x3e2   : > { %v10261_v11 = vadd.f32 %v8187_v60, %v10153_v0  ;;  %8329 = vmatprep.mubr.msk.bf16.mxu1 %vm385_vm4, %v10035_v55 }
 0x3e3   : > { %v3109_v38 = vpop.f32.mrf.mxu1 }
 0x3e4   : > { %v10266_v31 = vadd.f32 %v3109_v38, %v10158_v34 }
 0x3e5   : > { %v8188_v59 = vpop.f32.mrf.mxu1 }
 0x3e6   : > { %v10269_v12 = vadd.f32 %v8188_v59, %v10161_v47 }
 0x3e7   : > { %v10271_v49 = vpop.f32.mrf.mxu1 }
 0x3e9   : > { %v8191_v16 = vpop.f32.mrf.mxu1  ;;  %8330 = vmatmul.mubr.msk.bf16.gmra.mxu1 %vm385_vm4, %v4079_v35  ;;  %v8792_v35 = vld [vmem:[%s11231_s5 + $0x18] sm:$0xff]  }
 0x3ea   : > { %v10275_v0 = vadd.f32 %v8191_v16, %v10168_v6  ;;  %8349 = vmatprep.subr.bf16.mxu1 %v8792_v35 }
 0x3eb   : > { %v3125_v55 = vpop.f32.mrf.mxu1  ;;  %8350 = vmatpush3.bf16.msra.mxu1 %v8792_v35 }
 0x3ec   : > { %v10278_v57 = vadd.f32 %v3125_v55, %v10173_v32 }
 0x3ed   : > { %v8192_v22 = vpop.f32.mrf.mxu1 }
 0x3ee   : > { %v10281_v34 = vadd.f32 %v8192_v22, %v10176_v26 }
 0x3ef   : > { %v10283_v18 = vpop.f32.mrf.mxu1 }
 0x3f1   : > { %v8195_v47 = vpop.f32.mrf.mxu1 }
 0x3f2   : > { %v10286_v5 = vadd.f32 %v8195_v47, %v10184_v39 }
 0x3f3   : > { %v3141_v56 = vpop.f32.mrf.mxu1 }
 0x3f4   : > { %v10289_v45 = vadd.f32 %v3141_v56, %v10189_v9  ;;  %v8793_v56 = vld [vmem:[%s11231_s5 + $0x28] sm:$0xff]  }
 0x3f5   : > { %v8196_v6 = vpop.f32.mrf.mxu1 }
 0x3f6   : > { %v10292_v54 = vadd.f32 %v8196_v6, %v10192_v1  ;;  %v8795_v6 = vld [vmem:[%s11231_s5 + $0x8] sm:$0xff]  }
 0x3f7   : > { %v10294_v32 = vpop.f32.mrf.mxu1 }
 0x3f8   : > { %11309 = vst [vmem:[#allocation30_spill] sm:$0xff] %v10294_v32 }
 0x3f9   : > { %v8199_v25 = vpop.f32.mrf.mxu1 }
 0x3fa   : > { %v10297_v26 = vadd.f32 %v8199_v25, %v10200_v30 }
 0x3fb   : > { %v3157_v15 = vpop.f32.mrf.mxu1 }
 0x3fc   : > { %v10322_v39 = vadd.f32 %v3157_v15, %v10205_v36 }
 0x3fd   : > { %v8200_v9 = vpop.f32.mrf.mxu1 }
 0x3fe   : > { %v10325_v1 = vadd.f32 %v8200_v9, %v10208_v8  ;;  %v8797_v9 = vld [vmem:[%s11231_s5] sm:$0xff]  }
 0x3ff   : > { %v10327_v30 = vpop.f32.mrf.mxu1 }
 0x400   : > { %11311 = vst [vmem:[#allocation26_spill] sm:$0xff] %v10327_v30 }
 0x401   : > { %v8203_v33 = vpop.f32.mrf.mxu1 }
 0x402   : > { %v10330_v24 = vadd.f32 %v8203_v33, %v10216_v52 }
 0x403   : > { %v3173_v2 = vpop.f32.mrf.mxu1 }
 0x404   : > { %v10333_v20 = vadd.f32 %v3173_v2, %v10221_v21 }
 0x405   : > { %v8204_v44 = vpop.f32.mrf.mxu1 }
 0x406   : > { %v10336_v48 = vadd.f32 %v8204_v44, %v10224_v23  ;;  %v8790_v23 = vld [vmem:[%s11231_s5 + $0x38] sm:$0xff]  }
 0x407   : > { %v10338_v36 = vpop.f32.mrf.mxu1  ;;  %8333 = vmatprep.subr.bf16.mxu0 %v8790_v23 }
 0x408   : > { %8334 = vmatpush3.bf16.msra.mxu0 %v8790_v23 }
 0x409   : > { %v8211_v63 = vpop.f32.mrf.mxu1 }
 0x40a   : > { %v10341_v8 = vadd.f32 %v8211_v63, %v10232_v41 }
 0x40b   : > { %v3351_v53 = vpop.f32.mrf.mxu1 }
 0x40c   : > { %v10344_v42 = vadd.f32 %v3351_v53, %v10237_v50 }
 0x40d   : > { %v8212_v52 = vpop.f32.mrf.mxu1 }
 0x40e   : > { %v10347_v10 = vadd.f32 %v8212_v52, %v10240_v4 }
 0x40f   : > { %v10349_v21 = vpop.f32.mrf.mxu1 }
 0x411   : > { %v8215_v27 = vpop.f32.mrf.mxu1 }
 0x412   : > { %v10355_v58 = vadd.f32 %v8215_v27, %v10247_v51 }
 0x413   : > { %v3367_v41 = vpop.f32.mrf.mxu1 }
 0x414   : > { %v10358_v50 = vadd.f32 %v3367_v41, %v10252_v46 }
 0x415   : > { %v8216_v60 = vpop.f32.mrf.mxu1 }
 0x416   : > { %v10361_v4 = vadd.f32 %v8216_v60, %v10255_v13 }
 0x417   : > { %v10363_v62 = vpop.f32.mrf.mxu1 }
 0x419   : > { %v8219_v17 = vpop.f32.mrf.mxu1 }
 0x41a   : > { %v10366_v38 = vadd.f32 %v8219_v17, %v10261_v11  ;;  %v8791_v11 = vld [vmem:[%s11231_s5 + $0x30] sm:$0xff]  }
 0x41b   : > { %v3383_v59 = vpop.f32.mrf.mxu1  ;;  %8335 = vmatprep.subr.bf16.mxu0 %v8791_v11 }
 0x41c   : > { %v10369_v51 = vadd.f32 %v3383_v59, %v10266_v31  ;;  %v8794_v31 = vld [vmem:[%s11231_s5 + $0x10] sm:$0xff]   ;;  %8336 = vmatpush3.bf16.msra.mxu0 %v8791_v11  ;;  %v3213_v11 = vadd.f32 %v10338_v36, %v10227_v43 }
 0x41d   : > { %v8220_v46 = vpop.f32.mrf.mxu1  ;;  %8351 = vmatprep.subr.bf16.mxu1 %v8794_v31  ;;  %8337 = vmatprep.subr.bf16.mxu0 %v8793_v56 }
 0x41e   : > { %v10375_v16 = vadd.f32 %v8220_v46, %v10269_v12  ;;  %8352 = vmatpush3.bf16.msra.mxu1 %v8794_v31 }
 0x41f   : > { %v10377_v13 = vpop.f32.mrf.mxu1  ;;  %8353 = vmatprep.subr.bf16.mxu1 %v8795_v6 }
 0x420   : > { %8338 = vmatpush3.bf16.msra.mxu0 %v8793_v56 }
 0x421   : > { %v8223_v55 = vpop.f32.mrf.mxu1 }
 0x422   : > { %v10386_v22 = vadd.f32 %v8223_v55, %v10275_v0  ;;  %8354 = vmatpush3.bf16.msra.mxu1 %v8795_v6 }
 0x423   : > { %v3399_v12 = vpop.f32.mrf.mxu1  ;;  %8355 = vmatprep.subr.bf16.mxu1 %v8797_v9 }
 0x424   : > { %v10389_v47 = vadd.f32 %v3399_v12, %v10278_v57  ;;  %v8796_v57 = vld [vmem:[%s11231_s5 + $0x20] sm:$0xff]  }
 0x425   : > { %v8224_v25 = vpop.f32.mrf.mxu1  ;;  %8339 = vmatprep.subr.bf16.mxu0 %v8796_v57 }
 0x426   : > { %v10398_v0 = vadd.f32 %v8224_v25, %v10281_v34  ;;  %8340 = vmatpush3.bf16.msra.mxu0 %v8796_v57  ;;  %8356 = vmatpush3.bf16.msra.mxu1 %v8797_v9  ;;  %v8275_v25 = vpop.f32.mrf.mxu0 }
 0x427   : > { %v10400_v15 = vpop.f32.mrf.mxu1 }
 0x429   : > { %v8227_v33 = vpop.f32.mrf.mxu1 }
 0x42a   : > { %v10409_v2 = vadd.f32 %v8227_v33, %v10286_v5  ;;  %v3899_v33 = vpop.f32.mrf.mxu0 }
 0x42b   : > { %v3415_v34 = vpop.f32.mrf.mxu1 }
 0x42c   : > { %11312 = vst [vmem:[#allocation31_spill] sm:$0xff] %v10409_v2  ;;  %v10412_v44 = vadd.f32 %v3415_v34, %v10289_v45 }
 0x42d   : > { %v8228_v63 = vpop.f32.mrf.mxu1 }
 0x42e   : > { %11313 = vst [vmem:[#allocation11_spill] sm:$0xff] %v10412_v44  ;;  %v10415_v53 = vadd.f32 %v8228_v63, %v10292_v54 }
 0x42f   : > { %v10417_v52 = vpop.f32.mrf.mxu1 }
 0x430   : > { %11314 = vst [vmem:[#allocation27_spill] sm:$0xff] %v10415_v53  ;;  %11315 = vst [vmem:[#allocation32_spill] sm:$0xff] %v10417_v52 }
 0x431   : > { %v8231_v23 = vpop.f32.mrf.mxu1 }
 0x432   : > { %v10420_v27 = vadd.f32 %v8231_v23, %v10297_v26  ;;  %v10439_v26 = vld [vmem:[%s11231_s5 + $0x58] sm:$0xff]  }
 0x433   : > { %v3431_v5 = vpop.f32.mrf.mxu1  ;;  %11322 = vst [vmem:[#allocation16_spill] sm:$0xff] %v10439_v26  ;;  %8365 = vmatprep.subr.bf16.mxu0 %v10439_v26 }
 0x434   : > { %11316 = vst [vmem:[#allocation12_spill] sm:$0xff] %v10420_v27  ;;  %v10423_v41 = vadd.f32 %v3431_v5, %v10322_v39  ;;  %v10444_v39 = vld [vmem:[%s11231_s5 + $0x78] sm:$0xff]  }
 0x435   : > { %v8232_v60 = vpop.f32.mrf.mxu1  ;;  %11323 = vst [vmem:[#allocation17_spill] sm:$0xff] %v10444_v39  ;;  %8381 = vmatprep.subr.bf16.mxu1 %v10444_v39 }
 0x436   : > { %11317 = vst [vmem:[#allocation28_spill] sm:$0xff] %v10423_v41  ;;  %v10426_v17 = vadd.f32 %v8232_v60, %v10325_v1 }
 0x437   : > { %v10428_v45 = vpop.f32.mrf.mxu1 }
 0x438   : > { %11318 = vst [vmem:[#allocation33_spill] sm:$0xff] %v10426_v17  ;;  %11319 = vst [vmem:[#allocation13_spill] sm:$0xff] %v10428_v45 }
 0x439   : > { %v8235_v59 = vpop.f32.mrf.mxu1 }
 0x43a   : > { %v10431_v54 = vadd.f32 %v8235_v59, %v10330_v24 }
 0x43b   : > { %v3447_v35 = vpop.f32.mrf.mxu1 }
 0x43c   : > { %11320 = vst [vmem:[#allocation14_spill] sm:$0xff] %v10431_v54  ;;  %v10434_v46 = vadd.f32 %v3447_v35, %v10333_v20 }
 0x43d   : > { %v8236_v1 = vpop.f32.mrf.mxu1 }
 0x43e   : > { %11321 = vst [vmem:[#allocation15_spill] sm:$0xff] %v10434_v46  ;;  %v10449_v24 = vadd.f32 %v8236_v1, %v10336_v48  ;;  %v8276_v48 = vpop.f32.mrf.mxu0 }
 0x43f   : > { %v3450_v20 = vpop.f32.mrf.mxu1 }
 0x440   : > { %11324 = vst [vmem:[#allocation18_spill] sm:$0xff] %v10449_v24  ;;  %v10453_v31 = vadd.f32 %v3450_v20, %v3213_v11  ;;  %v3902_v23 = vpop.f32.mrf.mxu0 }
 0x441   : > { %v8243_v55 = vpop.f32.mrf.mxu1 }
 0x442   : > { %11325 = vst [vmem:[#allocation19_spill] sm:$0xff] %v10453_v31  ;;  %v8279_v59 = vpop.f32.mrf.mxu0 }
 0x443   : > { %v3625_v12 = vpop.f32.mrf.mxu1 }
 0x444   : > { %v10469_v11 = vpop.f32.mrf.mxu0 }
 0x445   : > { %v8244_v56 = vpop.f32.mrf.mxu1 }
 0x446   : > { %v10475_v39 = vpop.f32.mrf.mxu0  ;;  %v3739_v37 = vadd.f32 %v8244_v56, %v10347_v10 }
 0x447   : > { %v3628_v6 = vpop.f32.mrf.mxu1 }
 0x448   : > { %v10481_v24 = vpop.f32.mrf.mxu0 }
 0x449   : > { %v8247_v57 = vpop.f32.mrf.mxu1 }
 0x44a   : > { %v10485_v54 = vpop.f32.mrf.mxu0 }
 0x44b   : > { %v3641_v9 = vpop.f32.mrf.mxu1 }
 0x44c   : > { %v10491_v41 = vpop.f32.mrf.mxu0  ;;  %v3740_v56 = vadd.f32 %v3641_v9, %v10358_v50 }
 0x44d   : > { %v8248_v34 = vpop.f32.mrf.mxu1 }
 0x44e   : > { %v10497_v27 = vpop.f32.mrf.mxu0 }
 0x44f   : > { %v10455_v43 = vpop.f32.mrf.mxu1 }
 0x451   : > { %v10457_v36 = vpop.f32.mrf.mxu1 }
 0x453   : > { %v10459_v63 = vpop.f32.mrf.mxu1 }
 0x455   : > { %v10461_v5 = vpop.f32.mrf.mxu1 }
 0x457   : > { %v10463_v60 = vpop.f32.mrf.mxu1 }
 0x459   : > { %v10465_v35 = vpop.f32.mrf.mxu1 }
 0x45b   : > { %v10467_v1 = vpop.f32.mrf.mxu1 }
 0x45d   : > { %v10471_v20 = vpop.f32.mrf.mxu1 }
 0x45f   : > { %v10473_v7 = vpop.f32.mrf.mxu1 }
 0x461   : > { %v10477_v26 = vpop.f32.mrf.mxu1 }
 0x462   : > { %11326 = vst [vmem:[#allocation24_spill] sm:$0xff] %v10477_v26 }
 0x463   : > { %v10479_v31 = vpop.f32.mrf.mxu1 }
 0x464   : > { %11327 = vst [vmem:[#allocation20_spill] sm:$0xff] %v10479_v31  ;;  %v10503_v31 = vpop.f32.mrf.mxu0 }
 0x465   : > { %v10483_v46 = vpop.f32.mrf.mxu1 }
 0x466   : > { %11328 = vst [vmem:[#allocation21_spill] sm:$0xff] %v10483_v46  ;;  %v10507_v44 = vpop.f32.mrf.mxu0 }
 0x467   : > { %v10487_v17 = vpop.f32.mrf.mxu1 }
 0x468   : > { %11329 = vst [vmem:[#allocation22_spill] sm:$0xff] %v10487_v17  ;;  %v3189_v17 = vadd.f32 %v10242_v61, %v10132_v14 }
 0x469   : > { %v10489_v45 = vpop.f32.mrf.mxu1 }
 0x46a   : > { %11330 = vst [vmem:[#allocation23_spill] sm:$0xff] %v10489_v45  ;;  %v3738_v45 = vadd.f32 %v8243_v55, %v10341_v8  ;;  %v3463_v32 = vadd.f32 %v10349_v21, %v3189_v17  ;;  %v10524_v8 = vld [vmem:[%s11230_s4] ss:$0 sm:$0xff] }
 0x46b   : > { %v10493_v30 = vpop.f32.mrf.mxu1 }
 0x46c   : > { %11331 = vst [vmem:[#allocation34_spill] sm:$0xff] %v10493_v30  ;;  %v3737_v26 = vadd.f32 %v3628_v6, %v3463_v32  ;;  %v3193_v32 = vadd.f32 %v10257_v29, %v10148_v3 }
 0x46d   : > { %v10495_v19 = vpop.f32.mrf.mxu1 }
 0x46e   : > { %11332 = vst [vmem:[#allocation35_spill] sm:$0xff] %v10495_v19  ;;  %v3736_v19 = vadd.f32 %v3625_v12, %v10344_v42  ;;  %v3742_v42 = vadd.f32 %v8247_v57, %v10355_v58  ;;  %v3467_v58 = vadd.f32 %v10363_v62, %v3193_v32 }
 0x46f   : > { %v10499_v53 = vpop.f32.mrf.mxu1 }
 0x470   : > { %11333 = vst [vmem:[#allocation36_spill] sm:$0xff] %v10499_v53  ;;  %v4010_v61 = vadd.f32 %v3899_v33, %v3736_v19  ;;  %v3743_v33 = vadd.f32 %v8248_v34, %v10361_v4  ;;  %v3741_v50 = vadd.f32 %v10455_v43, %v3467_v58  ;;  %v3746_v4 = vadd.f32 %v10457_v36, %v10366_v38 }
 0x471   : > { %v10501_v52 = vpop.f32.mrf.mxu1  ;;  %v3744_v38 = vadd.f32 %v10459_v63, %v10369_v51 }
 0x472   : > { %11334 = vst [vmem:[#allocation37_spill] sm:$0xff] %v10501_v52  ;;  %v10518_v52 = vpop.f32.mrf.mxu0 }
 0x473   : > { %v10505_v46 = vpop.f32.mrf.mxu1 }
 0x474   : > { %11335 = vst [vmem:[#allocation38_spill] sm:$0xff] %v10505_v46  ;;  %v4012_v46 = vadd.f32 %v8275_v25, %v3738_v45  ;;  %v10527_v21 = vpop.f32.mrf.mxu0  ;;  %v4011_v45 = vadd.f32 %v3902_v23, %v3737_v26  ;;  %v4016_v25 = vadd.f32 %v8279_v59, %v3742_v42  ;;  %v4014_v23 = vadd.f32 %v10469_v11, %v3740_v56 }
 0x475   : > { %v10512_v30 = vpop.f32.mrf.mxu1  ;;  %v3197_v42 = vadd.f32 %v10271_v49, %v10164_v28  ;;  %v3747_v28 = vadd.f32 %v10461_v5, %v10375_v16  ;;  %v3750_v16 = vadd.f32 %v10465_v35, %v10386_v22 }
 0x476   : > { %v10535_v57 = vpop.f32.mrf.mxu0 }
 0x477   : > { %v10516_v53 = vpop.f32.mrf.mxu1 }
 0x478   : > { %11336 = vst [vmem:[#allocation39_spill] sm:$0xff] %v10516_v53  ;;  %v4013_v53 = vadd.f32 %v8276_v48, %v3739_v37  ;;  %v10541_v9 = vpop.f32.mrf.mxu0 }
 0x479   : > { %v8307_v2 = vpop.f32.mrf.mxu1 }
 0x47a   : > { %v4286_v14 = vadd.f32 %v8307_v2, %v4012_v46 }
 0x47b   : > { %v4173_v55 = vpop.f32.mrf.mxu1 }
 0x47c   : > { %v4321_v17 = vadd.f32 %v10524_v8, %v4286_v14  ;;  %v4284_v12 = vadd.f32 %v4173_v55, %v4010_v61  ;;  %v4017_v61 = vadd.f32 %v10475_v39, %v3743_v33 }
 0x47d   : > { %v8308_v10 = vpop.f32.mrf.mxu1 }
 0x47e   : > { %v4349_v6 = vmax.f32 %v4321_v17, 0.0  ;;  %v4319_v2 = vadd.f32 %v10524_v8, %v4284_v12  ;;  %v4287_v19 = vadd.f32 %v8308_v10, %v4013_v53  ;;  %v4015_v17 = vadd.f32 %v10481_v24, %v3741_v50  ;;  %v10554_v12 = vpop.f32.mrf.mxu0 }
 0x47f   : > { %v4176_v46 = vpop.f32.mrf.mxu1  ;;  %v3471_v10 = vadd.f32 %v10377_v13, %v3197_v42  ;;  %v11337_v42 = vld [vmem:[#allocation31_spill] sm:$0xff] }
 0x480   : > { %4377 = vst.msk [vmem:[#allocation4 + $0x10] sm:$0xff] %vm420_vm6, %v4349_v6  ;;  %v4347_v37 = vmax.f32 %v4319_v2, 0.0  ;;  %v4322_v3 = vadd.f32 %v10524_v8, %v4287_v19  ;;  %v4285_v29 = vadd.f32 %v4176_v46, %v4011_v45  ;;  %v4020_v45 = vadd.f32 %v10485_v54, %v3746_v4  ;;  %v10567_v6 = vpop.f32.mrf.mxu0 }
 0x481   : > { %v8311_v26 = vpop.f32.mrf.mxu1  ;;  %v3745_v63 = vadd.f32 %v10463_v60, %v3471_v10  ;;  %v4018_v19 = vadd.f32 %v10491_v41, %v3744_v38  ;;  %v3748_v41 = vadd.f32 %v10467_v1, %v10389_v47  ;;  %v4024_v1 = vadd.f32 %v10507_v44, %v3750_v16 }
 0x482   : > { %4375 = vst.msk [vmem:[#allocation4] sm:$0xff] %vm420_vm6, %v4347_v37  ;;  %v4350_v62 = vmax.f32 %v4322_v3, 0.0  ;;  %v4320_v53 = vadd.f32 %v10524_v8, %v4285_v29  ;;  %v4290_v48 = vadd.f32 %v8311_v26, %v4016_v25  ;;  %v4021_v37 = vadd.f32 %v10497_v27, %v3747_v28  ;;  %v11339_v28 = vld [vmem:[#allocation29_spill] sm:$0xff] }
 0x483   : > { %v4189_v34 = vpop.f32.mrf.mxu1  ;;  %v3201_v3 = vadd.f32 %v10283_v18, %v10179_v40  ;;  %v4019_v26 = vadd.f32 %v10503_v31, %v3745_v63  ;;  %v3751_v18 = vadd.f32 %v10471_v20, %v10398_v0  ;;  %v4022_v20 = vadd.f32 %v10518_v52, %v3748_v41  ;;  %v11341_v52 = vld [vmem:[#allocation11_spill] sm:$0xff] }
 0x484   : > { %4378 = vst.msk [vmem:[#allocation4 + $0x18] sm:$0xff] %vm420_vm6, %v4350_v62  ;;  %v4348_v59 = vmax.f32 %v4320_v53, 0.0  ;;  %v4325_v43 = vadd.f32 %v10524_v8, %v4290_v48  ;;  %v4288_v14 = vadd.f32 %v4189_v34, %v4014_v23  ;;  %v10582_v62 = vpop.f32.mrf.mxu0 }
 0x485   : > { %v8312_v55 = vpop.f32.mrf.mxu1  ;;  %v3475_v40 = vadd.f32 %v10400_v15, %v3201_v3 }
 0x486   : > { %4376 = vst.msk [vmem:[#allocation4 + $0x8] sm:$0xff] %vm420_vm6, %v4348_v59  ;;  %v4353_v36 = vmax.f32 %v4325_v43, 0.0  ;;  %v4323_v11 = vadd.f32 %v10524_v8, %v4288_v14  ;;  %v4291_v32 = vadd.f32 %v8312_v55, %v4017_v61  ;;  %v10590_v4 = vpop.f32.mrf.mxu0  ;;  %v11338_v55 = vld [vmem:[#allocation24_spill] sm:$0xff] }
 0x487   : > { %v4192_v39 = vpop.f32.mrf.mxu1  ;;  %v3749_v14 = vadd.f32 %v10473_v7, %v3475_v40 }
 0x488   : > { %4381 = vst.msk [vmem:[#allocation4 + $0x30] sm:$0xff] %vm420_vm6, %v4353_v36  ;;  %v4351_v49 = vmax.f32 %v4323_v11, 0.0  ;;  %v4326_v24 = vadd.f32 %v10524_v8, %v4291_v32  ;;  %v4289_v51 = vadd.f32 %v4192_v39, %v4015_v17  ;;  %v3754_v17 = vadd.f32 %v11338_v55, %v11337_v42  ;;  %v10601_v32 = vpop.f32.mrf.mxu0 }
 0x489   : > { %v8315_v56 = vpop.f32.mrf.mxu1 }
 0x48a   : > { %4379 = vst.msk [vmem:[#allocation4 + $0x20] sm:$0xff] %vm420_vm6, %v4351_v49  ;;  %v4354_v13 = vmax.f32 %v4326_v24, 0.0  ;;  %v4324_v2 = vadd.f32 %v10524_v8, %v4289_v51  ;;  %v4294_v54 = vadd.f32 %v8315_v56, %v4020_v45  ;;  %v4025_v45 = vadd.f32 %v10527_v21, %v3751_v18  ;;  %v11340_v49 = vld [vmem:[#allocation30_spill] sm:$0xff]  ;;  %v11342_v51 = vld [vmem:[#allocation20_spill] sm:$0xff] }
 0x48b   : > { %v4408_v5 = vld [vmem:[#allocation4 + $0x10] ss:$2 sm:$0x7f]  ;;  %v4410_v58 = vld [vmem:[#allocation4 + $0x11] ss:$2 sm:$0x7f]  ;;  %v4205_v46 = vpop.f32.mrf.mxu1  ;;  %v3205_v24 = vadd.f32 %v11340_v49, %v11339_v28  ;;  %v3752_v63 = vadd.f32 %v11342_v51, %v11341_v52  ;;  %v4028_v41 = vadd.f32 %v10541_v9, %v3754_v17 }
 0x48c   : > { %4382 = vst.msk [vmem:[#allocation4 + $0x38] sm:$0xff] %vm420_vm6, %v4354_v13  ;;  %v4352_v60 = vmax.f32 %v4324_v2, 0.0  ;;  %v4329_v25 = vadd.f32 %v10524_v8, %v4294_v54  ;;  %v4292_v33 = vadd.f32 %v4205_v46, %v4018_v19  ;;  %v4411_v29 = vmax.f32 %v4408_v5, %v4410_v58  ;;  %v11343_v21 = vld [vmem:[#allocation32_spill] sm:$0xff] }
 0x48d   : > { %v4403_v50 = vld [vmem:[#allocation4] ss:$2 sm:$0x7f]  ;;  %v4405_v22 = vld [vmem:[#allocation4 + $0x1] ss:$2 sm:$0x7f]  ;;  %v8316_v35 = vpop.f32.mrf.mxu1  ;;  %v4023_v19 = vadd.f32 %v10535_v57, %v3749_v14  ;;  %v4026_v40 = vadd.f32 %v10554_v12, %v3752_v63 }
 0x48e   : > { %v4406_v53 = vmax.f32 %v4403_v50, %v4405_v22  ;;  %4380 = vst.msk [vmem:[#allocation4 + $0x28] sm:$0xff] %vm420_vm6, %v4352_v60  ;;  %v4357_v48 = vmax.f32 %v4329_v25, 0.0  ;;  %v4327_v27 = vadd.f32 %v10524_v8, %v4292_v33  ;;  %v4295_v23 = vadd.f32 %v8316_v35, %v4021_v37  ;;  %v11344_v25 = vld [vmem:[#allocation27_spill] sm:$0xff]  ;;  %v11345_v33 = vld [vmem:[#allocation21_spill] sm:$0xff]  ;;  %v10617_v50 = vpop.f32.mrf.mxu0 }
 0x48f   : > { %v4208_v47 = vpop.f32.mrf.mxu1  ;;  %v3479_v60 = vadd.f32 %v11343_v21, %v3205_v24  ;;  %v3755_v37 = vadd.f32 %v11345_v33, %v11344_v25  ;;  %v11356_v33 = vld [vmem:[#allocation36_spill] sm:$0xff] }
 0x490   : > { %v4412_v31 = vmax.f32 %v4406_v53, %v4411_v29  ;;  %4385 = vst.msk [vmem:[#allocation4 + $0x50] sm:$0xff] %vm420_vm6, %v4357_v48  ;;  %v4355_v34 = vmax.f32 %v4327_v27, 0.0  ;;  %v4330_v59 = vadd.f32 %v10524_v8, %v4295_v23  ;;  %v4293_v43 = vadd.f32 %v4208_v47, %v4019_v26  ;;  %v4507_v29 = vld [vmem:[#allocation5 + $0x1] sm:$0xff]  ;;  %v11346_v48 = vld [vmem:[#allocation22_spill] sm:$0xff] }
 0x491   : > { %v8319_v61 = vpop.f32.mrf.mxu1  ;;  %v4487_v53 = vld [vmem:[#allocation5] sm:$0xff]  ;;  %v3753_v27 = vadd.f32 %v11346_v48, %v3479_v60  ;;  %v4029_v17 = vadd.f32 %v10567_v6, %v3755_v37 }
 0x492   : > { %4414 = vst.msk [vmem:[#allocation5 + $0xa] sm:$0x7f] %vm4413_vm7, %v4412_v31  ;;  %v4358_v0 = vmax.f32 %v4330_v59, 0.0  ;;  %v4328_v15 = vadd.f32 %v10524_v8, %v4293_v43  ;;  %v4298_v44 = vadd.f32 %v8319_v61, %v4024_v1  ;;  %v11347_v59 = vld [vmem:[#allocation12_spill] sm:$0xff]  ;;  %v11348_v43 = vld [vmem:[#allocation23_spill] sm:$0xff] }
 0x493   : > { %4383 = vst.msk [vmem:[#allocation4 + $0x40] sm:$0xff] %vm420_vm6, %v4355_v34  ;;  %v4421_v38 = vld [vmem:[#allocation4 + $0x30] ss:$2 sm:$0x7f]  ;;  %v4221_v11 = vpop.f32.mrf.mxu1  ;;  %v3758_v14 = vadd.f32 %v11348_v43, %v11347_v59  ;;  %v4027_v52 = vadd.f32 %v10582_v62, %v3753_v27 }
 0x494   : > { %v4423_v36 = vld [vmem:[#allocation4 + $0x31] ss:$2 sm:$0x7f]  ;;  %4386 = vst.msk [vmem:[#allocation4 + $0x58] sm:$0xff] %vm420_vm6, %v4358_v0  ;;  %v4356_v7 = vmax.f32 %v4328_v15, 0.0  ;;  %v4333_v10 = vadd.f32 %v10524_v8, %v4298_v44  ;;  %v4296_v39 = vadd.f32 %v4221_v11, %v4022_v20  ;;  %v3982_v44 = vpop.f32.mrf.mxu0 }
 0x495   : > { %v4424_v56 = vmax.f32 %v4421_v38, %v4423_v36  ;;  %v4416_v13 = vld [vmem:[#allocation4 + $0x20] ss:$2 sm:$0x7f]  ;;  %v4418_v2 = vld [vmem:[#allocation4 + $0x21] ss:$2 sm:$0x7f]  ;;  %v8320_v54 = vpop.f32.mrf.mxu1 }
 0x496   : > { %v4419_v16 = vmax.f32 %v4416_v13, %v4418_v2  ;;  %4384 = vst.msk [vmem:[#allocation4 + $0x48] sm:$0xff] %vm420_vm6, %v4356_v7  ;;  %v4361_v5 = vmax.f32 %v4333_v10, 0.0  ;;  %v4331_v58 = vadd.f32 %v10524_v8, %v4296_v39  ;;  %v4299_v46 = vadd.f32 %v8320_v54, %v4025_v45  ;;  %v11349_v38 = vld [vmem:[#allocation25_spill] sm:$0xff]  ;;  %v11350_v36 = vld [vmem:[#allocation26_spill] sm:$0xff]  ;;  %v11351_v7 = vld [vmem:[#allocation28_spill] sm:$0xff]  ;;  %v8299_v51 = vpop.f32.mrf.mxu0 }
 0x497   : > { %v4224_v3 = vpop.f32.mrf.mxu1  ;;  %v3209_v11 = vadd.f32 %v11350_v36, %v11349_v38  ;;  %v11352_v10 = vld [vmem:[#allocation34_spill] sm:$0xff]  ;;  %v11353_v2 = vld [vmem:[#allocation13_spill] sm:$0xff] }
 0x498   : > { %v4425_v22 = vmax.f32 %v4419_v16, %v4424_v56  ;;  %4389 = vst.msk [vmem:[#allocation4 + $0x70] sm:$0xff] %vm420_vm6, %v4361_v5  ;;  %v4359_v57 = vmax.f32 %v4331_v58, 0.0  ;;  %v4334_v35 = vadd.f32 %v10524_v8, %v4299_v46  ;;  %v4297_v26 = vadd.f32 %v4224_v3, %v4023_v19  ;;  %v11354_v19 = vld [vmem:[#allocation33_spill] sm:$0xff]  ;;  %v11355_v16 = vld [vmem:[#allocation35_spill] sm:$0xff]  ;;  %v11361_v38 = vld [vmem:[#allocation18_spill] sm:$0xff] }
 0x499   : > { %v8323_v23 = vpop.f32.mrf.mxu1  ;;  %v10623_v18 = vld [vmem:[#allocation5 + $0x9] sm:$0xff]  ;;  %v3756_v39 = vadd.f32 %v11352_v10, %v11351_v7  ;;  %v3483_v54 = vadd.f32 %v11353_v2, %v3209_v11  ;;  %v3759_v5 = vadd.f32 %v11355_v16, %v11354_v19  ;;  %v4032_v46 = vadd.f32 %v10590_v4, %v3758_v14 }
 0x49a   : > { %v4488_v47 = vld [vmem:[#allocation5 + $0x8] sm:$0xff]  ;;  %4426 = vst.msk [vmem:[#allocation5 + $0x13] sm:$0x7f] %vm4413_vm7, %v4425_v22  ;;  %v4362_v9 = vmax.f32 %v4334_v35, 0.0  ;;  %v4332_v1 = vadd.f32 %v10524_v8, %v4297_v26  ;;  %v4302_v31 = vadd.f32 %v8323_v23, %v4028_v41  ;;  %v4515_v34 = vpack.c.bf16 %v10623_v18, %v4507_v29  ;;  %v3995_v41 = vpop.f32.mrf.mxu0  ;;  %v8800_v19 = vld [vmem:[%s11231_s5 + $0x50] sm:$0xff]  }
 0x49b   : > { %4387 = vst.msk [vmem:[#allocation4 + $0x60] sm:$0xff] %vm420_vm6, %v4359_v57  ;;  %v4433_v61 = vld [vmem:[#allocation4 + $0x50] ss:$2 sm:$0x7f]  ;;  %v4237_v15 = vpop.f32.mrf.mxu1  ;;  %v4495_v12 = vpack.c.bf16 %v4488_v47, %v4487_v53  ;;  %v3757_v37 = vadd.f32 %v11356_v33, %v3483_v54  ;;  %v4030_v4 = vadd.f32 %v10601_v32, %v3756_v39  ;;  %v11358_v26 = vld [vmem:[#allocation37_spill] sm:$0xff] }
 0x49c   : > { %v4435_v0 = vld [vmem:[#allocation4 + $0x51] ss:$2 sm:$0x7f]  ;;  %4390 = vst.msk [vmem:[#allocation4 + $0x78] sm:$0xff] %vm420_vm6, %v4362_v9  ;;  %v4360_v20 = vmax.f32 %v4332_v1, 0.0  ;;  %v4337_v42 = vadd.f32 %v10524_v8, %v4302_v31  ;;  %v4300_v55 = vadd.f32 %v4237_v15, %v4026_v40  ;;  %8341 = vmatprep.mubr.msk.bf16.mxu0 %vm420_vm6, %v4515_v34  ;;  %v4033_v1 = vadd.f32 %v10617_v50, %v3759_v5  ;;  %v8300_v15 = vpop.f32.mrf.mxu0 }
 0x49d   : > { %v4436_v45 = vmax.f32 %v4433_v61, %v4435_v0  ;;  %v4428_v28 = vld [vmem:[#allocation4 + $0x40] ss:$2 sm:$0x7f]  ;;  %v4430_v49 = vld [vmem:[#allocation4 + $0x41] ss:$2 sm:$0x7f]  ;;  %8357 = vmatprep.mubr.msk.bf16.mxu1 %vm420_vm6, %v4495_v12  ;;  %v8324_v24 = vpop.f32.mrf.mxu1  ;;  %v4031_v0 = vadd.f32 %v3982_v44, %v3757_v37  ;;  %v3763_v50 = vadd.f32 %v10512_v30, %v11361_v38 }
 0x49e   : > { %v4431_v63 = vmax.f32 %v4428_v28, %v4430_v49  ;;  %4388 = vst.msk [vmem:[#allocation4 + $0x68] sm:$0xff] %vm420_vm6, %v4360_v20  ;;  %v4365_v56 = vmax.f32 %v4337_v42, 0.0  ;;  %v4335_v6 = vadd.f32 %v10524_v8, %v4300_v55  ;;  %v4303_v13 = vadd.f32 %v8324_v24, %v4029_v17  ;;  %v11357_v35 = vld [vmem:[#allocation14_spill] sm:$0xff]  ;;  %v11359_v31 = vld [vmem:[#allocation15_spill] sm:$0xff] }
 0x49f   : > { %v4240_v58 = vpop.f32.mrf.mxu1  ;;  %v3762_v53 = vadd.f32 %v11358_v26, %v11357_v35  ;;  %v11360_v34 = vld [vmem:[#allocation38_spill] sm:$0xff]  ;;  %v11363_v28 = vld [vmem:[#allocation39_spill] sm:$0xff] }
 0x4a0   : > { %v4437_v21 = vmax.f32 %v4431_v63, %v4436_v45  ;;  %4393 = vst.msk [vmem:[#allocation4 + $0x90] sm:$0xff] %vm420_vm6, %v4365_v56  ;;  %v4363_v62 = vmax.f32 %v4335_v6, 0.0  ;;  %v4338_v60 = vadd.f32 %v10524_v8, %v4303_v13  ;;  %v4301_v25 = vadd.f32 %v4240_v58, %v4027_v52  ;;  %v11362_v45 = vld [vmem:[#allocation19_spill] sm:$0xff]  ;;  %v3998_v56 = vpop.f32.mrf.mxu0 }
 0x4a1   : > { %v8327_v3 = vpop.f32.mrf.mxu1  ;;  %v3760_v59 = vadd.f32 %v11360_v34, %v11359_v31  ;;  %v4036_v17 = vadd.f32 %v8299_v51, %v3762_v53  ;;  %v3761_v49 = vadd.f32 %v11363_v28, %v11362_v45  ;;  %v10669_v52 = vld [vmem:[#allocation5 + $0x11] sm:$0xff] }
 0x4a2   : > { %4438 = vst.msk [vmem:[#allocation5 + $0x1c] sm:$0x7f] %vm4413_vm7, %v4437_v21  ;;  %v4366_v29 = vmax.f32 %v4338_v60, 0.0  ;;  %v4336_v22 = vadd.f32 %v10524_v8, %v4301_v25  ;;  %v4306_v57 = vadd.f32 %v8327_v3, %v4032_v46  ;;  %v4489_v54 = vld [vmem:[#allocation5 + $0x10] sm:$0xff] }
 0x4a3   : > { %4391 = vst.msk [vmem:[#allocation4 + $0x80] sm:$0xff] %vm420_vm6, %v4363_v62  ;;  %v4445_v48 = vld [vmem:[#allocation4 + $0x70] ss:$2 sm:$0x7f]  ;;  %v4253_v23 = vpop.f32.mrf.mxu1  ;;  %v4034_v39 = vadd.f32 %v3995_v41, %v3760_v59  ;;  %v4037_v62 = vadd.f32 %v8300_v15, %v3763_v50  ;;  %v4035_v37 = vadd.f32 %v3998_v56, %v3761_v49  ;;  %v4730_v56 = vld [vmem:[#allocation5 + $0x2] sm:$0xff] }
 0x4a4   : > { %v4447_v27 = vld [vmem:[#allocation4 + $0x71] ss:$2 sm:$0x7f]  ;;  %4394 = vst.msk [vmem:[#allocation4 + $0x98] sm:$0xff] %vm420_vm6, %v4366_v29  ;;  %v4364_v40 = vmax.f32 %v4336_v22, 0.0  ;;  %v4341_v47 = vadd.f32 %v10524_v8, %v4306_v57  ;;  %v4304_v9 = vadd.f32 %v4253_v23, %v4030_v4 }
 0x4a5   : > { %v4448_v43 = vmax.f32 %v4445_v48, %v4447_v27  ;;  %v4440_v14 = vld [vmem:[#allocation4 + $0x60] ss:$2 sm:$0x7f]  ;;  %v4442_v32 = vld [vmem:[#allocation4 + $0x61] ss:$2 sm:$0x7f]  ;;  %v8328_v61 = vpop.f32.mrf.mxu1 }
 0x4a6   : > { %v4443_v12 = vmax.f32 %v4440_v14, %v4442_v32  ;;  %4392 = vst.msk [vmem:[#allocation4 + $0x88] sm:$0xff] %vm420_vm6, %v4364_v40  ;;  %v4369_v20 = vmax.f32 %v4341_v47, 0.0  ;;  %v4339_v42 = vadd.f32 %v10524_v8, %v4304_v9  ;;  %v4307_v55 = vadd.f32 %v8328_v61, %v4033_v1  ;;  %v8801_v16 = vld [vmem:[%s11231_s5 + $0x70] sm:$0xff]   ;;  %v11364_v57 = vld [vmem:[#allocation16_spill] sm:$0xff]  ;;  %v11365_v48 = vld [vmem:[#allocation17_spill] sm:$0xff] }
 0x4a7   : > { %v4256_v36 = vpop.f32.mrf.mxu1  ;;  %v8802_v27 = vld [vmem:[%s11231_s5 + $0x48] sm:$0xff]   ;;  %v8805_v14 = vld [vmem:[%s11231_s5 + $0x60] sm:$0xff]  }
 0x4a8   : > { %v4449_v11 = vmax.f32 %v4443_v12, %v4448_v43  ;;  %4397 = vst.msk [vmem:[#allocation4 + $0xb0] sm:$0xff] %vm420_vm6, %v4369_v20  ;;  %v4367_v7 = vmax.f32 %v4339_v42, 0.0  ;;  %v4342_v10 = vadd.f32 %v10524_v8, %v4307_v55  ;;  %v4305_v44 = vadd.f32 %v4256_v36, %v4031_v0  ;;  %v8803_v40 = vld [vmem:[%s11231_s5 + $0x68] sm:$0xff]   ;;  %v8804_v43 = vld [vmem:[%s11231_s5 + $0x40] sm:$0xff]   ;;  %v8806_v42 = vld [vmem:[%s11231_s5 + $0x98] sm:$0xff]  }
 0x4a9   : > { %v8331_v24 = vpop.f32.mrf.mxu1  ;;  %v10671_v63 = vld [vmem:[#allocation5 + $0x19] sm:$0xff] }
 0x4aa   : > { %v4490_v51 = vld [vmem:[#allocation5 + $0x18] sm:$0xff]  ;;  %4450 = vst.msk [vmem:[#allocation5 + $0x25] sm:$0x7f] %vm4413_vm7, %v4449_v11  ;;  %v4370_v30 = vmax.f32 %v4342_v10, 0.0  ;;  %v4340_v6 = vadd.f32 %v10524_v8, %v4305_v44  ;;  %v4310_v13 = vadd.f32 %v8331_v24, %v4036_v17  ;;  %v4516_v2 = vpack.c.bf16 %v10671_v63, %v10669_v52 }
 0x4ab   : > { %4395 = vst.msk [vmem:[#allocation4 + $0xa0] sm:$0xff] %vm420_vm6, %v4367_v7  ;;  %v4457_v5 = vld [vmem:[#allocation4 + $0x90] ss:$2 sm:$0x7f]  ;;  %v4269_v46 = vpop.f32.mrf.mxu1  ;;  %v4496_v21 = vpack.c.bf16 %v4490_v51, %v4489_v54 }
 0x4ac   : > { %v4459_v58 = vld [vmem:[#allocation4 + $0x91] ss:$2 sm:$0x7f]  ;;  %4398 = vst.msk [vmem:[#allocation4 + $0xb8] sm:$0xff] %vm420_vm6, %v4370_v30  ;;  %v4368_v60 = vmax.f32 %v4340_v6, 0.0  ;;  %v4345_v25 = vadd.f32 %v10524_v8, %v4310_v13  ;;  %v4308_v33 = vadd.f32 %v4269_v46, %v4034_v39  ;;  %8342 = vmatmul.mubr.msk.bf16.vlgmr.msra.gmra.mxu0 %vm420_vm6, %v4516_v2 }
 0x4ad   : > { %v4460_v3 = vmax.f32 %v4457_v5, %v4459_v58  ;;  %v4452_v41 = vld [vmem:[#allocation4 + $0x80] ss:$2 sm:$0x7f]  ;;  %v4454_v29 = vld [vmem:[#allocation4 + $0x81] ss:$2 sm:$0x7f]  ;;  %8358 = vmatmul.mubr.msk.bf16.vlgmr.msra.gmra.mxu1 %vm420_vm6, %v4496_v21  ;;  %v8332_v22 = vpop.f32.mrf.mxu1  ;;  %8366 = vmatpush3.bf16.msra.mxu0 %v11364_v57  ;;  %v4868_v58 = vpack.c.bf16 %v10669_v52, %v10623_v18 }
 0x4ae   : > { %v4455_v4 = vmax.f32 %v4452_v41, %v4454_v29  ;;  %4396 = vst.msk [vmem:[#allocation4 + $0xa8] sm:$0xff] %vm420_vm6, %v4368_v60  ;;  %v4373_v35 = vmax.f32 %v4345_v25, 0.0  ;;  %v4343_v26 = vadd.f32 %v10524_v8, %v4308_v33  ;;  %v4311_v53 = vadd.f32 %v8332_v22, %v4037_v62  ;;  %8382 = vmatpush3.bf16.msra.mxu1 %v11365_v48  ;;  %v8807_v55 = vld [vmem:[%s11231_s5 + $0xb8] sm:$0xff]   ;;  %v4731_v30 = vld [vmem:[#allocation5 + $0xa] sm:$0xff] }
 0x4af   : > { %8367 = vmatprep.subr.bf16.mxu0 %v8800_v19  ;;  %v4272_v23 = vpop.f32.mrf.mxu1  ;;  %8383 = vmatprep.subr.bf16.mxu1 %v8801_v16  ;;  %v4738_v5 = vpack.c.bf16 %v4731_v30, %v4730_v56  ;;  %v4733_v46 = vld [vmem:[#allocation5 + $0x1a] sm:$0xff]  ;;  %v4732_v21 = vld [vmem:[#allocation5 + $0x12] sm:$0xff]  ;;  %v8811_v57 = vld [vmem:[%s11231_s5 + $0xa8] sm:$0xff]  }
 0x4b0   : > { %v4461_v47 = vmax.f32 %v4455_v4, %v4460_v3  ;;  %4401 = vst.msk [vmem:[#allocation4 + $0xd0] sm:$0xff] %vm420_vm6, %v4373_v35  ;;  %v4371_v9 = vmax.f32 %v4343_v26, 0.0  ;;  %v4346_v1 = vadd.f32 %v10524_v8, %v4311_v53  ;;  %v4309_v31 = vadd.f32 %v4272_v23, %v4035_v37  ;;  %v8808_v37 = vld [vmem:[%s11231_s5 + $0x90] sm:$0xff]  }
 0x4b1   : > { %8368 = vmatpush3.bf16.msra.mxu0 %v8800_v19  ;;  %v4511_v38 = vld [vmem:[#allocation5 + $0x21] sm:$0xff]  ;;  %v10727_v60 = vpack.c.bf16 %v4733_v46, %v4732_v21  ;;  %v8809_v3 = vld [vmem:[%s11231_s5 + $0xb0] sm:$0xff]   ;;  %v4998_v23 = vpack.c.bf16 %v4732_v21, %v4731_v30 }
 0x4b2   : > { %4462 = vst.msk [vmem:[#allocation5 + $0x2e] sm:$0x7f] %vm4413_vm7, %v4461_v47  ;;  %v4374_v34 = vmax.f32 %v4346_v1, 0.0  ;;  %v4344_v59 = vadd.f32 %v10524_v8, %v4309_v31  ;;  %8384 = vmatpush3.bf16.msra.mxu1 %v8801_v16  ;;  %8369 = vmatprep.subr.bf16.mxu0 %v8802_v27  ;;  %v4491_v36 = vld [vmem:[#allocation5 + $0x20] sm:$0xff]  ;;  %v4869_v25 = vpack.c.bf16 %v4511_v38, %v10671_v63  ;;  %v8810_v63 = vld [vmem:[%s11231_s5 + $0x88] sm:$0xff]   ;;  %v10752_v35 = vld [vmem:[#allocation5 + $0x13] sm:$0xff] }
 0x4b3   : > { %4399 = vst.msk [vmem:[#allocation4 + $0xc0] sm:$0xff] %vm420_vm6, %v4371_v9  ;;  %v4469_v32 = vld [vmem:[#allocation4 + $0xb0] ss:$2 sm:$0x7f]  ;;  %8385 = vmatprep.subr.bf16.mxu1 %v8803_v40  ;;  %v4734_v33 = vld [vmem:[#allocation5 + $0x22] sm:$0xff] }
 0x4b4   : > { %v4471_v61 = vld [vmem:[#allocation4 + $0xb1] ss:$2 sm:$0x7f]  ;;  %4402 = vst.msk [vmem:[#allocation4 + $0xd8] sm:$0xff] %vm420_vm6, %v4374_v34  ;;  %v4372_v0 = vmax.f32 %v4344_v59, 0.0  ;;  %v8813_v47 = vld [vmem:[%s11231_s5 + $0xa0] sm:$0xff]   ;;  %v4999_v34 = vpack.c.bf16 %v4734_v33, %v4733_v46 }
 0x4b5   : > { %v4464_v15 = vld [vmem:[#allocation4 + $0xa0] ss:$2 sm:$0x7f]  ;;  %v4466_v12 = vld [vmem:[#allocation4 + $0xa1] ss:$2 sm:$0x7f]  ;;  %8370 = vmatpush3.bf16.msra.mxu0 %v8802_v27  ;;  %v4472_v8 = vmax.f32 %v4469_v32, %v4471_v61 }
 0x4b6   : > { %v4467_v20 = vmax.f32 %v4464_v15, %v4466_v12  ;;  %4400 = vst.msk [vmem:[#allocation4 + $0xc8] sm:$0xff] %vm420_vm6, %v4372_v0  ;;  %8386 = vmatpush3.bf16.msra.mxu1 %v8803_v40  ;;  %8371 = vmatprep.subr.bf16.mxu0 %v8804_v43  ;;  %v5120_v48 = vld [vmem:[#allocation5 + $0xb] sm:$0xff]  ;;  %v8812_v27 = vld [vmem:[%s11231_s5 + $0x80] sm:$0xff]   ;;  %v8814_v9 = vld [vmem:[%s11231_s5 + $0xd8] sm:$0xff]  }
 0x4b7   : > { %8387 = vmatprep.subr.bf16.mxu1 %v8805_v14  ;;  %v5128_v40 = vpack.c.bf16 %v10752_v35, %v5120_v48  ;;  %v8815_v1 = vld [vmem:[%s11231_s5 + $0xf8] sm:$0xff]   ;;  %v5123_v31 = vld [vmem:[#allocation5 + $0x23] sm:$0xff]  ;;  %v8817_v15 = vld [vmem:[%s11231_s5 + $0xf0] sm:$0xff]  }
 0x4b8   : > { %v4473_v17 = vmax.f32 %v4467_v20, %v4472_v8  ;;  %v8818_v8 = vld [vmem:[%s11231_s5 + $0xc8] sm:$0xff]   ;;  %v8836_v48 = vld [vmem:[%s11233_s7 + $0x50] sm:$0xff]  }
 0x4b9   : > { %v4512_v50 = vld [vmem:[#allocation5 + $0x29] sm:$0xff]  ;;  %8372 = vmatpush3.bf16.msra.mxu0 %v8804_v43 }
 0x4ba   : > { %v4492_v11 = vld [vmem:[#allocation5 + $0x28] sm:$0xff]  ;;  %4474 = vst.msk [vmem:[#allocation5 + $0x37] sm:$0x7f] %vm4413_vm7, %v4473_v17  ;;  %v4517_v7 = vpack.c.bf16 %v4512_v50, %v4511_v38  ;;  %8388 = vmatpush3.bf16.msra.mxu1 %v8805_v14  ;;  %8397 = vmatprep.subr.bf16.mxu0 %v8806_v42  ;;  %v8816_v43 = vld [vmem:[%s11231_s5 + $0xd0] sm:$0xff]   ;;  %v5122_v14 = vld [vmem:[#allocation5 + $0x1b] sm:$0xff] }
 0x4bb   : > { %v4497_v10 = vpack.c.bf16 %v4492_v11, %v4491_v36  ;;  %v4481_v44 = vld [vmem:[#allocation4 + $0xd0] ss:$2 sm:$0x7f]  ;;  %v4483_v39 = vld [vmem:[#allocation4 + $0xd1] ss:$2 sm:$0x7f]  ;;  %8413 = vmatprep.subr.bf16.mxu1 %v8807_v55  ;;  %v5129_v61 = vpack.c.bf16 %v5123_v31, %v5122_v14 }
 0x4bc   : > { %8345 = vmatprep.mubr.msk.bf16.mxu0 %vm420_vm6, %v4517_v7  ;;  %v4484_v49 = vmax.f32 %v4481_v44, %v4483_v39  ;;  %v4735_v62 = vld [vmem:[#allocation5 + $0x2a] sm:$0xff]  ;;  %v8820_v36 = vld [vmem:[%s11231_s5 + $0xc0] sm:$0xff]   ;;  %v8822_v44 = vld [vmem:[%s11231_s5 + $0x118] sm:$0xff]  }
 0x4bd   : > { %8361 = vmatprep.mubr.msk.bf16.mxu1 %vm420_vm6, %v4497_v10  ;;  %v4476_v45 = vld [vmem:[#allocation4 + $0xc0] ss:$2 sm:$0x7f]  ;;  %v4478_v28 = vld [vmem:[#allocation4 + $0xc1] ss:$2 sm:$0x7f]  ;;  %v10735_v18 = vpack.c.bf16 %v4735_v62, %v4734_v33  ;;  %v5388_v10 = vpack.c.bf16 %v5122_v14, %v10752_v35 }
 0x4be   : > { %v4479_v24 = vmax.f32 %v4476_v45, %v4478_v28  ;;  %v5124_v0 = vld [vmem:[#allocation5 + $0x2b] sm:$0xff]  ;;  %v8821_v7 = vld [vmem:[%s11231_s5 + $0xe0] sm:$0xff]  }
 0x4bf   : > { %v8823_v39 = vld [vmem:[%s11231_s5 + $0x110] sm:$0xff]   ;;  %v5389_v28 = vpack.c.bf16 %v5124_v0, %v5123_v31  ;;  %v8833_v35 = vld [vmem:[%s11233_s7 + $0x20] sm:$0xff]  }
 0x4c0   : > { %v4485_v51 = vmax.f32 %v4479_v24, %v4484_v49  ;;  %v11366_v49 = vmov 0.0   ;;  %v5257_v30 = vld [vmem:[#allocation5 + $0x4a] sm:$0x7f] }
 0x4c1   : > { %v4513_v6 = vld [vmem:[#allocation5 + $0x31] sm:$0xff]  ;;  %v4514_v13 = vld [vmem:[#allocation5 + $0x39] sm:$0x7f] }
 0x4c2   : > { %v4493_v2 = vld [vmem:[#allocation5 + $0x30] sm:$0xff]  ;;  %4486 = vst.msk [vmem:[#allocation5 + $0x40] sm:$0x7f] %vm4413_vm7, %v4485_v51  ;;  %v4518_v54 = vpack.c.bf16 %v4514_v13, %v4513_v6  ;;  %v4494_v19 = vld [vmem:[#allocation5 + $0x38] sm:$0x7f]  ;;  %v4870_v52 = vpack.c.bf16 %v4513_v6, %v4512_v50  ;;  %v8824_v51 = vld [vmem:[%s11231_s5 + $0x108] sm:$0xff]  }
 0x4c3   : > { %v4498_v16 = vpack.c.bf16 %v4494_v19, %v4493_v2  ;;  %v10750_v4 = vld [vmem:[#allocation5 + $0x32] sm:$0xff]  ;;  %v5511_v6 = vld [vmem:[#allocation5 + $0x1c] sm:$0xff]  ;;  %v5387_v2 = vld [vmem:[#allocation5 + $0x4b] sm:$0x7f] }
 0x4c4   : > { %8346 = vmatmul.mubr.msk.bf16.gmra.mxu0 %vm420_vm6, %v4518_v54  ;;  %v5125_v59 = vld [vmem:[#allocation5 + $0x33] sm:$0xff]  ;;  %v5000_v32 = vpack.c.bf16 %v10750_v4, %v4735_v62  ;;  %v5512_v62 = vld [vmem:[#allocation5 + $0x24] sm:$0xff] }
 0x4c5   : > { %8362 = vmatmul.mubr.msk.bf16.gmra.mxu1 %vm420_vm6, %v4498_v16  ;;  %8373 = vmatprep.mubr.msk.bf16.mxu0 %vm420_vm6, %v4738_v5  ;;  %v5130_v12 = vpack.c.bf16 %v5125_v59, %v5124_v0  ;;  %v5510_v19 = vld [vmem:[#allocation5 + $0x14] sm:$0xff]  ;;  %v8825_v16 = vld [vmem:[%s11231_s5 + $0x100] sm:$0xff]   ;;  %v5513_v46 = vld [vmem:[#allocation5 + $0x2c] sm:$0xff] }
 0x4c6   : > { %8389 = vmatprep.mubr.msk.bf16.mxu1 %vm420_vm6, %v4868_v58  ;;  %v5518_v5 = vpack.c.bf16 %v5511_v6, %v5510_v19 }
 0x4c9   : > { %v4737_v41 = vld [vmem:[#allocation5 + $0x3a] sm:$0x7f]  ;;  %v4867_v22 = vld [vmem:[#allocation5 + $0x41] sm:$0x7f] }
 0x4ca   : > { %v4866_v29 = vld [vmem:[#allocation5 + $0x39] sm:$0xff]  ;;  %v4741_v26 = vpack.c.bf16 %v4737_v41, %v10750_v4  ;;  %v5127_v38 = vld [vmem:[#allocation5 + $0x43] sm:$0x7f]  ;;  %v8828_v41 = vld [vmem:[%s11233_s7 + $0x70] sm:$0xff]  }
 0x4cb   : > { %v4871_v53 = vpack.c.bf16 %v4867_v22, %v4866_v29  ;;  %v4996_v20 = vld [vmem:[#allocation5 + $0x3a] sm:$0xff]  ;;  %v5256_v56 = vld [vmem:[#allocation5 + $0x42] sm:$0xff]  ;;  %v8829_v29 = vld [vmem:[%s11233_s7 + $0x30] sm:$0xff]  }
 0x4cc   : > { %8374 = vmatmul.mubr.msk.bf16.vlgmr.msra.gmra.mxu0 %vm420_vm6, %v10727_v60  ;;  %v5126_v17 = vld [vmem:[#allocation5 + $0x3b] sm:$0xff]  ;;  %v5260_v45 = vpack.c.bf16 %v4996_v20, %v10750_v4  ;;  %v5386_v13 = vld [vmem:[#allocation5 + $0x43] sm:$0xff]  ;;  %v5261_v54 = vpack.c.bf16 %v5257_v30, %v5256_v56 }
 0x4cd   : > { %8390 = vmatmul.mubr.msk.bf16.vlgmr.msra.gmra.mxu1 %vm420_vm6, %v4869_v25  ;;  %8398 = vmatpush3.bf16.msra.mxu0 %v8806_v42  ;;  %v4997_v42 = vld [vmem:[#allocation5 + $0x42] sm:$0x7f]  ;;  %v5131_v11 = vpack.c.bf16 %v5127_v38, %v5126_v17  ;;  %v5390_v24 = vpack.c.bf16 %v5126_v17, %v5125_v59  ;;  %v5391_v58 = vpack.c.bf16 %v5387_v2, %v5386_v13  ;;  %v5514_v25 = vld [vmem:[#allocation5 + $0x34] sm:$0xff] }
 0x4ce   : > { %8377 = vmatprep.mubr.msk.bf16.mxu0 %vm420_vm6, %v10735_v18  ;;  %8393 = vmatprep.mubr.msk.bf16.mxu1 %vm420_vm6, %v4870_v52  ;;  %v5001_v50 = vpack.c.bf16 %v4997_v42, %v4996_v20  ;;  %v5515_v21 = vld [vmem:[#allocation5 + $0x3c] sm:$0xff]  ;;  %v8830_v22 = vld [vmem:[%s11233_s7 + $0x68] sm:$0xff]  }
 0x4cf   : > { %8414 = vmatpush3.bf16.msra.mxu1 %v8807_v55  ;;  %8399 = vmatprep.subr.bf16.mxu0 %v8808_v37  ;;  %v8819_v55 = vld [vmem:[%s11231_s5 + $0xe8] sm:$0xff]   ;;  %v5520_v33 = vpack.c.bf16 %v5515_v21, %v5514_v25  ;;  %v8832_v4 = vld [vmem:[%s11233_s7 + $0x60] sm:$0xff]  }
 0x4d0   : > { %8415 = vmatprep.subr.bf16.mxu1 %v8809_v3 }
 0x4d1   : > { %8400 = vmatpush3.bf16.msra.mxu0 %v8808_v37  ;;  %v5516_v37 = vld [vmem:[#allocation5 + $0x44] sm:$0xff] }
 0x4d2   : > { %8401 = vmatprep.subr.bf16.mxu0 %v8810_v63 }
 0x4d3   : > { %8416 = vmatpush3.bf16.msra.mxu1 %v8809_v3  ;;  %v8826_v3 = vld [vmem:[%s11233_s7 + $0x78] sm:$0xff]  }
 0x4d4   : > { %8378 = vmatmul.mubr.msk.bf16.gmra.mxu0 %vm420_vm6, %v4741_v26  ;;  %8417 = vmatprep.subr.bf16.mxu1 %v8811_v57  ;;  %v8834_v26 = vld [vmem:[%s11233_s7 + $0x58] sm:$0xff]  }
 0x4d5   : > { %8394 = vmatmul.mubr.msk.bf16.gmra.mxu1 %vm420_vm6, %v4871_v53  ;;  %8402 = vmatpush3.bf16.msra.mxu0 %v8810_v63  ;;  %v8827_v63 = vld [vmem:[%s11233_s7 + $0x38] sm:$0xff]  }
 0x4d6   : > { %8405 = vmatprep.mubr.msk.bf16.mxu0 %vm420_vm6, %v4998_v23  ;;  %8421 = vmatprep.mubr.msk.bf16.mxu1 %vm420_vm6, %v5128_v40  ;;  %v8835_v53 = vld [vmem:[%s11233_s7 + $0x18] sm:$0xff]   ;;  %v8838_v23 = vld [vmem:[%s11233_s7 + $0x48] sm:$0xff]  }
 0x4d7   : > { %8418 = vmatpush3.bf16.msra.mxu1 %v8811_v57  ;;  %8403 = vmatprep.subr.bf16.mxu0 %v8812_v27  ;;  %v8831_v57 = vld [vmem:[%s11233_s7 + $0x28] sm:$0xff]  }
 0x4d8   : > { %8419 = vmatprep.subr.bf16.mxu1 %v8813_v47  ;;  %v8839_v40 = vld [vmem:[%s11233_s7 + $0x8] sm:$0xff]  }
 0x4d9   : > { %8404 = vmatpush3.bf16.msra.mxu0 %v8812_v27  ;;  %v8837_v27 = vld [vmem:[%s11233_s7 + $0x10] sm:$0xff]  }
 0x4da   : > { %8429 = vmatprep.subr.bf16.mxu0 %v8814_v9 }
 0x4db   : > { %8420 = vmatpush3.bf16.msra.mxu1 %v8813_v47  ;;  %v8840_v47 = vld [vmem:[%s11233_s7 + $0x40] sm:$0xff]  }
 0x4dc   : > { %8406 = vmatmul.mubr.msk.bf16.vlgmr.msra.gmra.mxu0 %vm420_vm6, %v4999_v34  ;;  %8445 = vmatprep.subr.bf16.mxu1 %v8815_v1 }
 0x4dd   : > { %8430 = vmatpush3.bf16.msra.mxu0 %v8814_v9  ;;  %8409 = vmatprep.mubr.msk.bf16.mxu0 %vm420_vm6, %v5000_v32  ;;  %v8841_v9 = vld [vmem:[%s11233_s7] sm:$0xff]  }
 0x4de   : > { %8422 = vmatmul.mubr.msk.bf16.vlgmr.msra.gmra.mxu1 %vm420_vm6, %v5129_v61  ;;  %8431 = vmatprep.subr.bf16.mxu0 %v8816_v43 }
 0x4df   : > { %8425 = vmatprep.mubr.msk.bf16.mxu1 %vm420_vm6, %v5130_v12  ;;  %8446 = vmatpush3.bf16.msra.mxu1 %v8815_v1 }
 0x4e0   : > { %8447 = vmatprep.subr.bf16.mxu1 %v8817_v15 }
 0x4e1   : > { %8432 = vmatpush3.bf16.msra.mxu0 %v8816_v43 }
 0x4e2   : > { %8433 = vmatprep.subr.bf16.mxu0 %v8818_v8 }
 0x4e3   : > { %8448 = vmatpush3.bf16.msra.mxu1 %v8817_v15 }
 0x4e4   : > { %8410 = vmatmul.mubr.msk.bf16.gmra.mxu0 %vm420_vm6, %v5001_v50  ;;  %8449 = vmatprep.subr.bf16.mxu1 %v8819_v55 }
 0x4e5   : > { %8434 = vmatpush3.bf16.msra.mxu0 %v8818_v8  ;;  %8437 = vmatprep.mubr.msk.bf16.mxu0 %vm420_vm6, %v10727_v60  ;;  %v5519_v60 = vpack.c.bf16 %v5513_v46, %v5512_v62 }
 0x4e6   : > { %8426 = vmatmul.mubr.msk.bf16.gmra.mxu1 %vm420_vm6, %v5131_v11  ;;  %8435 = vmatprep.subr.bf16.mxu0 %v8820_v36 }
 0x4e7   : > { %8450 = vmatpush3.bf16.msra.mxu1 %v8819_v55  ;;  %8453 = vmatprep.mubr.msk.bf16.mxu1 %vm420_vm6, %v5388_v10 }
 0x4e8   : > { %8451 = vmatprep.subr.bf16.mxu1 %v8821_v7 }
 0x4e9   : > { %8436 = vmatpush3.bf16.msra.mxu0 %v8820_v36 }
 0x4ea   : > { %8461 = vmatprep.subr.bf16.mxu0 %v8822_v44 }
 0x4eb   : > { %8452 = vmatpush3.bf16.msra.mxu1 %v8821_v7 }
 0x4ec   : > { %8438 = vmatmul.mubr.msk.bf16.vlgmr.msra.gmra.mxu0 %vm420_vm6, %v10735_v18  ;;  %8477 = vmatprep.subr.bf16.mxu1 %v11366_v49  ;;  %v5517_v18 = vld [vmem:[#allocation5 + $0x4c] sm:$0x7f] }
 0x4ed   : > { %8462 = vmatpush3.bf16.msra.mxu0 %v8822_v44  ;;  %8441 = vmatprep.mubr.msk.bf16.mxu0 %vm420_vm6, %v5260_v45  ;;  %v5521_v52 = vpack.c.bf16 %v5517_v18, %v5516_v37 }
 0x4ee   : > { %8454 = vmatmul.mubr.msk.bf16.vlgmr.msra.gmra.mxu1 %vm420_vm6, %v5389_v28  ;;  %8463 = vmatprep.subr.bf16.mxu0 %v8823_v39 }
 0x4ef   : > { %8457 = vmatprep.mubr.msk.bf16.mxu1 %vm420_vm6, %v5390_v24  ;;  %8478 = vmatpush3.bf16.msra.mxu1 %v8826_v3 }
 0x4f0   : > { %8479 = vmatprep.subr.bf16.mxu1 %v11366_v49 }
 0x4f1   : > { %8464 = vmatpush3.bf16.msra.mxu0 %v8823_v39 }
 0x4f2   : > { %8465 = vmatprep.subr.bf16.mxu0 %v8824_v51 }
 0x4f3   : > { %8480 = vmatpush3.bf16.msra.mxu1 %v8828_v41 }
 0x4f4   : > { %8442 = vmatmul.mubr.msk.bf16.gmra.mxu0 %vm420_vm6, %v5261_v54  ;;  %8481 = vmatprep.subr.bf16.mxu1 %v11366_v49 }
 0x4f5   : > { %8466 = vmatpush3.bf16.msra.mxu0 %v8824_v51  ;;  %8469 = vmatprep.mubr.msk.bf16.mxu0 %vm420_vm6, %v5518_v5 }
 0x4f6   : > { %8458 = vmatmul.mubr.msk.bf16.gmra.mxu1 %vm420_vm6, %v5391_v58  ;;  %8467 = vmatprep.subr.bf16.mxu0 %v8825_v16 }
 0x4f7   : > { %8493 = vmatprep.mubr.msk.bf16.mxu1 %vm8971_vm2, %v11366_v49  ;;  %8482 = vmatpush3.bf16.msra.mxu1 %v8830_v22 }
 0x4f8   : > { %8483 = vmatprep.subr.bf16.mxu1 %v11366_v49 }
 0x4f9   : > { %8468 = vmatpush3.bf16.msra.mxu0 %v8825_v16 }
 0x4fa   : > { %8497 = vmatprep.subr.bf16.mxu0 %v11366_v49 }
 0x4fb   : > { %8484 = vmatpush3.bf16.msra.mxu1 %v8832_v4 }
 0x4fc   : > { %8470 = vmatmul.mubr.msk.bf16.vlgmr.msra.gmra.mxu0 %vm420_vm6, %v5519_v60  ;;  %8485 = vmatprep.subr.bf16.mxu1 %v11366_v49 }
 0x4fd   : > { %8473 = vmatprep.mubr.msk.bf16.mxu0 %vm420_vm6, %v5520_v33  ;;  %8498 = vmatpush3.bf16.msra.mxu0 %v8827_v63 }
 0x4fe   : > { %8499 = vmatprep.subr.bf16.mxu0 %v11366_v49 }
 0x4ff   : > { %8486 = vmatpush3.bf16.msra.mxu1 %v8834_v26 }
 0x500   : > { %8487 = vmatprep.subr.bf16.mxu1 %v11366_v49 }
 0x501   : > { %8500 = vmatpush3.bf16.msra.mxu0 %v8829_v29 }
 0x502   : > { %8501 = vmatprep.subr.bf16.mxu0 %v11366_v49 }
 0x503   : > { %8488 = vmatpush3.bf16.msra.mxu1 %v8836_v48 }
 0x504   : > { %8474 = vmatmul.mubr.msk.bf16.gmra.mxu0 %vm420_vm6, %v5521_v52  ;;  %8489 = vmatprep.subr.bf16.mxu1 %v11366_v49 }
 0x505   : > { %8513 = vmatprep.mubr.msk.bf16.mxu0 %vm8971_vm2, %v11366_v49  ;;  %8502 = vmatpush3.bf16.msra.mxu0 %v8831_v57 }
 0x506   : > { %8503 = vmatprep.subr.bf16.mxu0 %v11366_v49 }
 0x507   : > { %8490 = vmatpush3.bf16.msra.mxu1 %v8838_v23 }
 0x508   : > { %8491 = vmatprep.subr.bf16.mxu1 %v11366_v49 }
 0x509   : > { %8504 = vmatpush3.bf16.msra.mxu0 %v8833_v35 }
 0x50a   : > { %8505 = vmatprep.subr.bf16.mxu0 %v11366_v49 }
 0x50b   : > { %8492 = vmatpush3.bf16.msra.mxu1 %v8840_v47 }
 0x50c   : > { %8517 = vmatprep.subr.bf16.mxu1 %v11366_v49 }
 0x50d   : > { %8506 = vmatpush3.bf16.msra.mxu0 %v8835_v53 }
 0x50e   : > { %8507 = vmatprep.subr.bf16.mxu0 %v11366_v49 }
 0x511   : > { %8508 = vmatpush3.bf16.msra.mxu0 %v8837_v27 }
 0x512   : > { %8509 = vmatprep.subr.bf16.mxu0 %v11366_v49 }
 0x515   : > { %8510 = vmatpush3.bf16.msra.mxu0 %v8839_v40 }
 0x516   : > { %8511 = vmatprep.subr.bf16.mxu0 %v11366_v49 }
 0x519   : > { %8512 = vmatpush3.bf16.msra.mxu0 %v8841_v9 }
 0x51a   : > { %8537 = vmatprep.subr.bf16.mxu0 %v11366_v49 }
 0x56c   : > { %v8343_v1 = vpop.f32.mrf.mxu0 }
 0x56d   : > { %v8359_v31 = vpop.f32.mrf.mxu1 }
 0x56e   : > { %v4598_v34 = vpop.f32.mrf.mxu0  ;;  %v4708_v18 = vadd.f32 %v8359_v31, %v8343_v1 }
 0x56f   : > { %v4699_v59 = vpop.f32.mrf.mxu1 }
 0x570   : > { %v8344_v43 = vpop.f32.mrf.mxu0  ;;  %v4700_v63 = vadd.f32 %v4699_v59, %v4598_v34 }
 0x571   : > { %v8360_v14 = vpop.f32.mrf.mxu1 }
 0x572   : > { %v4601_v32 = vpop.f32.mrf.mxu0  ;;  %v4711_v57 = vadd.f32 %v8360_v14, %v8344_v43 }
 0x573   : > { %v4702_v61 = vpop.f32.mrf.mxu1 }
 0x574   : > { %v4703_v53 = vadd.f32 %v4702_v61, %v4601_v32 }
 0x584   : > { %v8347_v0 = vpop.f32.mrf.mxu0 }
 0x585   : > { %v8363_v15 = vpop.f32.mrf.mxu1 }
 0x586   : > { %v4614_v12 = vpop.f32.mrf.mxu0  ;;  %v4724_v23 = vadd.f32 %v8363_v15, %v8347_v0 }
 0x587   : > { %v4715_v8 = vpop.f32.mrf.mxu1 }
 0x588   : > { %v8348_v20 = vpop.f32.mrf.mxu0  ;;  %v4716_v31 = vadd.f32 %v4715_v8, %v4614_v12 }
 0x589   : > { %v8364_v42 = vpop.f32.mrf.mxu1 }
 0x58a   : > { %v4617_v55 = vpop.f32.mrf.mxu0 }
 0x58b   : > { %v4718_v17 = vpop.f32.mrf.mxu1 }
 0x58c   : > { %v8375_v38 = vpop.f32.mrf.mxu0  ;;  %v4719_v32 = vadd.f32 %v4718_v17, %v4617_v55 }
 0x58d   : > { %v8391_v50 = vpop.f32.mrf.mxu1  ;;  %v4854_v41 = vadd.f32 %v8375_v38, %v4708_v18 }
 0x58e   : > { %v4821_v36 = vpop.f32.mrf.mxu0 }
 0x58f   : > { %v4951_v11 = vpop.f32.mrf.mxu1  ;;  %v4852_v4 = vadd.f32 %v4821_v36, %v4700_v63  ;;  %v4984_v48 = vadd.f32 %v8391_v50, %v4854_v41 }
 0x590   : > { %v8376_v7 = vpop.f32.mrf.mxu0 }
 0x591   : > { %v8392_v10 = vpop.f32.mrf.mxu1  ;;  %v4855_v27 = vadd.f32 %v8376_v7, %v4711_v57  ;;  %v4982_v9 = vadd.f32 %v4951_v11, %v4852_v4 }
 0x592   : > { %v4824_v44 = vpop.f32.mrf.mxu0 }
 0x593   : > { %v4954_v39 = vpop.f32.mrf.mxu1  ;;  %v4853_v20 = vadd.f32 %v4824_v44, %v4703_v53  ;;  %v4985_v59 = vadd.f32 %v8392_v10, %v4855_v27 }
 0x594   : > { %v8379_v45 = vpop.f32.mrf.mxu0 }
 0x595   : > { %v8395_v28 = vpop.f32.mrf.mxu1  ;;  %v4858_v42 = vadd.f32 %v8379_v45, %v4724_v23  ;;  %v4983_v14 = vadd.f32 %v4954_v39, %v4853_v20 }
 0x596   : > { %v4837_v24 = vpop.f32.mrf.mxu0 }
 0x597   : > { %v4967_v51 = vpop.f32.mrf.mxu1  ;;  %v4988_v61 = vadd.f32 %v8395_v28, %v4858_v42 }
 0x598   : > { %v8380_v56 = vpop.f32.mrf.mxu0 }
 0x599   : > { %v8396_v30 = vpop.f32.mrf.mxu1  ;;  %v4856_v56 = vadd.f32 %v4837_v24, %v4716_v31 }
 0x59a   : > { %v4840_v6 = vpop.f32.mrf.mxu0 }
 0x59b   : > { %v10895_v13 = vpop.f32.mrf.mxu1  ;;  %v4986_v11 = vadd.f32 %v4967_v51, %v4856_v56  ;;  %v4857_v44 = vadd.f32 %v4840_v6, %v4719_v32  ;;  %v7279_v51 = vld [vmem:[%s11232_s6] ss:$0 sm:$0xff] }
 0x59c   : > { %v8407_v2 = vpop.f32.mrf.mxu0 }
 0x59d   : > { %v5114_v1 = vadd.f32 %v8407_v2, %v4984_v48 }
 0x59e   : > { %v8423_v54 = vpop.f32.mrf.mxu1  ;;  %v5081_v19 = vpop.f32.mrf.mxu0 }
 0x59f   : > { %v5112_v38 = vadd.f32 %v5081_v19, %v4982_v9  ;;  %v5244_v36 = vadd.f32 %v8423_v54, %v5114_v1  ;;  %v4987_v54 = vadd.f32 %v10895_v13, %v4857_v44 }
 0x5a0   : > { %v5211_v16 = vpop.f32.mrf.mxu1  ;;  %v8408_v5 = vpop.f32.mrf.mxu0 }
 0x5a1   : > { %v5242_v0 = vadd.f32 %v5211_v16, %v5112_v38 }
 0x5a2   : > { %v8424_v58 = vpop.f32.mrf.mxu1  ;;  %v5084_v46 = vpop.f32.mrf.mxu0 }
 0x5a3   : > { %v5113_v15 = vadd.f32 %v5084_v46, %v4983_v14 }
 0x5a4   : > { %v5214_v21 = vpop.f32.mrf.mxu1  ;;  %v8411_v62 = vpop.f32.mrf.mxu0 }
 0x5a5   : > { %v5118_v2 = vadd.f32 %v8411_v62, %v4988_v61  ;;  %v5243_v18 = vadd.f32 %v5214_v21, %v5113_v15 }
 0x5a6   : > { %v8427_v60 = vpop.f32.mrf.mxu1  ;;  %v5097_v25 = vpop.f32.mrf.mxu0 }
 0x5a7   : > { %v5116_v19 = vadd.f32 %v5097_v25, %v4986_v11  ;;  %v5248_v55 = vadd.f32 %v8427_v60, %v5118_v2 }
 0x5a8   : > { %v5227_v33 = vpop.f32.mrf.mxu1  ;;  %v8412_v37 = vpop.f32.mrf.mxu0 }
 0x5a9   : > { %v5115_v37 = vadd.f32 %v8408_v5, %v4985_v59  ;;  %v5246_v46 = vadd.f32 %v5227_v33, %v5116_v19 }
 0x5aa   : > { %v8428_v52 = vpop.f32.mrf.mxu1  ;;  %v5100_v3 = vpop.f32.mrf.mxu0 }
 0x5ab   : > { %v5245_v45 = vadd.f32 %v8424_v58, %v5115_v37  ;;  %v5117_v58 = vadd.f32 %v5100_v3, %v4987_v54 }
 0x5ac   : > { %v10897_v29 = vpop.f32.mrf.mxu1  ;;  %v8439_v22 = vpop.f32.mrf.mxu0 }
 0x5ad   : > { %v5374_v7 = vadd.f32 %v8439_v22, %v5244_v36  ;;  %v5247_v53 = vadd.f32 %v10897_v29, %v5117_v58 }
 0x5ae   : > { %v8455_v35 = vpop.f32.mrf.mxu1  ;;  %v5341_v26 = vpop.f32.mrf.mxu0 }
 0x5af   : > { %v5372_v10 = vadd.f32 %v5341_v26, %v5242_v0  ;;  %v5504_v52 = vadd.f32 %v8455_v35, %v5374_v7 }
 0x5b0   : > { %v5471_v40 = vpop.f32.mrf.mxu1  ;;  %v8440_v47 = vpop.f32.mrf.mxu0 }
 0x5b1   : > { %v5375_v39 = vadd.f32 %v8440_v47, %v5245_v45  ;;  %v5502_v6 = vadd.f32 %v5471_v40, %v5372_v10 }
 0x5b2   : > { %v5344_v34 = vpop.f32.mrf.mxu0  ;;  %v8456_v30 = vpop.f32.mrf.mxu1 }
 0x5b3   : > { %v5373_v16 = vadd.f32 %v5344_v34, %v5243_v18  ;;  %v5505_v63 = vadd.f32 %v8456_v30, %v5375_v39 }
 0x5b4   : > { %v8443_v43 = vpop.f32.mrf.mxu0  ;;  %v5474_v12 = vpop.f32.mrf.mxu1 }
 0x5b5   : > { %v5378_v62 = vadd.f32 %v8443_v43, %v5248_v55  ;;  %v5503_v60 = vadd.f32 %v5474_v12, %v5373_v16  ;;  %v8842_v16 = vld [vmem:[%s11233_s7 + $0xb8] sm:$0xff]  }
 0x5b6   : > { %v5357_v50 = vpop.f32.mrf.mxu0  ;;  %v8459_v17 = vpop.f32.mrf.mxu1 }
 0x5b7   : > { %v5376_v22 = vadd.f32 %v5357_v50, %v5246_v46  ;;  %v5508_v48 = vadd.f32 %v8459_v17, %v5378_v62 }
 0x5b8   : > { %v8444_v8 = vpop.f32.mrf.mxu0  ;;  %v5487_v57 = vpop.f32.mrf.mxu1 }
 0x5b9   : > { %v5506_v40 = vadd.f32 %v5487_v57, %v5376_v22  ;;  %v8846_v22 = vld [vmem:[%s11233_s7 + $0xa8] sm:$0xff]  }
 0x5ba   : > { %v5360_v24 = vpop.f32.mrf.mxu0  ;;  %v8460_v47 = vpop.f32.mrf.mxu1  ;;  %v8847_v57 = vld [vmem:[%s11233_s7 + $0xe8] sm:$0xff]  }
 0x5bb   : > { %v5377_v20 = vadd.f32 %v5360_v24, %v5247_v53  ;;  %v8853_v53 = vld [vmem:[%s11233_s7 + $0xd0] sm:$0xff]   ;;  %v8858_v47 = vld [vmem:[%s11233_s7 + $0x138] sm:$0xff]  }
 0x5bc   : > { %v8471_v28 = vpop.f32.mrf.mxu0  ;;  %v5490_v29 = vpop.f32.mrf.mxu1 }
 0x5bd   : > { %v5634_v5 = vadd.f32 %v8471_v28, %v5504_v52  ;;  %v5507_v43 = vadd.f32 %v5490_v29, %v5377_v20  ;;  %v8866_v29 = vld [vmem:[%s11233_s7 + $0x118] sm:$0xff]  }
 0x5be   : > { %v5601_v25 = vpop.f32.mrf.mxu0 }
 0x5bf   : > { %v5649_v21 = vadd.f32 %v7279_v51, %v5634_v5  ;;  %v5632_v41 = vadd.f32 %v5601_v25, %v5502_v6  ;;  %v8843_v5 = vld [vmem:[%s11233_s7 + $0xf8] sm:$0xff]  }
 0x5c0   : > { %v8472_v13 = vpop.f32.mrf.mxu0 }
 0x5c1   : > { %v5657_v4 = vmax.f32 %v5649_v21, 0.0  ;;  %v5647_v35 = vadd.f32 %v7279_v51, %v5632_v41  ;;  %v5635_v26 = vadd.f32 %v8472_v13, %v5505_v63  ;;  %v8844_v21 = vld [vmem:[%s11233_s7 + $0xb0] sm:$0xff]   ;;  %v8848_v13 = vld [vmem:[%s11233_s7 + $0xa0] sm:$0xff]  }
 0x5c2   : > { %v5604_v27 = vpop.f32.mrf.mxu0  ;;  %v8845_v41 = vld [vmem:[%s11233_s7 + $0xf0] sm:$0xff]  }
 0x5c3   : > { %5665 = vst [vmem:[#allocation6 + $0x10] sm:$0xff] %v5657_v4  ;;  %v5655_v23 = vmax.f32 %v5647_v35, 0.0  ;;  %v5650_v33 = vadd.f32 %v7279_v51, %v5635_v26  ;;  %v5633_v3 = vadd.f32 %v5604_v27, %v5503_v60  ;;  %v8849_v60 = vld [vmem:[%s11233_s7 + $0xe0] sm:$0xff]   ;;  %v8850_v4 = vld [vmem:[%s11233_s7 + $0x98] sm:$0xff]   ;;  %v8852_v26 = vld [vmem:[%s11233_s7 + $0x90] sm:$0xff]  }
 0x5c4   : > { %v8475_v9 = vpop.f32.mrf.mxu0  ;;  %v8851_v35 = vld [vmem:[%s11233_s7 + $0xd8] sm:$0xff]   ;;  %v8855_v27 = vld [vmem:[%s11233_s7 + $0xc8] sm:$0xff]  }
 0x5c5   : > { %5663 = vst [vmem:[#allocation6] sm:$0xff] %v5655_v23  ;;  %v5658_v1 = vmax.f32 %v5650_v33, 0.0  ;;  %v5648_v31 = vadd.f32 %v7279_v51, %v5633_v3  ;;  %v5638_v42 = vadd.f32 %v8475_v9, %v5508_v48  ;;  %v8854_v48 = vld [vmem:[%s11233_s7 + $0x88] sm:$0xff]   ;;  %v8856_v23 = vld [vmem:[%s11233_s7 + $0x80] sm:$0xff]   ;;  %v8859_v9 = vld [vmem:[%s11233_s7 + $0x178] sm:$0xff]  }
 0x5c6   : > { %v5617_v34 = vpop.f32.mrf.mxu0  ;;  %v8857_v33 = vld [vmem:[%s11233_s7 + $0xc0] sm:$0xff]  }
 0x5c7   : > { %5666 = vst [vmem:[#allocation6 + $0x18] sm:$0xff] %v5658_v1  ;;  %v5656_v59 = vmax.f32 %v5648_v31, 0.0  ;;  %v5653_v38 = vadd.f32 %v7279_v51, %v5638_v42  ;;  %v5636_v56 = vadd.f32 %v5617_v34, %v5506_v40  ;;  %v8860_v31 = vld [vmem:[%s11233_s7 + $0x130] sm:$0xff]   ;;  %v8862_v34 = vld [vmem:[%s11233_s7 + $0x128] sm:$0xff]  }
 0x5c8   : > { %v8476_v30 = vpop.f32.mrf.mxu0  ;;  %v8861_v42 = vld [vmem:[%s11233_s7 + $0x170] sm:$0xff]  }
 0x5c9   : > { %5664 = vst [vmem:[#allocation6 + $0x8] sm:$0xff] %v5656_v59  ;;  %v5661_v14 = vmax.f32 %v5653_v38, 0.0  ;;  %v5651_v36 = vadd.f32 %v7279_v51, %v5636_v56  ;;  %v8863_v59 = vld [vmem:[%s11233_s7 + $0x168] sm:$0xff]   ;;  %v8864_v38 = vld [vmem:[%s11233_s7 + $0x120] sm:$0xff]   ;;  %v8867_v30 = vld [vmem:[%s11233_s7 + $0x158] sm:$0xff]  }
 0x5ca   : > { %v5620_v37 = vpop.f32.mrf.mxu0  ;;  %v5683_v8 = vld [vmem:[#allocation6 + $0x12] ss:$2 sm:$0x7]  ;;  %v5685_v45 = vld [vmem:[#allocation6 + $0x13] ss:$2 sm:$0x7] }
 0x5cb   : > { %5669 = vst [vmem:[#allocation6 + $0x30] sm:$0xff] %v5661_v14  ;;  %v5659_v32 = vmax.f32 %v5651_v36, 0.0  ;;  %v5637_v61 = vadd.f32 %v5620_v37, %v5507_v43  ;;  %v5686_v18 = vmax.f32 %v5683_v8, %v5685_v45  ;;  %v8865_v56 = vld [vmem:[%s11233_s7 + $0x160] sm:$0xff]   ;;  %v8868_v43 = vld [vmem:[%s11233_s7 + $0x110] sm:$0xff]   ;;  %v8870_v36 = vld [vmem:[%s11233_s7 + $0x108] sm:$0xff]  }
 0x5cc   : > { %v5671_v0 = vld [vmem:[#allocation6] ss:$2 sm:$0x7]  ;;  %v5673_v15 = vld [vmem:[#allocation6 + $0x1] ss:$2 sm:$0x7] }
 0x5cd   : > { %5667 = vst [vmem:[#allocation6 + $0x20] sm:$0xff] %v5659_v32  ;;  %v5652_v50 = vadd.f32 %v7279_v51, %v5637_v61  ;;  %v5674_v2 = vmax.f32 %v5671_v0, %v5673_v15  ;;  %v8869_v14 = vld [vmem:[%s11233_s7 + $0x150] sm:$0xff]   ;;  %v8871_v37 = vld [vmem:[%s11233_s7 + $0x148] sm:$0xff]   ;;  %v8872_v32 = vld [vmem:[%s11233_s7 + $0x100] sm:$0xff]  }
 0x5ce   : > { %v5688_v19 = vld [vmem:[#allocation6 + $0x1b] ss:$2 sm:$0x7]  ;;  %v8873_v61 = vld [vmem:[%s11233_s7 + $0x140] sm:$0xff]   ;;  %v8878_v8 = vld [vmem:[%s11233_s7 + $0x1a8] sm:$0xff]  }
 0x5cf   : > { %v5660_v7 = vmax.f32 %v5652_v50, 0.0  ;;  %v8874_v15 = vld [vmem:[%s11233_s7 + $0x1b8] sm:$0xff]   ;;  %v8879_v45 = vld [vmem:[%s11233_s7 + $0x1e8] sm:$0xff]  }
 0x5d0   : > { %v5676_v11 = vld [vmem:[#allocation6 + $0x9] ss:$2 sm:$0x7]  ;;  %v5678_v44 = vld [vmem:[#allocation6 + $0xa] ss:$2 sm:$0x7] }
 0x5d1   : > { %v5679_v12 = vmax.f32 %v5676_v11, %v5678_v44  ;;  %5668 = vst [vmem:[#allocation6 + $0x28] sm:$0xff] %v5660_v7  ;;  %v8875_v7 = vld [vmem:[%s11233_s7 + $0x1f8] sm:$0xff]  }
 0x5d3   : > { %v5680_v10 = vmax.f32 %v5674_v2, %v5679_v12  ;;  %v8876_v2 = vld [vmem:[%s11233_s7 + $0x1b0] sm:$0xff]  }
 0x5d4   : > { %v5690_v24 = vld [vmem:[#allocation6 + $0x1c] ss:$2 sm:$0x7]  ;;  %v8877_v12 = vld [vmem:[%s11233_s7 + $0x1f0] sm:$0xff]  }
 0x5d5   : > { %5681 = vst [vmem:[#allocation7] sm:$0x7] %v5680_v10  ;;  %v5691_v52 = vmax.f32 %v5688_v19, %v5690_v24  ;;  %v8880_v10 = vld [vmem:[%s11233_s7 + $0x1a0] sm:$0xff]   ;;  %v8882_v24 = vld [vmem:[%s11233_s7 + $0x198] sm:$0xff]  }
 0x5d6   : > { %v8881_v19 = vld [vmem:[%s11233_s7 + $0x1e0] sm:$0xff]  }
 0x5d7   : > { %v5692_v39 = vmax.f32 %v5686_v18, %v5691_v52  ;;  %v8883_v18 = vld [vmem:[%s11233_s7 + $0x1d8] sm:$0xff]   ;;  %v8884_v52 = vld [vmem:[%s11233_s7 + $0x190] sm:$0xff]  }
 0x5d8   : > { %v5695_v54 = vld [vmem:[#allocation6 + $0x24] ss:$2 sm:$0x7]  ;;  %v5697_v55 = vld [vmem:[#allocation6 + $0x25] ss:$2 sm:$0x7] }
 0x5d9   : > { %5693 = vst [vmem:[#allocation7 + $0x3] sm:$0x7] %v5692_v39  ;;  %v5698_v17 = vmax.f32 %v5695_v54, %v5697_v55  ;;  %v5700_v28 = vld [vmem:[#allocation6 + $0x2d] ss:$2 sm:$0x7] }
 0x5da   : > { %v5702_v51 = vld [vmem:[#allocation6 + $0x2e] ss:$2 sm:$0x7] }
 0x5db   : > { %v5703_v6 = vmax.f32 %v5700_v28, %v5702_v51  ;;  %v8885_v39 = vld [vmem:[%s11233_s7 + $0x1d0] sm:$0xff]   ;;  %v8886_v54 = vld [vmem:[%s11233_s7 + $0x188] sm:$0xff]   ;;  %v8889_v28 = vld [vmem:[%s11233_s7 + $0x1c0] sm:$0xff]  }
 0x5dc   : > { %v5725_v58 = vld [vmem:[#allocation7 + $0x1] ss:$9 sm:$0x1]  ;;  %v5706_v62 = vld [vmem:[#allocation7] ss:$9 sm:$0x1] }
 0x5dd   : > { %v5704_v46 = vmax.f32 %v5698_v17, %v5703_v6  ;;  %v5726_v25 = vpack.c.bf16 %v5725_v58, %v5725_v58  ;;  %v5707_v63 = vpack.c.bf16 %v5706_v62, %v5706_v62  ;;  %v5921_v3 = vld [vmem:[#allocation7 + $0x2] ss:$9 sm:$0x1]  ;;  %v8887_v55 = vld [vmem:[%s11233_s7 + $0x1c8] sm:$0xff]   ;;  %v8891_v58 = vld [vmem:[%s11233_s7 + $0x230] sm:$0xff]  }
 0x5de   : > { %v5922_v20 = vpack.c.bf16 %v5921_v3, %v5921_v3  ;;  %v8888_v17 = vld [vmem:[%s11233_s7 + $0x180] sm:$0xff]   ;;  %v8892_v62 = vld [vmem:[%s11233_s7 + $0x228] sm:$0xff]  }
 0x5df   : > { %5705 = vst [vmem:[#allocation7 + $0x6] sm:$0x7] %v5704_v46  ;;  %8494 = vmatmul.mubr.bf16.vlgmr.msra.gmra.mxu1 %v5726_v25  ;;  %8514 = vmatmul.mubr.bf16.vlgmr.msra.gmra.mxu0 %v5707_v63  ;;  %v8893_v25 = vld [vmem:[%s11233_s7 + $0x220] sm:$0xff]   ;;  %v8894_v63 = vld [vmem:[%s11233_s7 + $0x218] sm:$0xff]  }
 0x5e0   : > { %8518 = vmatpush3.bf16.msra.mxu1 %v8842_v16  ;;  %8538 = vmatpush3.bf16.msra.mxu0 %v8843_v5  ;;  %v6030_v40 = vld [vmem:[#allocation7 + $0x3] ss:$9 sm:$0x1]  ;;  %v6139_v50 = vld [vmem:[#allocation7 + $0x4] ss:$9 sm:$0x1] }
 0x5e1   : > { %8519 = vmatprep.subr.bf16.mxu1 %v11366_v49  ;;  %8539 = vmatprep.subr.bf16.mxu0 %v11366_v49  ;;  %v6031_v1 = vpack.c.bf16 %v6030_v40, %v6030_v40  ;;  %v6248_v0 = vld [vmem:[#allocation7 + $0x5] ss:$9 sm:$0x1]  ;;  %v6140_v11 = vpack.c.bf16 %v6139_v50, %v6139_v50  ;;  %v8890_v16 = vld [vmem:[%s11233_s7 + $0x238] sm:$0xff]  }
 0x5e2   : > { %8533 = vmatprep.mubr.msk.bf16.mxu1 %vm8971_vm2, %v11366_v49  ;;  %8553 = vmatprep.mubr.msk.bf16.mxu0 %vm8971_vm2, %v11366_v49  ;;  %v6249_v44 = vpack.c.bf16 %v6248_v0, %v6248_v0 }
 0x5e4   : > { %8520 = vmatpush3.bf16.msra.mxu1 %v8844_v21  ;;  %8540 = vmatpush3.bf16.msra.mxu0 %v8845_v41  ;;  %v8895_v21 = vld [vmem:[%s11233_s7 + $0x210] sm:$0xff]   ;;  %v8896_v41 = vld [vmem:[%s11233_s7 + $0x208] sm:$0xff]  }
 0x5e5   : > { %8521 = vmatprep.subr.bf16.mxu1 %v11366_v49  ;;  %8541 = vmatprep.subr.bf16.mxu0 %v11366_v49 }
 0x5e6   : > { %v6357_v51 = vld [vmem:[#allocation7 + $0x6] ss:$9 sm:$0x1]  ;;  %v6466_v6 = vld [vmem:[#allocation7 + $0x7] ss:$9 sm:$0x1] }
 0x5e7   : > { %v6358_v5 = vpack.c.bf16 %v6357_v51, %v6357_v51  ;;  %v6467_v46 = vpack.c.bf16 %v6466_v6, %v6466_v6 }
 0x5e8   : > { %8522 = vmatpush3.bf16.msra.mxu1 %v8846_v22  ;;  %8542 = vmatpush3.bf16.msra.mxu0 %v8847_v57  ;;  %v8897_v22 = vld [vmem:[%s11233_s7 + $0x200] sm:$0xff]   ;;  %v6575_v57 = vld [vmem:[#allocation7 + $0x8] ss:$9 sm:$0x1] }
 0x5e9   : > { %8523 = vmatprep.subr.bf16.mxu1 %v11366_v49  ;;  %8543 = vmatprep.subr.bf16.mxu0 %v11366_v49 }
 0x5ec   : > { %8524 = vmatpush3.bf16.msra.mxu1 %v8848_v13  ;;  %8544 = vmatpush3.bf16.msra.mxu0 %v8849_v60  ;;  %v6576_v13 = vpack.c.bf16 %v6575_v57, %v6575_v57  ;;  %v8898_v60 = vld [vmem:[%s11235_s9 + $0x38] sm:$0xff]  }
 0x5ed   : > { %8525 = vmatprep.subr.bf16.mxu1 %v11366_v49  ;;  %8545 = vmatprep.subr.bf16.mxu0 %v11366_v49 }
 0x5f0   : > { %8526 = vmatpush3.bf16.msra.mxu1 %v8850_v4  ;;  %8546 = vmatpush3.bf16.msra.mxu0 %v8851_v35  ;;  %v8899_v4 = vld [vmem:[%s11235_s9 + $0x30] sm:$0xff]   ;;  %v8900_v35 = vld [vmem:[%s11235_s9 + $0x28] sm:$0xff]  }
 0x5f1   : > { %8527 = vmatprep.subr.bf16.mxu1 %v11366_v49  ;;  %8547 = vmatprep.subr.bf16.mxu0 %v11366_v49 }
 0x5f4   : > { %8528 = vmatpush3.bf16.msra.mxu1 %v8852_v26  ;;  %8548 = vmatpush3.bf16.msra.mxu0 %v8853_v53  ;;  %v8901_v26 = vld [vmem:[%s11235_s9 + $0x20] sm:$0xff]   ;;  %v8902_v53 = vld [vmem:[%s11235_s9 + $0x18] sm:$0xff]  }
 0x5f5   : > { %8529 = vmatprep.subr.bf16.mxu1 %v11366_v49  ;;  %8549 = vmatprep.subr.bf16.mxu0 %v11366_v49 }
 0x5f8   : > { %8530 = vmatpush3.bf16.msra.mxu1 %v8854_v48  ;;  %8550 = vmatpush3.bf16.msra.mxu0 %v8855_v27  ;;  %v8903_v48 = vld [vmem:[%s11235_s9 + $0x10] sm:$0xff]  }
 0x5f9   : > { %8531 = vmatprep.subr.bf16.mxu1 %v11366_v49  ;;  %8551 = vmatprep.subr.bf16.mxu0 %v11366_v49 }
 0x5fc   : > { %8532 = vmatpush3.bf16.msra.mxu1 %v8856_v23  ;;  %8552 = vmatpush3.bf16.msra.mxu0 %v8857_v33 }
 0x5fd   : > { %8557 = vmatprep.subr.bf16.mxu1 %v11366_v49  ;;  %8577 = vmatprep.subr.bf16.mxu0 %v11366_v49 }
 0x5ff   : > { %8534 = vmatmul.mubr.bf16.vlgmr.msra.gmra.mxu1 %v5922_v20  ;;  %8554 = vmatmul.mubr.bf16.vlgmr.msra.gmra.mxu0 %v6031_v1 }
 0x600   : > { %8558 = vmatpush3.bf16.msra.mxu1 %v8858_v47  ;;  %8578 = vmatpush3.bf16.msra.mxu0 %v8859_v9  ;;  %v8904_v47 = vld [vmem:[%s11235_s9 + $0x8] sm:$0xff]  }
 0x601   : > { %8559 = vmatprep.subr.bf16.mxu1 %v11366_v49  ;;  %8579 = vmatprep.subr.bf16.mxu0 %v11366_v49 }
 0x602   : > { %8573 = vmatprep.mubr.msk.bf16.mxu1 %vm8971_vm2, %v11366_v49  ;;  %8593 = vmatprep.mubr.msk.bf16.mxu0 %vm8971_vm2, %v11366_v49 }
 0x604   : > { %8560 = vmatpush3.bf16.msra.mxu1 %v8860_v31  ;;  %8580 = vmatpush3.bf16.msra.mxu0 %v8861_v42  ;;  %v8905_v42 = vld [vmem:[%s11235_s9] sm:$0xff]  }
 0x605   : > { %8561 = vmatprep.subr.bf16.mxu1 %v11366_v49  ;;  %8581 = vmatprep.subr.bf16.mxu0 %v11366_v49 }
 0x608   : > { %8562 = vmatpush3.bf16.msra.mxu1 %v8862_v34  ;;  %8582 = vmatpush3.bf16.msra.mxu0 %v8863_v59 }
 0x609   : > { %8563 = vmatprep.subr.bf16.mxu1 %v11366_v49  ;;  %8583 = vmatprep.subr.bf16.mxu0 %v11366_v49 }
 0x60c   : > { %8564 = vmatpush3.bf16.msra.mxu1 %v8864_v38  ;;  %8584 = vmatpush3.bf16.msra.mxu0 %v8865_v56 }
 0x60d   : > { %8565 = vmatprep.subr.bf16.mxu1 %v11366_v49  ;;  %8585 = vmatprep.subr.bf16.mxu0 %v11366_v49 }
 0x610   : > { %8566 = vmatpush3.bf16.msra.mxu1 %v8866_v29  ;;  %8586 = vmatpush3.bf16.msra.mxu0 %v8867_v30 }
 0x611   : > { %8567 = vmatprep.subr.bf16.mxu1 %v11366_v49  ;;  %8587 = vmatprep.subr.bf16.mxu0 %v11366_v49 }
 0x614   : > { %8568 = vmatpush3.bf16.msra.mxu1 %v8868_v43  ;;  %8588 = vmatpush3.bf16.msra.mxu0 %v8869_v14 }
 0x615   : > { %8569 = vmatprep.subr.bf16.mxu1 %v11366_v49  ;;  %8589 = vmatprep.subr.bf16.mxu0 %v11366_v49 }
 0x618   : > { %8570 = vmatpush3.bf16.msra.mxu1 %v8870_v36  ;;  %8590 = vmatpush3.bf16.msra.mxu0 %v8871_v37 }
 0x619   : > { %8571 = vmatprep.subr.bf16.mxu1 %v11366_v49  ;;  %8591 = vmatprep.subr.bf16.mxu0 %v11366_v49 }
 0x61c   : > { %8572 = vmatpush3.bf16.msra.mxu1 %v8872_v32  ;;  %8592 = vmatpush3.bf16.msra.mxu0 %v8873_v61 }
 0x61d   : > { %8597 = vmatprep.subr.bf16.mxu1 %v11366_v49  ;;  %8617 = vmatprep.subr.bf16.mxu0 %v11366_v49 }
 0x61f   : > { %8574 = vmatmul.mubr.bf16.vlgmr.msra.gmra.mxu1 %v6140_v11  ;;  %8594 = vmatmul.mubr.bf16.vlgmr.msra.gmra.mxu0 %v6249_v44 }
 0x620   : > { %8598 = vmatpush3.bf16.msra.mxu1 %v8874_v15  ;;  %8618 = vmatpush3.bf16.msra.mxu0 %v8875_v7 }
 0x621   : > { %8599 = vmatprep.subr.bf16.mxu1 %v11366_v49  ;;  %8619 = vmatprep.subr.bf16.mxu0 %v11366_v49 }
 0x622   : > { %8613 = vmatprep.mubr.msk.bf16.mxu1 %vm8971_vm2, %v11366_v49  ;;  %8633 = vmatprep.mubr.msk.bf16.mxu0 %vm8971_vm2, %v11366_v49 }
 0x624   : > { %8600 = vmatpush3.bf16.msra.mxu1 %v8876_v2  ;;  %8620 = vmatpush3.bf16.msra.mxu0 %v8877_v12 }
 0x625   : > { %8601 = vmatprep.subr.bf16.mxu1 %v11366_v49  ;;  %8621 = vmatprep.subr.bf16.mxu0 %v11366_v49 }
 0x628   : > { %8602 = vmatpush3.bf16.msra.mxu1 %v8878_v8  ;;  %8622 = vmatpush3.bf16.msra.mxu0 %v8879_v45 }
 0x629   : > { %8603 = vmatprep.subr.bf16.mxu1 %v11366_v49  ;;  %8623 = vmatprep.subr.bf16.mxu0 %v11366_v49 }
 0x62c   : > { %8604 = vmatpush3.bf16.msra.mxu1 %v8880_v10  ;;  %8624 = vmatpush3.bf16.msra.mxu0 %v8881_v19 }
 0x62d   : > { %8605 = vmatprep.subr.bf16.mxu1 %v11366_v49  ;;  %8625 = vmatprep.subr.bf16.mxu0 %v11366_v49 }
 0x630   : > { %8606 = vmatpush3.bf16.msra.mxu1 %v8882_v24  ;;  %8626 = vmatpush3.bf16.msra.mxu0 %v8883_v18 }
 0x631   : > { %8607 = vmatprep.subr.bf16.mxu1 %v11366_v49  ;;  %8627 = vmatprep.subr.bf16.mxu0 %v11366_v49 }
 0x634   : > { %8608 = vmatpush3.bf16.msra.mxu1 %v8884_v52  ;;  %8628 = vmatpush3.bf16.msra.mxu0 %v8885_v39 }
 0x635   : > { %8609 = vmatprep.subr.bf16.mxu1 %v11366_v49  ;;  %8629 = vmatprep.subr.bf16.mxu0 %v11366_v49 }
 0x638   : > { %8610 = vmatpush3.bf16.msra.mxu1 %v8886_v54  ;;  %8630 = vmatpush3.bf16.msra.mxu0 %v8887_v55 }
 0x639   : > { %8611 = vmatprep.subr.bf16.mxu1 %v11366_v49  ;;  %8631 = vmatprep.subr.bf16.mxu0 %v11366_v49 }
 0x63c   : > { %8612 = vmatpush3.bf16.msra.mxu1 %v8888_v17  ;;  %8632 = vmatpush3.bf16.msra.mxu0 %v8889_v28  ;;  %v6683_v17 = vld [vmem:[%s11234_s8] sm:$0x1] }
 0x63d   : > { %8637 = vmatprep.subr.bf16.mxu1 %v11366_v49  ;;  %8657 = vmatprep.subr.bf16.mxu0 %v11366_v49 }
 0x63f   : > { %8614 = vmatmul.mubr.bf16.vlgmr.msra.gmra.mxu1 %v6358_v5  ;;  %8634 = vmatmul.mubr.bf16.vlgmr.msra.gmra.mxu0 %v6467_v46 }
 0x640   : > { %8638 = vmatpush3.bf16.msra.mxu1 %v8890_v16  ;;  %8653 = vmatprep.mubr.msk.bf16.mxu1 %vm8971_vm2, %v11366_v49 }
 0x641   : > { %8639 = vmatprep.subr.bf16.mxu1 %v11366_v49  ;;  %8673 = vmatprep.mubr.msk.bf16.mxu0 %vm8971_vm2, %v11366_v49 }
 0x642   : > { %8658 = vmatpush3.bf16.msra.mxu0 %v8898_v60 }
 0x643   : > { %8659 = vmatprep.subr.bf16.mxu0 %v11366_v49 }
 0x644   : > { %8640 = vmatpush3.bf16.msra.mxu1 %v8891_v58 }
 0x645   : > { %8641 = vmatprep.subr.bf16.mxu1 %v11366_v49 }
 0x646   : > { %8660 = vmatpush3.bf16.msra.mxu0 %v8899_v4 }
 0x647   : > { %8661 = vmatprep.subr.bf16.mxu0 %v11366_v49 }
 0x648   : > { %8642 = vmatpush3.bf16.msra.mxu1 %v8892_v62  ;;  %v6703_v62 = vld [vmem:[%s11236_s10] sm:$0x1] }
 0x649   : > { %8643 = vmatprep.subr.bf16.mxu1 %v11366_v49 }
 0x64a   : > { %8662 = vmatpush3.bf16.msra.mxu0 %v8900_v35 }
 0x64b   : > { %8663 = vmatprep.subr.bf16.mxu0 %v11366_v49 }
 0x64c   : > { %8644 = vmatpush3.bf16.msra.mxu1 %v8893_v25 }
 0x64d   : > { %8645 = vmatprep.subr.bf16.mxu1 %v11366_v49 }
 0x64e   : > { %8664 = vmatpush3.bf16.msra.mxu0 %v8901_v26 }
 0x64f   : > { %8665 = vmatprep.subr.bf16.mxu0 %v11366_v49 }
 0x650   : > { %8646 = vmatpush3.bf16.msra.mxu1 %v8894_v63 }
 0x651   : > { %8647 = vmatprep.subr.bf16.mxu1 %v11366_v49 }
 0x652   : > { %8666 = vmatpush3.bf16.msra.mxu0 %v8902_v53 }
 0x653   : > { %8667 = vmatprep.subr.bf16.mxu0 %v11366_v49 }
 0x654   : > { %8648 = vmatpush3.bf16.msra.mxu1 %v8895_v21 }
 0x655   : > { %8649 = vmatprep.subr.bf16.mxu1 %v11366_v49 }
 0x656   : > { %8668 = vmatpush3.bf16.msra.mxu0 %v8903_v48 }
 0x657   : > { %8669 = vmatprep.subr.bf16.mxu0 %v11366_v49 }
 0x658   : > { %8650 = vmatpush3.bf16.msra.mxu1 %v8896_v41 }
 0x659   : > { %8651 = vmatprep.subr.bf16.mxu1 %v11366_v49 }
 0x65a   : > { %8670 = vmatpush3.bf16.msra.mxu0 %v8904_v47 }
 0x65b   : > { %8671 = vmatprep.subr.bf16.mxu0 %v11366_v49 }
 0x65c   : > { %8652 = vmatpush3.bf16.msra.mxu1 %v8897_v22 }
 0x65e   : > { %8672 = vmatpush3.bf16.msra.mxu0 %v8905_v42 }
 0x65f   : > { %8654 = vmatmul.mubr.bf16.vlgmr.msra.gmra.mxu1 %v6576_v13 }
 0x69f   : > { %v5826_v27 = vpop.f32.mrf.mxu1  ;;  %v5914_v23 = vpop.f32.mrf.mxu0 }
 0x6a0   : > { %v5915_v33 = vadd.f32 %v5914_v23, %v5826_v27 }
 0x6a1   : > { %v8495_v3 = vpop.f32.mrf.mxu1  ;;  %v8515_v40 = vpop.f32.mrf.mxu0 }
 0x6a3   : > { %v5829_v9 = vpop.f32.mrf.mxu1  ;;  %v5917_v20 = vpop.f32.mrf.mxu0 }
 0x6a5   : > { %v8496_v1 = vpop.f32.mrf.mxu1  ;;  %v8516_v31 = vpop.f32.mrf.mxu0 }
 0x6bf   : > { %v6022_v34 = vpop.f32.mrf.mxu1  ;;  %v6131_v59 = vpop.f32.mrf.mxu0 }
 0x6c0   : > { %v6028_v38 = vadd.f32 %v6022_v34, %v5915_v33 }
 0x6c1   : > { %v8535_v56 = vpop.f32.mrf.mxu1  ;;  %v8555_v29 = vpop.f32.mrf.mxu0 }
 0x6c2   : > { %v6137_v30 = vadd.f32 %v6131_v59, %v6028_v38 }
 0x6c3   : > { %v6025_v43 = vpop.f32.mrf.mxu1  ;;  %v6134_v14 = vpop.f32.mrf.mxu0 }
 0x6c5   : > { %v8536_v36 = vpop.f32.mrf.mxu1  ;;  %v8556_v37 = vpop.f32.mrf.mxu0 }
 0x6df   : > { %v6240_v32 = vpop.f32.mrf.mxu1  ;;  %v6349_v61 = vpop.f32.mrf.mxu0 }
 0x6e0   : > { %v6246_v18 = vadd.f32 %v6240_v32, %v6137_v30 }
 0x6e1   : > { %v8575_v49 = vpop.f32.mrf.mxu1  ;;  %v8595_v50 = vpop.f32.mrf.mxu0 }
 0x6e2   : > { %v6355_v52 = vadd.f32 %v6349_v61, %v6246_v18 }
 0x6e3   : > { %v6243_v0 = vpop.f32.mrf.mxu1  ;;  %v6352_v15 = vpop.f32.mrf.mxu0 }
 0x6e5   : > { %v8576_v7 = vpop.f32.mrf.mxu1  ;;  %v8596_v11 = vpop.f32.mrf.mxu0 }
 0x6ff   : > { %v6458_v44 = vpop.f32.mrf.mxu1  ;;  %v6567_v2 = vpop.f32.mrf.mxu0 }
 0x700   : > { %v6464_v39 = vadd.f32 %v6458_v44, %v6355_v52 }
 0x701   : > { %v8615_v12 = vpop.f32.mrf.mxu1  ;;  %v8635_v8 = vpop.f32.mrf.mxu0 }
 0x702   : > { %v6573_v54 = vadd.f32 %v6567_v2, %v6464_v39 }
 0x703   : > { %v6461_v45 = vpop.f32.mrf.mxu1  ;;  %v6570_v10 = vpop.f32.mrf.mxu0 }
 0x705   : > { %v8616_v19 = vpop.f32.mrf.mxu1  ;;  %v8636_v24 = vpop.f32.mrf.mxu0 }
 0x71f   : > { %v6676_v55 = vpop.f32.mrf.mxu1 }
 0x720   : > { %v6682_v28 = vadd.f32 %v6676_v55, %v6573_v54 }
 0x721   : > { %v8655_v51 = vpop.f32.mrf.mxu1 }
 0x722   : > { %v6684_v6 = vadd.f32 %v6683_v17, %v6682_v28 }
 0x723   : > { %v6679_v16 = vpop.f32.mrf.mxu1 }
 0x724   : > { %v6685_v5 = vmax.f32 %v6684_v6, 0.0 }
 0x725   : > { %v8656_v46 = vpop.f32.mrf.mxu1 }
 0x726   : > { %v6686_v58 = vpack.c.bf16 %v6685_v5, %v6685_v5 }
 0x728   : > { %8674 = vmatmul.mubr.bf16.vlgmr.msra.gmra.mxu0 %v6686_v58 }
 0x7e8   : > { %v6786_v25 = vpop.f32.mrf.mxu0 }
 0x7e9   : > { %v6787_v63 = vadd.f32 %v6786_v25, %v6703_v62 }
 0x7ea   : > { %v8675_v21 = vpop.f32.mrf.mxu0 }
 0x7eb   : > { %6792 = vst [vmem:[%s378_s25] sm:$0x1] %v6787_v63 }
 0x7ec   : > { %v6789_v41 = vpop.f32.mrf.mxu0 }
 0x7ed   : > { %8920 = shalt.err (!%p8917_p3)
}
 0x7ee   : > { %s8921_s24 = scalar_lea.hbm %s11185_s13, 16  ;;  %s8925_s12 = scalar_lea.hbm %s11237_s11, 32 }
 0x7ef   : > { %p8922_p4 = scmp.ne.s32.totalorder %s11185_s13, %s8921_s24  ;;  %p8926_p9 = scmp.lt.s32.totalorder %s11185_s13, %s11237_s11 }
 0x7f0   : > { %p8927_p10 = scmp.lt.s32.totalorder %s8925_s12, %s8921_s24 }
 0x7f1   : > { %p8923_p7 = pnand %p8922_p4, %p9071_p5 }
 0x7f2   : > { %p8928_p11 = por %p8927_p10, %p8926_p9 }
 0x7f3   : > { %p8924_p8 = pneg %p8923_p7 }
 0x7f5   : > { %p8929_p12 = pnand %p8928_p11, %p8924_p8 }
 0x7f7   : > { %8932 = shalt.err (!%p8929_p12)
}
 0x7f8   : > { %8680 = dma.vmem_to_hbm [thread:$0]  (%p9071_p5), %s11187_s29, 16, %s11185_s13, %s6794_s14   ;;  %v8676_v22 = vpop.f32.mrf.mxu0 }
 0x7f9 PF: > { %p8686_p13 = scmp.ge.s32.totalorder %s8967_s20, 2  ;;  %s6818_s22 = sand.u32 1, %s8955_s17  }
 0x7fa   : > { %s6819_s0 = scalar_lea.sflag [#allocation9], %s6818_s22 }
 0x7fb   : > { %p8683_p0 = pnand %p8686_p13, %p9075_p6 }
 0x7fd   : > { %p8684_p1 = pneg %p8683_p0 }
 0x7ff   : > { %8950 = dma.done.wait (%p8684_p1), %s6819_s0, 16  }
 0x800   : > { %8952 = vsyncadd (%p8684_p1), %s6819_s0, 4294967280  ;;  %p21_p2 = scmp.ge.s32.totalorder %s9058_s23, 4   ;;  %s11367_s17 = smov %s8959_s18 }
 0x801   : > { %s11368_s18 = smov %s8963_s19  ;;  %s11369_s19 = smov %s9069_s26 }
 0x802   : > { %s11370_s20 = smov %s9058_s23  ;;  %23 = sbr.rel (!%p21_p2) target bundleno = 5 (0x5), region = 280 }
 0x807   :  { %6823 = vsyncpa [#allocation9], 1 }
 0x808   :  { %6825 = vsyncpa [#allocation9 + $0x1], 1 }

</bundles_post_ra>
